<compile_context>
chip_gen: v6e
topology: v6e:2x2x1
jax: 0.10.0
libtpu: 0.0.40
codegen_flags: <defaults>
</compile_context>

<pallas_src>
import jax
import jax.numpy as jnp
from jax.experimental import pallas as pl
from jax.experimental.pallas import tpu as pltpu


def _round_up(x, m):
    return (x + m - 1) // m * m


# ----------------------------------------------------------------------------
# Fused multi-layer MLP kernel:  [Linear + ReLU] * L  + final BN affine.
# All layer weights stay resident in VMEM; intermediates stay in registers
# (bf16 into the MXU, f32 accumulation).
# ----------------------------------------------------------------------------
def _make_fused_mlp_kernel(num_layers):
    def kernel(*refs):
        x_ref = refs[0]
        sc_ref = refs[1 + 2 * num_layers]
        sh_ref = refs[2 + 2 * num_layers]
        o_ref = refs[3 + 2 * num_layers]
        h = x_ref[...]                                    # [rt, Cin] bf16
        for l in range(num_layers):                       # static: fully unrolled
            w_ref = refs[1 + 2 * l]
            b_ref = refs[2 + 2 * l]
            h = jnp.dot(h.astype(jnp.bfloat16), w_ref[...],
                        preferred_element_type=jnp.float32)   # MXU, f32 acc
            h = jnp.maximum(h + b_ref[...], 0.0)              # Linear + ReLU
        h = h * sc_ref[...] + sh_ref[...]                     # last BN affine
        o_ref[...] = h.astype(o_ref.dtype)
    return kernel


def fused_mlp(x, layers, final_affine, *, row_tile=512, out_dtype=jnp.float32):
    """Apply [Linear+ReLU]*L + final affine in a single pallas_call.

    x: [N, Cin].  layers: list of (W[Cin,Cout] (BN-folded), b[1,Cout]).
    final_affine: (scale[1,Cout_last], shift[1,Cout_last]).
    """
    n, cin = x.shape
    cout = layers[-1][0].shape[1]

    rt = min(row_tile, _round_up(n, 8))
    # keep >=2 parallel row tiles when possible so both v7x TensorCores work
    if _round_up(n, rt) // rt < 2:
        rt2 = max(8, _round_up(rt // 2, 8))
        if _round_up(n, rt2) // rt2 >= 2:
            rt = rt2
    n_pad = _round_up(n, rt)
    xp = jnp.zeros((n_pad, cin), jnp.bfloat16).at[:n].set(x.astype(jnp.bfloat16))

    in_specs = [pl.BlockSpec((rt, cin), lambda i: (i, 0))]        # row tile of x
    args = [xp]
    for (w, b) in layers:
        ci, co = w.shape
        in_specs += [pl.BlockSpec((ci, co), lambda i: (0, 0)),    # W (resident)
                     pl.BlockSpec((1, co), lambda i: (0, 0))]     # bias
        args += [w.astype(jnp.bfloat16), b.astype(jnp.float32)]
    sc, sh = final_affine
    in_specs += [pl.BlockSpec((1, cout), lambda i: (0, 0)),
                 pl.BlockSpec((1, cout), lambda i: (0, 0))]
    args += [sc.astype(jnp.float32), sh.astype(jnp.float32)]

    out = pl.pallas_call(
        _make_fused_mlp_kernel(len(layers)),
        out_shape=jax.ShapeDtypeStruct((n_pad, cout), out_dtype),
        grid_spec=pltpu.PrefetchScalarGridSpec(
            num_scalar_prefetch=0,
            grid=(n_pad // rt,),
            in_specs=in_specs,
            out_specs=pl.BlockSpec((rt, cout), lambda i: (i, 0)),
        ),
        compiler_params=pltpu.CompilerParams(
            dimension_semantics=("parallel",),
            vmem_limit_bytes=32 * 1024 * 1024),
    )(*args)
    return out[:n]


# ----------------------------------------------------------------------------
# Single-pass sorted segment-max ("scatter_max into zero-initialized output").
#   Rows are pre-sorted by set index and block-aligned so that every
#   s_tile-row tile maps to exactly one kp_tile-keypoint output block.
#   The output block index is read from a scalar-prefetched tile->block map.
#   result[k, c] = max(0, max_{s in segment k} features[s, c])
# ----------------------------------------------------------------------------
def scatter_max_pallas(features, local_idx, blk_of_tile, num_blocks,
                       *, kp_tile=8, s_tile=256, c_tile=128):
    s_pad, c = features.shape
    assert s_pad % s_tile == 0
    n_tiles = s_pad // s_tile
    assert blk_of_tile.shape[0] == n_tiles
    ct = c_tile if c % c_tile == 0 else c
    k_rows = num_blocks * kp_tile

    def kernel(blk_ref, idx_ref, feat_ref, o_ref):
        si = pl.program_id(1)
        prev = blk_ref[jnp.maximum(si - 1, 0)]
        is_first = jnp.logical_or(si == 0, blk_ref[si] != prev)

        @pl.when(is_first)                      # new output block: re-init
        def _():
            o_ref[...] = jnp.zeros_like(o_ref)

        # floor at 0 == scatter_max into a zero-initialized output, so padding
        # rows / empty segments need no -inf sentinel.
        feat = jnp.maximum(feat_ref[...].astype(jnp.float32), 0.0)   # [st, ct]
        idx = idx_ref[...]                      # [st, 1] int32; -1 = padding row
        rows = []
        for t in range(kp_tile):                # static; kp_tile == 8
            m = jnp.max(jnp.where(idx == t, feat, 0.0), axis=0, keepdims=True)
            rows.append(m)
        upd = jnp.concatenate(rows, axis=0)     # [kp_tile, ct]
        o_ref[...] = jnp.maximum(o_ref[...], upd)   # ONE dense update per tile

    return pl.pallas_call(
        kernel,
        out_shape=jax.ShapeDtypeStruct((k_rows, c), jnp.float32),
        grid_spec=pltpu.PrefetchScalarGridSpec(
            num_scalar_prefetch=1,              # blk_of_tile -> SMEM
            grid=(c // ct, n_tiles),
            in_specs=[
                pl.BlockSpec((s_tile, 1), lambda cb, si, blk: (si, 0)),
                pl.BlockSpec((s_tile, ct), lambda cb, si, blk: (si, cb)),
            ],
            out_specs=pl.BlockSpec((kp_tile, ct), lambda cb, si, blk: (blk[si], cb)),
        ),
        compiler_params=pltpu.CompilerParams(
            dimension_semantics=("parallel", "arbitrary"),
            vmem_limit_bytes=32 * 1024 * 1024),
    )(blk_of_tile, local_idx, features)


def _build_block_csr(sidx, num_keypoints, *, kp_tile, s_tile):
    """Sort rows by set index and lay them out so every s_tile-row tile belongs
    to a single kp_tile-keypoint output block (block-aligned CSR layout)."""
    s = sidx.shape[0]
    num_blocks = pl.cdiv(num_keypoints, kp_tile)
    order = jnp.argsort(sidx)
    sidx_sorted = sidx[order].astype(jnp.int32)
    b_of_row = sidx_sorted // kp_tile
    counts = jnp.bincount(b_of_row, length=num_blocks).astype(jnp.int32)
    padded = jnp.maximum(s_tile, ((counts + s_tile - 1) // s_tile) * s_tile)
    dest_start = jnp.concatenate(
        [jnp.zeros((1,), jnp.int32), jnp.cumsum(padded)[:-1].astype(jnp.int32)])
    row_start = jnp.concatenate(
        [jnp.zeros((1,), jnp.int32), jnp.cumsum(counts)[:-1].astype(jnp.int32)])
    dest = dest_start[b_of_row] + (jnp.arange(s, dtype=jnp.int32) - row_start[b_of_row])

    s_pad = _round_up(s, s_tile) + num_blocks * s_tile   # static upper bound
    n_tiles = s_pad // s_tile
    tile_row = jnp.arange(n_tiles, dtype=jnp.int32) * s_tile
    blk_of_tile = jnp.clip(
        jnp.searchsorted(dest_start, tile_row, side="right") - 1,
        0, num_blocks - 1).astype(jnp.int32)              # non-decreasing
    local_idx = (sidx_sorted - b_of_row * kp_tile).astype(jnp.int32)
    return order, dest, local_idx, blk_of_tile, s_pad, num_blocks


# ----------------------------------------------------------------------------
# Parameter setup — mirrors multi_layer_neural_network_fn (Linear, ReLU, BN)
# ----------------------------------------------------------------------------
def init_mlp_params(key, dims):
    params = []
    for i in range(1, len(dims)):
        cin, cout = dims[i - 1], dims[i]
        key, k1, k2, k3, k4, k5, k6 = jax.random.split(key, 7)
        w = jax.random.normal(k1, (cin, cout), jnp.float32) / jnp.sqrt(cin)
        b = 0.1 * jax.random.normal(k2, (1, cout), jnp.float32)
        gamma = 1.0 + 0.1 * jax.random.normal(k3, (1, cout), jnp.float32)
        beta = 0.1 * jax.random.normal(k4, (1, cout), jnp.float32)
        mean = 0.1 * jax.random.normal(k5, (1, cout), jnp.float32)
        var = jnp.abs(jax.random.normal(k6, (1, cout), jnp.float32)) + 0.5
        eps = 1e-5
        scale = gamma / jnp.sqrt(var + eps)
        shift = beta - mean * scale
        params.append((w, b, scale, shift))
    return params, key


def prepare_mlp(params, pad_first_in=None):
    """Fold each BN-eval affine into the NEXT layer's Linear (the last BN stays
    explicit) and zero-pad all widths to multiples of 128 lanes."""
    dims = [params[0][0].shape[0]] + [w.shape[1] for (w, _, _, _) in params]
    pdims = [dims[0] if pad_first_in is None else pad_first_in]
    pdims += [_round_up(d, 128) for d in dims[1:]]
    layers = []
    for i, (w, b, sc, sh) in enumerate(params):
        if i > 0:
            psc, psh = params[i - 1][2], params[i - 1][3]
            b = b + psh @ w                 # fold previous BN shift into bias
            w = psc.reshape(-1, 1) * w      # fold previous BN scale into weights
        wp = jnp.zeros((pdims[i], pdims[i + 1]), jnp.float32)
        wp = wp.at[:dims[i], :dims[i + 1]].set(w)
        bp = jnp.zeros((1, pdims[i + 1]), jnp.float32).at[:, :dims[i + 1]].set(b)
        layers.append((wp, bp))
    sc, sh = params[-1][2], params[-1][3]
    scp = jnp.zeros((1, pdims[-1]), jnp.float32).at[:, :dims[-1]].set(sc)
    shp = jnp.zeros((1, pdims[-1]), jnp.float32).at[:, :dims[-1]].set(sh)
    return layers, (scp, shp), pdims


# ----------------------------------------------------------------------------
# PointSetPooling.forward
# ----------------------------------------------------------------------------
def point_set_pooling_forward(point_features, point_coordinates,
                              keypoint_indices, set_indices,
                              point_params, out_params,
                              *, kp_tile=8, s_tile=256):
    num_keypoints = keypoint_indices.shape[0]
    pidx = set_indices[:, 0]
    sidx = set_indices[:, 1]

    # Sorted, block-aligned row layout so the segment max is one streaming pass.
    order, dest, local_idx, blk_of_tile, s_pad, num_blocks = _build_block_csr(
        sidx, num_keypoints, kp_tile=kp_tile, s_tile=s_tile)

    # --- gather / relative-coordinate glue (plain JAX indexing, 4 channels) ---
    pidx_s = pidx[order]
    sidx_s = sidx[order]
    psf = point_features[pidx_s]                              # [S, M]
    psc = point_coordinates[pidx_s]                           # [S, D]
    kpc = point_coordinates[keypoint_indices[sidx_s, 0]]      # [S, D]
    x = jnp.concatenate([psf, psc - kpc], axis=-1)            # [S, M+D]
    cin = x.shape[1]

    # Scatter into the block-aligned layout (padding rows stay zero / idx=-1).
    x_csr = jnp.zeros((s_pad, cin), x.dtype).at[dest].set(x)
    idx_csr = jnp.full((s_pad, 1), -1, jnp.int32).at[dest, 0].set(local_idx)

    # BN folding + 128-lane padding of all layer widths.
    point_layers, point_affine, _ = prepare_mlp(point_params)
    out_layers, out_affine, _ = prepare_mlp(
        out_params, pad_first_in=_round_up(out_params[0][0].shape[0], 128))

    # point MLP: one fused pallas_call; bf16 [S, 384] intermediate.
    h = fused_mlp(x_csr, point_layers, point_affine,
                  row_tile=512, out_dtype=jnp.bfloat16)       # [s_pad, 384]

    # max aggregation over sets: single-pass Pallas segment max.
    set_features = scatter_max_pallas(h, idx_csr, blk_of_tile, num_blocks,
                                      kp_tile=kp_tile, s_tile=s_tile)
    set_features = set_features[:num_keypoints]               # [K, 384]

    # output MLP: one fused pallas_call.
    out = fused_mlp(set_features, out_layers, out_affine,
                    row_tile=512, out_dtype=jnp.float32)      # [K, 384]
    out_dim = out_params[-1][0].shape[1]
    return out[:, :out_dim]


# ----------------------------------------------------------------------------
if __name__ == "__main__":
    key = jax.random.PRNGKey(0)

    # small shapes: N points with M=1 features + D=3 coords (=> 4 = MLP input),
    # K keypoints, S (point, set) pairs.  K and S deliberately not multiples of
    # the tile sizes to exercise the padding / remainder paths.
    N, M, D, K, S = 32, 1, 3, 10, 100

    key, k1, k2, k3, k4, k5 = jax.random.split(key, 6)
    point_features = jax.random.normal(k1, (N, M), jnp.float32)
    point_coordinates = jax.random.normal(k2, (N, D), jnp.float32)
    keypoint_indices = jax.random.randint(k3, (K, 1), 0, N)
    set_point = jax.random.randint(k4, (S,), 0, N)
    set_set = jax.random.randint(k5, (S,), 0, K)
    set_indices = jnp.stack([set_point, set_set], axis=1)     # [S, 2]

    key, kparams = jax.random.split(key)
    point_params, kparams = init_mlp_params(kparams, [4, 32, 64, 128, 300])
    out_params, _ = init_mlp_params(kparams, [300, 300, 300])

    out = point_set_pooling_forward(point_features, point_coordinates,
                                    keypoint_indices, set_indices,
                                    point_params, out_params)
    out = jax.block_until_ready(out)
    assert out.shape == (K, 300)

    # ---- pure-JAX reference check (f32, unfolded / unpadded params) ----
    def ref_mlp(h, params):
        for (w, b, scale, shift) in params:
            h = jnp.maximum(h @ w + b, 0.0) * scale + shift
        return h

    pidx = set_indices[:, 0]
    sidx = set_indices[:, 1]
    xref = jnp.concatenate(
        [point_features[pidx],
         point_coordinates[pidx] - point_coordinates[keypoint_indices[sidx, 0]]],
        axis=-1)
    href = ref_mlp(xref, point_params)
    seg = jax.ops.segment_max(href, sidx, num_segments=K)
    seg = jnp.maximum(seg, 0.0)     # scatter_max into zero-initialized output
    ref = ref_mlp(seg, out_params)
    err = float(jnp.max(jnp.abs(out - ref)))
    assert jnp.allclose(out, ref, atol=1e-1, rtol=5e-2), err

    print("KERNEL_OK")
</pallas_src>

<mosaic_0001>
module attributes {stable_mosaic.version = 11 : i64} {
  func.func @kernel(%arg0: i32, %arg1: memref<512x4xbf16, #tpu.memory_space<vmem>>, %arg2: memref<4x128xbf16, #tpu.memory_space<vmem>>, %arg3: memref<1x128xf32, #tpu.memory_space<vmem>>, %arg4: memref<128x128xbf16, #tpu.memory_space<vmem>>, %arg5: memref<1x128xf32, #tpu.memory_space<vmem>>, %arg6: memref<128x128xbf16, #tpu.memory_space<vmem>>, %arg7: memref<1x128xf32, #tpu.memory_space<vmem>>, %arg8: memref<128x384xbf16, #tpu.memory_space<vmem>>, %arg9: memref<1x384xf32, #tpu.memory_space<vmem>>, %arg10: memref<1x384xf32, #tpu.memory_space<vmem>>, %arg11: memref<1x384xf32, #tpu.memory_space<vmem>>, %arg12: memref<512x384xbf16, #tpu.memory_space<vmem>>) attributes {dimension_semantics = [#tpu.dimension_semantics<parallel>], iteration_bounds = array<i64: 2>, scalar_prefetch = 0 : i64, scratch_operands = 0 : i64, tpu.core_type = #tpu.core_type<tc>, window_params = [{transform_indices = @transform_0, window_bounds = array<i64: 512, 4>}, {pipeline_mode = #tpu.pipeline_mode<synchronous>, transform_indices = @transform_1, window_bounds = array<i64: 4, 128>}, {pipeline_mode = #tpu.pipeline_mode<synchronous>, transform_indices = @transform_2, window_bounds = array<i64: 1, 128>}, {pipeline_mode = #tpu.pipeline_mode<synchronous>, transform_indices = @transform_3, window_bounds = array<i64: 128, 128>}, {pipeline_mode = #tpu.pipeline_mode<synchronous>, transform_indices = @transform_4, window_bounds = array<i64: 1, 128>}, {pipeline_mode = #tpu.pipeline_mode<synchronous>, transform_indices = @transform_5, window_bounds = array<i64: 128, 128>}, {pipeline_mode = #tpu.pipeline_mode<synchronous>, transform_indices = @transform_6, window_bounds = array<i64: 1, 128>}, {pipeline_mode = #tpu.pipeline_mode<synchronous>, transform_indices = @transform_7, window_bounds = array<i64: 128, 384>}, {pipeline_mode = #tpu.pipeline_mode<synchronous>, transform_indices = @transform_8, window_bounds = array<i64: 1, 384>}, {pipeline_mode = #tpu.pipeline_mode<synchronous>, transform_indices = @transform_9, window_bounds = array<i64: 1, 384>}, {pipeline_mode = #tpu.pipeline_mode<synchronous>, transform_indices = @transform_10, window_bounds = array<i64: 1, 384>}, {transform_indices = @transform_11, window_bounds = array<i64: 512, 384>}]} {
    %c0 = arith.constant 0 : index
    %c0_0 = arith.constant 0 : index
    %0 = vector.load %arg1[%c0, %c0_0] : memref<512x4xbf16, #tpu.memory_space<vmem>>, vector<512x4xbf16>
    %c0_1 = arith.constant 0 : index
    %c0_2 = arith.constant 0 : index
    %1 = vector.load %arg2[%c0_1, %c0_2] : memref<4x128xbf16, #tpu.memory_space<vmem>>, vector<4x128xbf16>
    %cst = arith.constant dense<0.000000e+00> : vector<512x128xf32>
    %2 = tpu.matmul %0, %1, %cst {dimension_numbers = #tpu.dot_dimension_numbers<[1], [0], [0], [1], [0, 0, 1, 1], [], []>} : vector<512x4xbf16>, vector<4x128xbf16>, vector<512x128xf32> -> vector<512x128xf32>
    %c0_3 = arith.constant 0 : index
    %c0_4 = arith.constant 0 : index
    %3 = vector.load %arg3[%c0_3, %c0_4] : memref<1x128xf32, #tpu.memory_space<vmem>>, vector<1x128xf32>
    %4 = vector.broadcast %3 : vector<1x128xf32> to vector<512x128xf32>
    %5 = arith.addf %2, %4 : vector<512x128xf32>
    %cst_5 = arith.constant 0.000000e+00 : f32
    %6 = vector.broadcast %cst_5 : f32 to vector<512x128xf32>
    %7 = arith.maximumf %5, %6 : vector<512x128xf32>
    %8 = arith.truncf %7 : vector<512x128xf32> to vector<512x128xbf16>
    %c0_6 = arith.constant 0 : index
    %c0_7 = arith.constant 0 : index
    %9 = vector.load %arg4[%c0_6, %c0_7] : memref<128x128xbf16, #tpu.memory_space<vmem>>, vector<128x128xbf16>
    %cst_8 = arith.constant dense<0.000000e+00> : vector<512x128xf32>
    %10 = tpu.matmul %8, %9, %cst_8 {dimension_numbers = #tpu.dot_dimension_numbers<[1], [0], [0], [1], [0, 0, 1, 1], [], []>} : vector<512x128xbf16>, vector<128x128xbf16>, vector<512x128xf32> -> vector<512x128xf32>
    %c0_9 = arith.constant 0 : index
    %c0_10 = arith.constant 0 : index
    %11 = vector.load %arg5[%c0_9, %c0_10] : memref<1x128xf32, #tpu.memory_space<vmem>>, vector<1x128xf32>
    %12 = vector.broadcast %11 : vector<1x128xf32> to vector<512x128xf32>
    %13 = arith.addf %10, %12 : vector<512x128xf32>
    %cst_11 = arith.constant 0.000000e+00 : f32
    %14 = vector.broadcast %cst_11 : f32 to vector<512x128xf32>
    %15 = arith.maximumf %13, %14 : vector<512x128xf32>
    %16 = arith.truncf %15 : vector<512x128xf32> to vector<512x128xbf16>
    %c0_12 = arith.constant 0 : index
    %c0_13 = arith.constant 0 : index
    %17 = vector.load %arg6[%c0_12, %c0_13] : memref<128x128xbf16, #tpu.memory_space<vmem>>, vector<128x128xbf16>
    %cst_14 = arith.constant dense<0.000000e+00> : vector<512x128xf32>
    %18 = tpu.matmul %16, %17, %cst_14 {dimension_numbers = #tpu.dot_dimension_numbers<[1], [0], [0], [1], [0, 0, 1, 1], [], []>} : vector<512x128xbf16>, vector<128x128xbf16>, vector<512x128xf32> -> vector<512x128xf32>
    %c0_15 = arith.constant 0 : index
    %c0_16 = arith.constant 0 : index
    %19 = vector.load %arg7[%c0_15, %c0_16] : memref<1x128xf32, #tpu.memory_space<vmem>>, vector<1x128xf32>
    %20 = vector.broadcast %19 : vector<1x128xf32> to vector<512x128xf32>
    %21 = arith.addf %18, %20 : vector<512x128xf32>
    %cst_17 = arith.constant 0.000000e+00 : f32
    %22 = vector.broadcast %cst_17 : f32 to vector<512x128xf32>
    %23 = arith.maximumf %21, %22 : vector<512x128xf32>
    %24 = arith.truncf %23 : vector<512x128xf32> to vector<512x128xbf16>
    %c0_18 = arith.constant 0 : index
    %c0_19 = arith.constant 0 : index
    %25 = vector.load %arg8[%c0_18, %c0_19] : memref<128x384xbf16, #tpu.memory_space<vmem>>, vector<128x384xbf16>
    %cst_20 = arith.constant dense<0.000000e+00> : vector<512x384xf32>
    %26 = tpu.matmul %24, %25, %cst_20 {dimension_numbers = #tpu.dot_dimension_numbers<[1], [0], [0], [1], [0, 0, 1, 1], [], []>} : vector<512x128xbf16>, vector<128x384xbf16>, vector<512x384xf32> -> vector<512x384xf32>
    %c0_21 = arith.constant 0 : index
    %c0_22 = arith.constant 0 : index
    %27 = vector.load %arg9[%c0_21, %c0_22] : memref<1x384xf32, #tpu.memory_space<vmem>>, vector<1x384xf32>
    %28 = vector.broadcast %27 : vector<1x384xf32> to vector<512x384xf32>
    %29 = arith.addf %26, %28 : vector<512x384xf32>
    %cst_23 = arith.constant 0.000000e+00 : f32
    %30 = vector.broadcast %cst_23 : f32 to vector<512x384xf32>
    %31 = arith.maximumf %29, %30 : vector<512x384xf32>
    %c0_24 = arith.constant 0 : index
    %c0_25 = arith.constant 0 : index
    %32 = vector.load %arg10[%c0_24, %c0_25] : memref<1x384xf32, #tpu.memory_space<vmem>>, vector<1x384xf32>
    %33 = vector.broadcast %32 : vector<1x384xf32> to vector<512x384xf32>
    %34 = arith.mulf %31, %33 : vector<512x384xf32>
    %c0_26 = arith.constant 0 : index
    %c0_27 = arith.constant 0 : index
    %35 = vector.load %arg11[%c0_26, %c0_27] : memref<1x384xf32, #tpu.memory_space<vmem>>, vector<1x384xf32>
    %36 = vector.broadcast %35 : vector<1x384xf32> to vector<512x384xf32>
    %37 = arith.addf %34, %36 : vector<512x384xf32>
    %38 = arith.truncf %37 : vector<512x384xf32> to vector<512x384xbf16>
    %c0_28 = arith.constant 0 : index
    %c0_29 = arith.constant 0 : index
    %39 = vector.load %arg12[%c0_28, %c0_29] : memref<512x384xbf16, #tpu.memory_space<vmem>>, vector<512x384xbf16>
    tpu.vector_store %arg12[%c0_28, %c0_29], %38 {strides = array<i32>} : memref<512x384xbf16, #tpu.memory_space<vmem>>, vector<512x384xbf16>,
    return
  }
  func.func @transform_0(%arg0: i32) -> (i32, i32) {
    %c0_i32 = arith.constant 0 : i32
    %c0_i32_0 = arith.constant 0 : i32
    return %arg0, %c0_i32 : i32, i32
  }
  func.func @transform_1(%arg0: i32) -> (i32, i32) {
    %c0_i32 = arith.constant 0 : i32
    %c0_i32_0 = arith.constant 0 : i32
    %c0_i32_1 = arith.constant 0 : i32
    return %c0_i32, %c0_i32_0 : i32, i32
  }
  func.func @transform_2(%arg0: i32) -> (i32, i32) {
    %c0_i32 = arith.constant 0 : i32
    %c0_i32_0 = arith.constant 0 : i32
    %c0_i32_1 = arith.constant 0 : i32
    return %c0_i32, %c0_i32_0 : i32, i32
  }
  func.func @transform_3(%arg0: i32) -> (i32, i32) {
    %c0_i32 = arith.constant 0 : i32
    %c0_i32_0 = arith.constant 0 : i32
    %c0_i32_1 = arith.constant 0 : i32
    return %c0_i32, %c0_i32_0 : i32, i32
  }
  func.func @transform_4(%arg0: i32) -> (i32, i32) {
    %c0_i32 = arith.constant 0 : i32
    %c0_i32_0 = arith.constant 0 : i32
    %c0_i32_1 = arith.constant 0 : i32
    return %c0_i32, %c0_i32_0 : i32, i32
  }
  func.func @transform_5(%arg0: i32) -> (i32, i32) {
    %c0_i32 = arith.constant 0 : i32
    %c0_i32_0 = arith.constant 0 : i32
    %c0_i32_1 = arith.constant 0 : i32
    return %c0_i32, %c0_i32_0 : i32, i32
  }
  func.func @transform_6(%arg0: i32) -> (i32, i32) {
    %c0_i32 = arith.constant 0 : i32
    %c0_i32_0 = arith.constant 0 : i32
    %c0_i32_1 = arith.constant 0 : i32
    return %c0_i32, %c0_i32_0 : i32, i32
  }
  func.func @transform_7(%arg0: i32) -> (i32, i32) {
    %c0_i32 = arith.constant 0 : i32
    %c0_i32_0 = arith.constant 0 : i32
    %c0_i32_1 = arith.constant 0 : i32
    return %c0_i32, %c0_i32_0 : i32, i32
  }
  func.func @transform_8(%arg0: i32) -> (i32, i32) {
    %c0_i32 = arith.constant 0 : i32
    %c0_i32_0 = arith.constant 0 : i32
    %c0_i32_1 = arith.constant 0 : i32
    return %c0_i32, %c0_i32_0 : i32, i32
  }
  func.func @transform_9(%arg0: i32) -> (i32, i32) {
    %c0_i32 = arith.constant 0 : i32
    %c0_i32_0 = arith.constant 0 : i32
    %c0_i32_1 = arith.constant 0 : i32
    return %c0_i32, %c0_i32_0 : i32, i32
  }
  func.func @transform_10(%arg0: i32) -> (i32, i32) {
    %c0_i32 = arith.constant 0 : i32
    %c0_i32_0 = arith.constant 0 : i32
    %c0_i32_1 = arith.constant 0 : i32
    return %c0_i32, %c0_i32_0 : i32, i32
  }
  func.func @transform_11(%arg0: i32) -> (i32, i32) {
    %c0_i32 = arith.constant 0 : i32
    %c0_i32_0 = arith.constant 0 : i32
    return %arg0, %c0_i32 : i32, i32
  }
}

</mosaic_0001>

<bundles_post_ra>
// kernel: tpu_custom_call.1
= control target key start
LH: loop header
LB: loop body
LE: loop exit
PB: predicated region body
PF: predicated region fallthrough
CT: control target
= control target key end

     0   :  { %s6837_s0 = inlined_call_operand.vmem [shape: bf16[1024,4], index: 0, kind: input, shape index: {}]   ;;  %s6838_s1 = inlined_call_operand.vmem [shape: bf16[4,128], index: 1, kind: input, shape index: {}]   ;;  %s6839_s2 = inlined_call_operand.vmem [shape: f32[1,128], index: 2, kind: input, shape index: {}]   ;;  %s6840_s3 = inlined_call_operand.vmem [shape: bf16[128,128], index: 3, kind: input, shape index: {}]   ;;  %s6841_s4 = inlined_call_operand.vmem [shape: f32[1,128], index: 4, kind: input, shape index: {}]   ;;  %s6842_s5 = inlined_call_operand.vmem [shape: bf16[128,128], index: 5, kind: input, shape index: {}]   ;;  %s6843_s6 = inlined_call_operand.vmem [shape: f32[1,128], index: 6, kind: input, shape index: {}]   ;;  %s6844_s7 = inlined_call_operand.vmem [shape: bf16[128,384], index: 7, kind: input, shape index: {}]   ;;  %s6845_s8 = inlined_call_operand.vmem [shape: f32[1,384], index: 8, kind: input, shape index: {}]   ;;  %s6846_s9 = inlined_call_operand.vmem [shape: f32[1,384], index: 9, kind: input, shape index: {}]   ;;  %s6847_s10 = inlined_call_operand.vmem [shape: f32[1,384], index: 10, kind: input, shape index: {}]   ;;  %s6848_s11 = inlined_call_operand.hbm [shape: bf16[1024,384], index: 11, kind: output, shape index: {}]  }
   0x1   :  { %6849 = sst [smem:[#allocation5_spill]] %s6838_s1 }
   0x2   :  { %16 = vsyncpa [#allocation3], 0 }
   0x3   :  { %18 = vsyncpa [#allocation3 + $0x1], 0  ;;  %s5377_s17 = smov 0   ;;  %s5379_s18 = smov 0  }
   0x4   :  { %s5381_s19 = smov 0   ;;  %s5383_s20 = smov 0  }
   0x5 LB: > { %s5398_s21 = sadd.s32 4294967295, %s5311_s20   ;;  %s4293_s22 = sadd.s32 4294967294, %s5311_s20   ;;  %s5311_s20 = sphi %s5383_s20, %s6856_s20   ;;  %s5307_s19 = sphi %s5381_s19, %s6855_s19   ;;  %s5303_s18 = sphi %s5379_s18, %s6854_s18   ;;  %s5299_s17 = sphi %s5377_s17, %s6853_s17  }
   0x6   : > { %s5402_s23 = sadd.s32 1, %s5311_s20   ;;  %s267_s24 = sadd.s32 1, %s5307_s19 }
   0x7   : > { %s264_s25 = ssub.s32 %s5311_s20, %s5402_s23  ;;  %p277_p0 = scmp.ne.s32.totalorder %s5307_s19, %s5303_s18 }
   0x8   : > { %p265_p1 = scmp.eq.s32.totalorder %s264_s25, 0  ;;  %p278_p2 = scmp.eq.s32.totalorder %s5398_s21, 1 }
   0x9   : > { %p283_p3 = scmp.ne.s32.totalorder %s5303_s18, %s5299_s17  ;;  %p284_p4 = scmp.eq.s32.totalorder %s4293_s22, 1 }
   0xa   : > { %s5413_s26 = scalar_select %p265_p1, %s5307_s19, %s267_s24  }
   0xb   : > { %p5415_p5 = por %p278_p2, %p277_p0  ;;  %p5419_p6 = por %p284_p4, %p283_p3 }
   0xc   : > { %p4296_p7 = scmp.ge.s32.totalorder %s5311_s20, 1  ;;  %p341_p8 = scmp.lt.s32.totalorder %s5311_s20, 3 }
   0xe   : > { %p342_p9 = pnand %p4296_p7, %p341_p8 }
   0xf   : > { %s6852_s1 = sld [smem:[#allocation5_spill]] (!%p342_p9)  ;;  %s4297_s12 = sshll.u32 (!%p342_p9), %s5398_s21, 6 }
  0x10   : > { %345 = sbr.rel (%p342_p9) target bundleno = 1115 (0x45b), region = 64  ;;  %p382_p10 = scmp.lt.s32.totalorder (!%p342_p9), %s4297_s12, 127 }
  0x11   : > { %s378_s29 = sand.u32 (!%p342_p9), 1, %s5303_s18   ;;  %s5314_s24 = smov (!%p342_p9), [#allocation2]  }
  0x12   : > { %s5977_s30 = smul.u32 (!%p342_p9), 768, %s378_s29 }
  0x14   : > { %s6000_s14 = scalar_lea.vmem (!%p342_p9), [#allocation2], %s5977_s30 }
  0x15   : > { %v453_v0 = vld [vmem:[%s6852_s1] sm:$0x3]  ;;  %vm718_vm0 = vcmask 1041408   ;;  %v5197_v1 = vld [vmem:[%s6840_s3 + $0x38] sm:$0xff]   ;;  %v5198_v3 = vld [vmem:[%s6840_s3 + $0x30] sm:$0xff]   ;;  %s6858_s12 = smov (!%p382_p10, %s4297_s12), 127 }
  0x16   : > { %5126 = vmatprep.subr.msk.bf16.mxu0 %vm718_vm0, %v453_v0  ;;  %v720_v2 = vsel %vm718_vm0, %v453_v0, 0  ;;  %4886 = vmatprep.subr.bf16.mxu1 %v5197_v1  ;;  %v5201_v4 = vld [vmem:[%s6840_s3 + $0x28] sm:$0xff]   ;;  %s4298_s25 = sshll.u32 %s6858_s12, 2  ;;  %vm621_vm1 = vcmask 31744   ;;  %v5202_v5 = vld [vmem:[%s6840_s3 + $0x20] sm:$0xff]   ;;  %v5205_v9 = vld [vmem:[%s6840_s3 + $0x18] sm:$0xff]  }
  0x17   : > { %4821 = vmatpush3.bf16.msra.mxu0 %v720_v2  ;;  %4887 = vmatpush3.bf16.msra.mxu1 %v5197_v1  ;;  %s5441_s13 = scalar_lea.vmem %s6837_s0, %s4298_s25  ;;  %v5206_v26 = vld [vmem:[%s6840_s3 + $0x10] sm:$0xff]   ;;  %v5209_v28 = vld [vmem:[%s6840_s3 + $0x8] sm:$0xff]   ;;  %v5210_v30 = vld [vmem:[%s6840_s3] sm:$0xff]   ;;  %s5128_s1 = smul.u32 12288, %s5398_s21 }
  0x18   : > { %4888 = vmatprep.subr.bf16.mxu1 %v5198_v3  ;;  %v5171_v6 = vld [vmem:[%s5441_s13] sm:$0xff]   ;;  %v5172_v7 = vld [vmem:[%s5441_s13 + $0x8] sm:$0xff]   ;;  %v5173_v8 = vld [vmem:[%s5441_s13 + $0x10] sm:$0xff]   ;;  %s4231_s12 = sshll.u32 %s6000_s14, 4  ;;  %s6797_s21 = scalar_lea.sflag [#allocation3], %s378_s29  ;;  %s6792_s12 = int_to_ptr.vmem [resolvable:$true] %s4231_s12 }
  0x19   : > { %4822 = vmatprep.mubr.msk.bf16.mxu0 %vm621_vm1, %v5171_v6  ;;  %v5174_v10 = vld [vmem:[%s5441_s13 + $0x18] sm:$0xff]   ;;  %v5175_v11 = vld [vmem:[%s5441_s13 + $0x20] sm:$0xff]   ;;  %v5176_v12 = vld [vmem:[%s5441_s13 + $0x28] sm:$0xff]   ;;  %s5251_s22 = scalar_lea.vmem %s6792_s12, 12288  ;;  %s5255_s25 = sshll.u32 %s5314_s24, 4  ;;  %s5256_s25 = int_to_ptr.vmem [resolvable:$false] %s5255_s25 }
  0x1a   : > { %4823 = vmatmul.mubr.msk.bf16.vlgmr.msra.gmra.mxu0 %vm621_vm1, %v5172_v7  ;;  %v5177_v13 = vld [vmem:[%s5441_s13 + $0x30] sm:$0xff]   ;;  %v5178_v14 = vld [vmem:[%s5441_s13 + $0x38] sm:$0xff]   ;;  %v5179_v15 = vld [vmem:[%s5441_s13 + $0x40] sm:$0xff]   ;;  %p5252_p11 = scmp.ne.s32.totalorder %s6792_s12, %s5251_s22  ;;  %s5257_s30 = scalar_lea.vmem %s5256_s25, 24576 }
  0x1b   : > { %4889 = vmatpush3.bf16.msra.mxu1 %v5198_v3  ;;  %4826 = vmatprep.mubr.msk.bf16.mxu0 %vm621_vm1, %v5173_v8  ;;  %v5180_v16 = vld [vmem:[%s5441_s13 + $0x48] sm:$0xff]   ;;  %v5181_v17 = vld [vmem:[%s5441_s13 + $0x50] sm:$0xff]   ;;  %v5182_v18 = vld [vmem:[%s5441_s13 + $0x58] sm:$0xff]   ;;  %p5258_p0 = scmp.lt.s32.totalorder %s6792_s12, %s5256_s25  ;;  %p5259_p1 = scmp.lt.s32.totalorder %s5257_s30, %s5251_s22 }
  0x1c   : > { %4890 = vmatprep.subr.bf16.mxu1 %v5201_v4  ;;  %v5183_v19 = vld [vmem:[%s5441_s13 + $0x60] sm:$0xff]   ;;  %v5184_v20 = vld [vmem:[%s5441_s13 + $0x68] sm:$0xff]   ;;  %v5185_v21 = vld [vmem:[%s5441_s13 + $0x70] sm:$0xff]   ;;  %p5253_p12 = pnand %p5252_p11, %p5415_p5 }
  0x1d   : > { %v5186_v22 = vld [vmem:[%s5441_s13 + $0x78] sm:$0xff]   ;;  %v5187_v23 = vld [vmem:[%s5441_s13 + $0x80] sm:$0xff]   ;;  %v5188_v24 = vld [vmem:[%s5441_s13 + $0x88] sm:$0xff]   ;;  %p5260_p2 = por %p5259_p1, %p5258_p0 }
  0x1e   : > { %v5189_v25 = vld [vmem:[%s5441_s13 + $0x90] sm:$0xff]   ;;  %v5190_v27 = vld [vmem:[%s5441_s13 + $0x98] sm:$0xff]   ;;  %v5191_v29 = vld [vmem:[%s5441_s13 + $0xa0] sm:$0xff]   ;;  %p5254_p13 = pneg %p5253_p12 }
  0x1f   : > { %4891 = vmatpush3.bf16.msra.mxu1 %v5201_v4  ;;  %v5192_v31 = vld [vmem:[%s5441_s13 + $0xa8] sm:$0xff]   ;;  %v5193_v32 = vld [vmem:[%s5441_s13 + $0xb0] sm:$0xff]   ;;  %v5194_v33 = vld [vmem:[%s5441_s13 + $0xb8] sm:$0xff]  }
  0x20   : > { %4892 = vmatprep.subr.bf16.mxu1 %v5202_v5  ;;  %v5195_v34 = vld [vmem:[%s5441_s13 + $0xc0] sm:$0xff]   ;;  %v5196_v35 = vld [vmem:[%s5441_s13 + $0xc8] sm:$0xff]   ;;  %v5199_v36 = vld [vmem:[%s5441_s13 + $0xd0] sm:$0xff]   ;;  %p5261_p3 = pnand %p5260_p2, %p5254_p13 }
  0x21   : > { %v5200_v37 = vld [vmem:[%s5441_s13 + $0xd8] sm:$0xff]   ;;  %v5203_v38 = vld [vmem:[%s5441_s13 + $0xe0] sm:$0xff]   ;;  %v5204_v39 = vld [vmem:[%s5441_s13 + $0xe8] sm:$0xff]  }
  0x22   : > { %4827 = vmatmul.mubr.msk.bf16.gmra.mxu0 %vm621_vm1, %v5174_v10  ;;  %v5207_v40 = vld [vmem:[%s5441_s13 + $0xf0] sm:$0xff]   ;;  %v5208_v41 = vld [vmem:[%s5441_s13 + $0xf8] sm:$0xff]   ;;  %v5213_v44 = vld [vmem:[%s6842_s5 + $0x28] sm:$0xff]   ;;  %s6790_s13 = scalar_lea.hbm %s6848_s11, %s5128_s1 }
  0x23   : > { %4893 = vmatpush3.bf16.msra.mxu1 %v5202_v5  ;;  %4830 = vmatprep.mubr.msk.bf16.mxu0 %vm621_vm1, %v5175_v11  ;;  %v5211_v42 = vld [vmem:[%s6842_s5 + $0x38] sm:$0xff]   ;;  %v5212_v43 = vld [vmem:[%s6842_s5 + $0x30] sm:$0xff]   ;;  %v5214_v45 = vld [vmem:[%s6842_s5 + $0x20] sm:$0xff]  }
  0x24   : > { %4894 = vmatprep.subr.bf16.mxu1 %v5205_v9  ;;  %4966 = vmatprep.subr.bf16.mxu0 %v5211_v42  ;;  %v5215_v46 = vld [vmem:[%s6842_s5 + $0x18] sm:$0xff]   ;;  %v5216_v47 = vld [vmem:[%s6842_s5 + $0x10] sm:$0xff]   ;;  %v5217_v48 = vld [vmem:[%s6842_s5 + $0x8] sm:$0xff]  }
  0x25   : > { %4967 = vmatpush3.bf16.msra.mxu0 %v5211_v42  ;;  %v5218_v50 = vld [vmem:[%s6842_s5] sm:$0xff]  }
  0x26   : > { %4968 = vmatprep.subr.bf16.mxu0 %v5212_v43  ;;  %v5549_v52 = vld [vmem:[%s6839_s2] ss:$0 sm:$0xff] }
  0x27   : > { %4895 = vmatpush3.bf16.msra.mxu1 %v5205_v9 }
  0x28   : > { %4896 = vmatprep.subr.bf16.mxu1 %v5206_v26 }
  0x29   : > { %4969 = vmatpush3.bf16.msra.mxu0 %v5212_v43 }
  0x2a   : > { %4831 = vmatmul.mubr.msk.bf16.gmra.mxu0 %vm621_vm1, %v5176_v12  ;;  %4970 = vmatprep.subr.bf16.mxu0 %v5213_v44 }
  0x2b   : > { %4834 = vmatprep.mubr.msk.bf16.mxu0 %vm621_vm1, %v5177_v13  ;;  %4897 = vmatpush3.bf16.msra.mxu1 %v5206_v26 }
  0x2c   : > { %4898 = vmatprep.subr.bf16.mxu1 %v5209_v28 }
  0x2d   : > { %4971 = vmatpush3.bf16.msra.mxu0 %v5213_v44 }
  0x2e   : > { %4972 = vmatprep.subr.bf16.mxu0 %v5214_v45 }
  0x2f   : > { %4899 = vmatpush3.bf16.msra.mxu1 %v5209_v28 }
  0x30   : > { %4900 = vmatprep.subr.bf16.mxu1 %v5210_v30 }
  0x31   : > { %4973 = vmatpush3.bf16.msra.mxu0 %v5214_v45 }
  0x32   : > { %4835 = vmatmul.mubr.msk.bf16.gmra.mxu0 %vm621_vm1, %v5178_v14  ;;  %4974 = vmatprep.subr.bf16.mxu0 %v5215_v46 }
  0x33   : > { %4838 = vmatprep.mubr.msk.bf16.mxu0 %vm621_vm1, %v5179_v15  ;;  %4901 = vmatpush3.bf16.msra.mxu1 %v5210_v30 }
  0x35   : > { %4975 = vmatpush3.bf16.msra.mxu0 %v5215_v46 }
  0x36   : > { %4976 = vmatprep.subr.bf16.mxu0 %v5216_v47 }
  0x39   : > { %4977 = vmatpush3.bf16.msra.mxu0 %v5216_v47 }
  0x3a   : > { %4839 = vmatmul.mubr.msk.bf16.gmra.mxu0 %vm621_vm1, %v5180_v16  ;;  %4978 = vmatprep.subr.bf16.mxu0 %v5217_v48 }
  0x3b   : > { %4842 = vmatprep.mubr.msk.bf16.mxu0 %vm621_vm1, %v5181_v17 }
  0x3d   : > { %4979 = vmatpush3.bf16.msra.mxu0 %v5217_v48 }
  0x3e   : > { %4980 = vmatprep.subr.bf16.mxu0 %v5218_v50 }
  0x41   : > { %4981 = vmatpush3.bf16.msra.mxu0 %v5218_v50 }
  0x42   : > { %4843 = vmatmul.mubr.msk.bf16.gmra.mxu0 %vm621_vm1, %v5182_v18 }
  0x43   : > { %4846 = vmatprep.mubr.msk.bf16.mxu0 %vm621_vm1, %v5183_v19 }
  0x4a   : > { %4847 = vmatmul.mubr.msk.bf16.gmra.mxu0 %vm621_vm1, %v5184_v20 }
  0x4b   : > { %4850 = vmatprep.mubr.msk.bf16.mxu0 %vm621_vm1, %v5185_v21 }
  0x52   : > { %4851 = vmatmul.mubr.msk.bf16.gmra.mxu0 %vm621_vm1, %v5186_v22 }
  0x53   : > { %4854 = vmatprep.mubr.msk.bf16.mxu0 %vm621_vm1, %v5187_v23 }
  0x5a   : > { %4855 = vmatmul.mubr.msk.bf16.gmra.mxu0 %vm621_vm1, %v5188_v24 }
  0x5b   : > { %4858 = vmatprep.mubr.msk.bf16.mxu0 %vm621_vm1, %v5189_v25 }
  0x62   : > { %4859 = vmatmul.mubr.msk.bf16.gmra.mxu0 %vm621_vm1, %v5190_v27 }
  0x63   : > { %4862 = vmatprep.mubr.msk.bf16.mxu0 %vm621_vm1, %v5191_v29 }
  0x6a   : > { %4863 = vmatmul.mubr.msk.bf16.gmra.mxu0 %vm621_vm1, %v5192_v31 }
  0x6b   : > { %4866 = vmatprep.mubr.msk.bf16.mxu0 %vm621_vm1, %v5193_v32 }
  0x72   : > { %4867 = vmatmul.mubr.msk.bf16.gmra.mxu0 %vm621_vm1, %v5194_v33 }
  0x73   : > { %4870 = vmatprep.mubr.msk.bf16.mxu0 %vm621_vm1, %v5195_v34 }
  0x7a   : > { %4871 = vmatmul.mubr.msk.bf16.gmra.mxu0 %vm621_vm1, %v5196_v35 }
  0x7b   : > { %4874 = vmatprep.mubr.msk.bf16.mxu0 %vm621_vm1, %v5199_v36 }
  0x82   : > { %4875 = vmatmul.mubr.msk.bf16.gmra.mxu0 %vm621_vm1, %v5200_v37 }
  0x83   : > { %4878 = vmatprep.mubr.msk.bf16.mxu0 %vm621_vm1, %v5203_v38 }
  0x8a   : > { %4879 = vmatmul.mubr.msk.bf16.gmra.mxu0 %vm621_vm1, %v5204_v39 }
  0x8b   : > { %4882 = vmatprep.mubr.msk.bf16.mxu0 %vm621_vm1, %v5207_v40 }
  0x92   : > { %4883 = vmatmul.mubr.msk.bf16.gmra.mxu0 %vm621_vm1, %v5208_v41 }
  0xda   : > { %v4824_v49 = vpop.f32.mrf.mxu0 }
  0xdb   : > { %v765_v56 = vadd.f32 %v4824_v49, %v5549_v52 }
  0xdc   : > { %v756_v51 = vpop.f32.mrf.mxu0 }
  0xdd   : > { %v757_v54 = vadd.f32 %v5549_v52, %v756_v51  ;;  %v1013_v63 = vmax.f32 %v765_v56, 0.0 }
  0xde   : > { %v4825_v53 = vpop.f32.mrf.mxu0 }
  0xdf   : > { %v768_v55 = vadd.f32 %v4825_v53, %v5549_v52  ;;  %v1011_v61 = vmax.f32 %v757_v54, 0.0 }
  0xe0   : > { %v759_v57 = vpop.f32.mrf.mxu0 }
  0xe1   : > { %v760_v58 = vadd.f32 %v5549_v52, %v759_v57  ;;  %v1014_v59 = vmax.f32 %v768_v55, 0.0 }
  0xe2   : > { %v4828_v60 = vpop.f32.mrf.mxu0 }
  0xe3   : > { %v1012_v62 = vmax.f32 %v760_v58, 0.0  ;;  %v781_v0 = vadd.f32 %v4828_v60, %v5549_v52  ;;  %v1076_v4 = vpack.c.bf16 %v1014_v59, %v1013_v63 }
  0xe4   : > { %v772_v1 = vpop.f32.mrf.mxu0 }
  0xe5   : > { %v773_v2 = vadd.f32 %v5549_v52, %v772_v1  ;;  %v1075_v3 = vpack.c.bf16 %v1012_v62, %v1011_v61  ;;  %v1017_v7 = vmax.f32 %v781_v0, 0.0 }
  0xe6   : > { %v4829_v5 = vpop.f32.mrf.mxu0 }
  0xe7   : > { %v784_v6 = vadd.f32 %v4829_v5, %v5549_v52  ;;  %4902 = vmatprep.mubr.bf16.mxu1 %v1075_v3  ;;  %v1015_v9 = vmax.f32 %v773_v2, 0.0 }
  0xe8   : > { %v775_v8 = vpop.f32.mrf.mxu0  ;;  %4903 = vmatmul.mubr.bf16.vlgmr.msra.gmra.mxu1 %v1076_v4 }
  0xe9   : > { %v1018_v10 = vmax.f32 %v784_v6, 0.0  ;;  %v776_v11 = vadd.f32 %v5549_v52, %v775_v8 }
  0xea   : > { %v4832_v12 = vpop.f32.mrf.mxu0 }
  0xeb   : > { %v1016_v13 = vmax.f32 %v776_v11, 0.0  ;;  %v1078_v14 = vpack.c.bf16 %v1018_v10, %v1017_v7  ;;  %v797_v15 = vadd.f32 %v4832_v12, %v5549_v52 }
  0xec   : > { %v788_v16 = vpop.f32.mrf.mxu0 }
  0xed   : > { %v789_v17 = vadd.f32 %v5549_v52, %v788_v16  ;;  %v1077_v18 = vpack.c.bf16 %v1016_v13, %v1015_v9  ;;  %v1021_v21 = vmax.f32 %v797_v15, 0.0 }
  0xee   : > { %v4833_v19 = vpop.f32.mrf.mxu0 }
  0xef   : > { %v800_v20 = vadd.f32 %v4833_v19, %v5549_v52  ;;  %4906 = vmatprep.mubr.bf16.mxu1 %v1077_v18  ;;  %v1019_v23 = vmax.f32 %v789_v17, 0.0 }
  0xf0   : > { %v791_v22 = vpop.f32.mrf.mxu0  ;;  %4907 = vmatmul.mubr.bf16.gmra.mxu1 %v1078_v14 }
  0xf1   : > { %v1022_v24 = vmax.f32 %v800_v20, 0.0  ;;  %v792_v25 = vadd.f32 %v5549_v52, %v791_v22 }
  0xf2   : > { %v4836_v26 = vpop.f32.mrf.mxu0 }
  0xf3   : > { %v1020_v27 = vmax.f32 %v792_v25, 0.0  ;;  %v1080_v28 = vpack.c.bf16 %v1022_v24, %v1021_v21  ;;  %v813_v29 = vadd.f32 %v4836_v26, %v5549_v52 }
  0xf4   : > { %v804_v30 = vpop.f32.mrf.mxu0 }
  0xf5   : > { %v805_v31 = vadd.f32 %v5549_v52, %v804_v30  ;;  %v1079_v32 = vpack.c.bf16 %v1020_v27, %v1019_v23  ;;  %v1025_v35 = vmax.f32 %v813_v29, 0.0 }
  0xf6   : > { %v4837_v33 = vpop.f32.mrf.mxu0 }
  0xf7   : > { %v816_v34 = vadd.f32 %v4837_v33, %v5549_v52  ;;  %4910 = vmatprep.mubr.bf16.mxu1 %v1079_v32  ;;  %v1023_v37 = vmax.f32 %v805_v31, 0.0 }
  0xf8   : > { %v807_v36 = vpop.f32.mrf.mxu0  ;;  %4911 = vmatmul.mubr.bf16.gmra.mxu1 %v1080_v28 }
  0xf9   : > { %v1026_v38 = vmax.f32 %v816_v34, 0.0  ;;  %v808_v39 = vadd.f32 %v5549_v52, %v807_v36 }
  0xfa   : > { %v4840_v40 = vpop.f32.mrf.mxu0 }
  0xfb   : > { %v1024_v41 = vmax.f32 %v808_v39, 0.0  ;;  %v1082_v42 = vpack.c.bf16 %v1026_v38, %v1025_v35  ;;  %v829_v43 = vadd.f32 %v4840_v40, %v5549_v52 }
  0xfc   : > { %v820_v44 = vpop.f32.mrf.mxu0 }
  0xfd   : > { %v1081_v45 = vpack.c.bf16 %v1024_v41, %v1023_v37  ;;  %v821_v46 = vadd.f32 %v5549_v52, %v820_v44  ;;  %v1029_v49 = vmax.f32 %v829_v43, 0.0 }
  0xfe   : > { %v4841_v47 = vpop.f32.mrf.mxu0 }
  0xff   : > { %4914 = vmatprep.mubr.bf16.mxu1 %v1081_v45  ;;  %v832_v48 = vadd.f32 %v4841_v47, %v5549_v52  ;;  %v1027_v51 = vmax.f32 %v821_v46, 0.0 }
 0x100   : > { %4915 = vmatmul.mubr.bf16.gmra.mxu1 %v1082_v42  ;;  %v823_v50 = vpop.f32.mrf.mxu0 }
 0x101   : > { %v1030_v53 = vmax.f32 %v832_v48, 0.0  ;;  %v824_v54 = vadd.f32 %v5549_v52, %v823_v50 }
 0x102   : > { %v4844_v55 = vpop.f32.mrf.mxu0 }
 0x103   : > { %v1028_v56 = vmax.f32 %v824_v54, 0.0  ;;  %v1084_v57 = vpack.c.bf16 %v1030_v53, %v1029_v49  ;;  %v845_v58 = vadd.f32 %v4844_v55, %v5549_v52 }
 0x104   : > { %v836_v59 = vpop.f32.mrf.mxu0 }
 0x105   : > { %v1083_v60 = vpack.c.bf16 %v1028_v56, %v1027_v51  ;;  %v837_v61 = vadd.f32 %v5549_v52, %v836_v59  ;;  %v1033_v0 = vmax.f32 %v845_v58, 0.0 }
 0x106   : > { %v4845_v62 = vpop.f32.mrf.mxu0 }
 0x107   : > { %4918 = vmatprep.mubr.bf16.mxu1 %v1083_v60  ;;  %v848_v63 = vadd.f32 %v4845_v62, %v5549_v52  ;;  %v1031_v2 = vmax.f32 %v837_v61, 0.0 }
 0x108   : > { %4919 = vmatmul.mubr.bf16.gmra.mxu1 %v1084_v57  ;;  %v839_v1 = vpop.f32.mrf.mxu0 }
 0x109   : > { %v1034_v3 = vmax.f32 %v848_v63, 0.0  ;;  %v840_v4 = vadd.f32 %v5549_v52, %v839_v1 }
 0x10a   : > { %v4848_v5 = vpop.f32.mrf.mxu0 }
 0x10b   : > { %v1032_v6 = vmax.f32 %v840_v4, 0.0  ;;  %v1086_v7 = vpack.c.bf16 %v1034_v3, %v1033_v0  ;;  %v861_v8 = vadd.f32 %v4848_v5, %v5549_v52 }
 0x10c   : > { %v852_v9 = vpop.f32.mrf.mxu0 }
 0x10d   : > { %v1085_v10 = vpack.c.bf16 %v1032_v6, %v1031_v2  ;;  %v853_v11 = vadd.f32 %v5549_v52, %v852_v9  ;;  %v1037_v14 = vmax.f32 %v861_v8, 0.0 }
 0x10e   : > { %v4849_v12 = vpop.f32.mrf.mxu0 }
 0x10f   : > { %4922 = vmatprep.mubr.bf16.mxu1 %v1085_v10  ;;  %v864_v13 = vadd.f32 %v4849_v12, %v5549_v52  ;;  %v1035_v16 = vmax.f32 %v853_v11, 0.0 }
 0x110   : > { %4923 = vmatmul.mubr.bf16.gmra.mxu1 %v1086_v7  ;;  %v855_v15 = vpop.f32.mrf.mxu0 }
 0x111   : > { %v1038_v17 = vmax.f32 %v864_v13, 0.0  ;;  %v856_v18 = vadd.f32 %v5549_v52, %v855_v15 }
 0x112   : > { %v4852_v19 = vpop.f32.mrf.mxu0 }
 0x113   : > { %v1036_v20 = vmax.f32 %v856_v18, 0.0  ;;  %v1088_v21 = vpack.c.bf16 %v1038_v17, %v1037_v14  ;;  %v877_v22 = vadd.f32 %v4852_v19, %v5549_v52 }
 0x114   : > { %v868_v23 = vpop.f32.mrf.mxu0 }
 0x115   : > { %v1087_v24 = vpack.c.bf16 %v1036_v20, %v1035_v16  ;;  %v869_v25 = vadd.f32 %v5549_v52, %v868_v23  ;;  %v1041_v28 = vmax.f32 %v877_v22, 0.0 }
 0x116   : > { %v4853_v26 = vpop.f32.mrf.mxu0 }
 0x117   : > { %4926 = vmatprep.mubr.bf16.mxu1 %v1087_v24  ;;  %v880_v27 = vadd.f32 %v4853_v26, %v5549_v52  ;;  %v1039_v30 = vmax.f32 %v869_v25, 0.0 }
 0x118   : > { %4927 = vmatmul.mubr.bf16.gmra.mxu1 %v1088_v21  ;;  %v871_v29 = vpop.f32.mrf.mxu0 }
 0x119   : > { %v1042_v31 = vmax.f32 %v880_v27, 0.0  ;;  %v872_v32 = vadd.f32 %v5549_v52, %v871_v29 }
 0x11a   : > { %v4856_v33 = vpop.f32.mrf.mxu0 }
 0x11b   : > { %v1040_v34 = vmax.f32 %v872_v32, 0.0  ;;  %v1090_v35 = vpack.c.bf16 %v1042_v31, %v1041_v28  ;;  %v893_v36 = vadd.f32 %v4856_v33, %v5549_v52 }
 0x11c   : > { %v884_v37 = vpop.f32.mrf.mxu0 }
 0x11d   : > { %v1089_v38 = vpack.c.bf16 %v1040_v34, %v1039_v30  ;;  %v885_v39 = vadd.f32 %v5549_v52, %v884_v37  ;;  %v1045_v42 = vmax.f32 %v893_v36, 0.0 }
 0x11e   : > { %v4857_v40 = vpop.f32.mrf.mxu0 }
 0x11f   : > { %4930 = vmatprep.mubr.bf16.mxu1 %v1089_v38  ;;  %v896_v41 = vadd.f32 %v4857_v40, %v5549_v52  ;;  %v1043_v44 = vmax.f32 %v885_v39, 0.0 }
 0x120   : > { %4931 = vmatmul.mubr.bf16.gmra.mxu1 %v1090_v35  ;;  %v887_v43 = vpop.f32.mrf.mxu0 }
 0x121   : > { %v1046_v45 = vmax.f32 %v896_v41, 0.0  ;;  %v888_v46 = vadd.f32 %v5549_v52, %v887_v43 }
 0x122   : > { %v4860_v47 = vpop.f32.mrf.mxu0 }
 0x123   : > { %v1044_v48 = vmax.f32 %v888_v46, 0.0  ;;  %v1092_v49 = vpack.c.bf16 %v1046_v45, %v1045_v42  ;;  %v909_v50 = vadd.f32 %v4860_v47, %v5549_v52 }
 0x124   : > { %v900_v51 = vpop.f32.mrf.mxu0 }
 0x125   : > { %v1091_v53 = vpack.c.bf16 %v1044_v48, %v1043_v44  ;;  %v901_v54 = vadd.f32 %v5549_v52, %v900_v51  ;;  %v1049_v57 = vmax.f32 %v909_v50, 0.0 }
 0x126   : > { %v4861_v55 = vpop.f32.mrf.mxu0 }
 0x127   : > { %4934 = vmatprep.mubr.bf16.mxu1 %v1091_v53  ;;  %v912_v56 = vadd.f32 %v4861_v55, %v5549_v52  ;;  %v1047_v59 = vmax.f32 %v901_v54, 0.0 }
 0x128   : > { %4935 = vmatmul.mubr.bf16.gmra.mxu1 %v1092_v49  ;;  %v903_v58 = vpop.f32.mrf.mxu0 }
 0x129   : > { %v1050_v60 = vmax.f32 %v912_v56, 0.0  ;;  %v904_v61 = vadd.f32 %v5549_v52, %v903_v58 }
 0x12a   : > { %v4864_v62 = vpop.f32.mrf.mxu0 }
 0x12b   : > { %v1048_v63 = vmax.f32 %v904_v61, 0.0  ;;  %v1094_v0 = vpack.c.bf16 %v1050_v60, %v1049_v57  ;;  %v925_v1 = vadd.f32 %v4864_v62, %v5549_v52 }
 0x12c   : > { %v916_v2 = vpop.f32.mrf.mxu0 }
 0x12d   : > { %v1093_v3 = vpack.c.bf16 %v1048_v63, %v1047_v59  ;;  %v917_v4 = vadd.f32 %v5549_v52, %v916_v2  ;;  %v1053_v7 = vmax.f32 %v925_v1, 0.0 }
 0x12e   : > { %v4865_v5 = vpop.f32.mrf.mxu0 }
 0x12f   : > { %4938 = vmatprep.mubr.bf16.mxu1 %v1093_v3  ;;  %v928_v6 = vadd.f32 %v4865_v5, %v5549_v52  ;;  %v1051_v9 = vmax.f32 %v917_v4, 0.0 }
 0x130   : > { %4939 = vmatmul.mubr.bf16.gmra.mxu1 %v1094_v0  ;;  %v919_v8 = vpop.f32.mrf.mxu0 }
 0x131   : > { %v1054_v10 = vmax.f32 %v928_v6, 0.0  ;;  %v920_v11 = vadd.f32 %v5549_v52, %v919_v8 }
 0x132   : > { %v4868_v12 = vpop.f32.mrf.mxu0 }
 0x133   : > { %v1052_v13 = vmax.f32 %v920_v11, 0.0  ;;  %v1096_v14 = vpack.c.bf16 %v1054_v10, %v1053_v7  ;;  %v941_v15 = vadd.f32 %v4868_v12, %v5549_v52 }
 0x134   : > { %v932_v16 = vpop.f32.mrf.mxu0 }
 0x135   : > { %v1095_v17 = vpack.c.bf16 %v1052_v13, %v1051_v9  ;;  %v933_v18 = vadd.f32 %v5549_v52, %v932_v16  ;;  %v1057_v21 = vmax.f32 %v941_v15, 0.0 }
 0x136   : > { %v4869_v19 = vpop.f32.mrf.mxu0 }
 0x137   : > { %4942 = vmatprep.mubr.bf16.mxu1 %v1095_v17  ;;  %v944_v20 = vadd.f32 %v4869_v19, %v5549_v52  ;;  %v1055_v23 = vmax.f32 %v933_v18, 0.0 }
 0x138   : > { %4943 = vmatmul.mubr.bf16.gmra.mxu1 %v1096_v14  ;;  %v935_v22 = vpop.f32.mrf.mxu0 }
 0x139   : > { %v1058_v24 = vmax.f32 %v944_v20, 0.0  ;;  %v936_v25 = vadd.f32 %v5549_v52, %v935_v22  ;;  %v5219_v22 = vld [vmem:[%s6844_s7 + $0xa8] ss:$12 sps:$4 sm:$0xff]  }
 0x13a   : > { %v4872_v26 = vpop.f32.mrf.mxu0 }
 0x13b   : > { %v1056_v27 = vmax.f32 %v936_v25, 0.0  ;;  %v1098_v28 = vpack.c.bf16 %v1058_v24, %v1057_v21  ;;  %v957_v29 = vadd.f32 %v4872_v26, %v5549_v52  ;;  %v5222_v24 = vld [vmem:[%s6844_s7 + $0x90] ss:$12 sps:$4 sm:$0xff]   ;;  %v5225_v25 = vld [vmem:[%s6844_s7 + $0x78] ss:$12 sps:$4 sm:$0xff]  }
 0x13c   : > { %v948_v30 = vpop.f32.mrf.mxu0  ;;  %v5227_v26 = vld [vmem:[%s6844_s7 + $0x7c] ss:$12 sps:$4 sm:$0xff]  }
 0x13d   : > { %v1097_v31 = vpack.c.bf16 %v1056_v27, %v1055_v23  ;;  %v949_v32 = vadd.f32 %v5549_v52, %v948_v30  ;;  %v1061_v35 = vmax.f32 %v957_v29, 0.0  ;;  %v5221_v23 = vld [vmem:[%s6844_s7 + $0xac] ss:$12 sps:$4 sm:$0xff]   ;;  %v5231_v29 = vld [vmem:[%s6844_s7 + $0x48] ss:$12 sps:$4 sm:$0xff]  }
 0x13e   : > { %v4873_v33 = vpop.f32.mrf.mxu0  ;;  %2196 = vmatprep.subr.bf16.mxu1 %v5221_v23  ;;  %v5228_v27 = vld [vmem:[%s6844_s7 + $0x60] ss:$12 sps:$4 sm:$0xff]  }
 0x13f   : > { %4946 = vmatprep.mubr.bf16.mxu1 %v1097_v31  ;;  %v960_v34 = vadd.f32 %v4873_v33, %v5549_v52  ;;  %v1059_v37 = vmax.f32 %v949_v32, 0.0  ;;  %2197 = vmatpush1.bf16.msra.mxu1 %v5219_v22  ;;  %v5233_v30 = vld [vmem:[%s6844_s7 + $0x4c] ss:$12 sps:$4 sm:$0xff]   ;;  %v5234_v31 = vld [vmem:[%s6844_s7 + $0x30] ss:$12 sps:$4 sm:$0xff]  }
 0x140   : > { %4947 = vmatmul.mubr.bf16.gmra.mxu1 %v1098_v28  ;;  %v951_v36 = vpop.f32.mrf.mxu0  ;;  %v5230_v28 = vld [vmem:[%s6844_s7 + $0x64] ss:$12 sps:$4 sm:$0xff]   ;;  %v5236_v32 = vld [vmem:[%s6844_s7 + $0x34] ss:$12 sps:$4 sm:$0xff]  }
 0x141   : > { %v1062_v38 = vmax.f32 %v960_v34, 0.0  ;;  %v952_v39 = vadd.f32 %v5549_v52, %v951_v36  ;;  %v5237_v33 = vld [vmem:[%s6844_s7 + $0x18] ss:$12 sps:$4 sm:$0xff]   ;;  %v5239_v34 = vld [vmem:[%s6844_s7 + $0x1c] ss:$12 sps:$4 sm:$0xff]  }
 0x142   : > { %v4876_v40 = vpop.f32.mrf.mxu0 }
 0x143   : > { %v1060_v41 = vmax.f32 %v952_v39, 0.0  ;;  %v1100_v42 = vpack.c.bf16 %v1062_v38, %v1061_v35  ;;  %v973_v43 = vadd.f32 %v4876_v40, %v5549_v52  ;;  %v5240_v35 = vld [vmem:[%s6844_s7 + $0xb0] ss:$12 sps:$4 sm:$0xff]   ;;  %v5669_v40 = vld [vmem:[%s6841_s4] ss:$0 sm:$0xff] }
 0x144   : > { %v964_v44 = vpop.f32.mrf.mxu0  ;;  %5046 = vmatprep.subr.bf16.mxu0 %v5240_v35  ;;  %v5246_v38 = vld [vmem:[%s6844_s7 + $0x4] ss:$12 sps:$4 sm:$0xff]  }
 0x145   : > { %v1099_v45 = vpack.c.bf16 %v1060_v41, %v1059_v37  ;;  %v965_v46 = vadd.f32 %v5549_v52, %v964_v44  ;;  %v1065_v49 = vmax.f32 %v973_v43, 0.0  ;;  %v5244_v37 = vld [vmem:[%s6844_s7] ss:$12 sps:$4 sm:$0xff]  }
 0x146   : > { %v4877_v47 = vpop.f32.mrf.mxu0 }
 0x147   : > { %4950 = vmatprep.mubr.bf16.mxu1 %v1099_v45  ;;  %v976_v48 = vadd.f32 %v4877_v47, %v5549_v52  ;;  %v1063_v51 = vmax.f32 %v965_v46, 0.0 }
 0x148   : > { %4951 = vmatmul.mubr.bf16.gmra.mxu1 %v1100_v42  ;;  %v967_v50 = vpop.f32.mrf.mxu0 }
 0x149   : > { %v1066_v53 = vmax.f32 %v976_v48, 0.0  ;;  %v968_v54 = vadd.f32 %v5549_v52, %v967_v50 }
 0x14a   : > { %v4880_v55 = vpop.f32.mrf.mxu0 }
 0x14b   : > { %v1064_v56 = vmax.f32 %v968_v54, 0.0  ;;  %v1102_v57 = vpack.c.bf16 %v1066_v53, %v1065_v49  ;;  %v989_v58 = vadd.f32 %v4880_v55, %v5549_v52 }
 0x14c   : > { %v980_v59 = vpop.f32.mrf.mxu0 }
 0x14d   : > { %v981_v60 = vadd.f32 %v5549_v52, %v980_v59  ;;  %v1101_v61 = vpack.c.bf16 %v1064_v56, %v1063_v51  ;;  %v1069_v0 = vmax.f32 %v989_v58, 0.0 }
 0x14e   : > { %v4881_v62 = vpop.f32.mrf.mxu0 }
 0x14f   : > { %v992_v63 = vadd.f32 %v4881_v62, %v5549_v52  ;;  %4954 = vmatprep.mubr.bf16.mxu1 %v1101_v61  ;;  %v1067_v2 = vmax.f32 %v981_v60, 0.0 }
 0x150   : > { %4955 = vmatmul.mubr.bf16.gmra.mxu1 %v1102_v57  ;;  %v983_v1 = vpop.f32.mrf.mxu0  ;;  %v5241_v57 = vld [vmem:[%s6844_s7 + $0x98] ss:$12 sps:$4 sm:$0xff]  }
 0x151   : > { %v1070_v3 = vmax.f32 %v992_v63, 0.0  ;;  %v984_v4 = vadd.f32 %v5549_v52, %v983_v1  ;;  %v5242_v1 = vld [vmem:[%s6844_s7 + $0x80] ss:$12 sps:$4 sm:$0xff]  }
 0x152   : > { %v4884_v5 = vpop.f32.mrf.mxu0 }
 0x153   : > { %v1068_v6 = vmax.f32 %v984_v4, 0.0  ;;  %v1104_v7 = vpack.c.bf16 %v1070_v3, %v1069_v0  ;;  %v1005_v8 = vadd.f32 %v4884_v5, %v5549_v52 }
 0x154   : > { %v996_v9 = vpop.f32.mrf.mxu0 }
 0x155   : > { %v997_v10 = vadd.f32 %v5549_v52, %v996_v9  ;;  %v1103_v11 = vpack.c.bf16 %v1068_v6, %v1067_v2  ;;  %v1073_v14 = vmax.f32 %v1005_v8, 0.0 }
 0x156   : > { %v4885_v12 = vpop.f32.mrf.mxu0 }
 0x157   : > { %v1008_v13 = vadd.f32 %v4885_v12, %v5549_v52  ;;  %4958 = vmatprep.mubr.bf16.mxu1 %v1103_v11  ;;  %v1071_v16 = vmax.f32 %v997_v10, 0.0  ;;  %v5243_v11 = vld [vmem:[%s6844_s7 + $0x68] ss:$12 sps:$4 sm:$0xff]  }
 0x158   : > { %v999_v15 = vpop.f32.mrf.mxu0  ;;  %4959 = vmatmul.mubr.bf16.gmra.mxu1 %v1104_v7 }
 0x159   : > { %v1074_v17 = vmax.f32 %v1008_v13, 0.0  ;;  %v1000_v18 = vadd.f32 %v5549_v52, %v999_v15  ;;  %v5224_v52 = vld [vmem:[%s6844_s7 + $0x94] ss:$12 sps:$4 sm:$0xff]  }
 0x15a   : > { %2198 = vmatprep.subr.bf16.mxu1 %v5224_v52 }
 0x15b   : > { %v1072_v19 = vmax.f32 %v1000_v18, 0.0  ;;  %v1106_v20 = vpack.c.bf16 %v1074_v17, %v1073_v14  ;;  %2199 = vmatpush1.bf16.msra.mxu1 %v5222_v24 }
 0x15c   : > { %2200 = vmatprep.subr.bf16.mxu1 %v5227_v26 }
 0x15d   : > { %v1105_v21 = vpack.c.bf16 %v1072_v19, %v1071_v16  ;;  %v5247_v19 = vld [vmem:[%s6844_s7 + $0x50] ss:$12 sps:$4 sm:$0xff]  }
 0x15f   : > { %4962 = vmatprep.mubr.bf16.mxu1 %v1105_v21  ;;  %2201 = vmatpush1.bf16.msra.mxu1 %v5225_v25 }
 0x160   : > { %4963 = vmatmul.mubr.bf16.gmra.mxu1 %v1106_v20  ;;  %2202 = vmatprep.subr.bf16.mxu1 %v5230_v28 }
 0x163   : > { %2203 = vmatpush1.bf16.msra.mxu1 %v5228_v27 }
 0x164   : > { %2204 = vmatprep.subr.bf16.mxu1 %v5233_v30 }
 0x167   : > { %2205 = vmatpush1.bf16.msra.mxu1 %v5231_v29 }
 0x168   : > { %2206 = vmatprep.subr.bf16.mxu1 %v5236_v32 }
 0x16b   : > { %2207 = vmatpush1.bf16.msra.mxu1 %v5234_v31 }
 0x16c   : > { %2208 = vmatprep.subr.bf16.mxu1 %v5239_v34 }
 0x16f   : > { %2209 = vmatpush1.bf16.msra.mxu1 %v5237_v33 }
 0x170   : > { %2210 = vmatprep.subr.bf16.mxu1 %v5246_v38 }
 0x173   : > { %2211 = vmatpush1.bf16.msra.mxu1 %v5244_v37 }
 0x1a8   : > { %v4904_v36 = vpop.f32.mrf.mxu1 }
 0x1a9   : > { %v1221_v44 = vadd.f32 %v4904_v36, %v5669_v40 }
 0x1aa   : > { %v1212_v39 = vpop.f32.mrf.mxu1 }
 0x1ab   : > { %v1213_v42 = vadd.f32 %v5669_v40, %v1212_v39  ;;  %v1469_v51 = vmax.f32 %v1221_v44, 0.0 }
 0x1ac   : > { %v4905_v41 = vpop.f32.mrf.mxu1 }
 0x1ad   : > { %v1224_v43 = vadd.f32 %v4905_v41, %v5669_v40  ;;  %v1467_v49 = vmax.f32 %v1213_v42, 0.0 }
 0x1ae   : > { %v1215_v45 = vpop.f32.mrf.mxu1 }
 0x1af   : > { %v1216_v46 = vadd.f32 %v5669_v40, %v1215_v45  ;;  %v1470_v47 = vmax.f32 %v1224_v43, 0.0 }
 0x1b0   : > { %v4908_v48 = vpop.f32.mrf.mxu1 }
 0x1b1   : > { %v1468_v50 = vmax.f32 %v1216_v46, 0.0  ;;  %v1532_v55 = vpack.c.bf16 %v1470_v47, %v1469_v51  ;;  %v1237_v60 = vadd.f32 %v4908_v48, %v5669_v40 }
 0x1b2   : > { %v1228_v53 = vpop.f32.mrf.mxu1 }
 0x1b3   : > { %v1531_v54 = vpack.c.bf16 %v1468_v50, %v1467_v49  ;;  %v1229_v58 = vadd.f32 %v5669_v40, %v1228_v53  ;;  %v1473_v4 = vmax.f32 %v1237_v60, 0.0 }
 0x1b4   : > { %v4909_v56 = vpop.f32.mrf.mxu1 }
 0x1b5   : > { %v1240_v59 = vadd.f32 %v4909_v56, %v5669_v40  ;;  %4982 = vmatprep.mubr.bf16.mxu0 %v1531_v54  ;;  %v1471_v2 = vmax.f32 %v1229_v58, 0.0 }
 0x1b6   : > { %v1231_v61 = vpop.f32.mrf.mxu1  ;;  %4983 = vmatmul.mubr.bf16.vlgmr.msra.gmra.mxu0 %v1532_v55 }
 0x1b7   : > { %v1232_v62 = vadd.f32 %v5669_v40, %v1231_v61  ;;  %5047 = vmatpush3.bf16.msra.mxu0 %v5240_v35  ;;  %v1474_v63 = vmax.f32 %v1240_v59, 0.0 }
 0x1b8   : > { %v4912_v0 = vpop.f32.mrf.mxu1  ;;  %5048 = vmatprep.subr.bf16.mxu0 %v5241_v57 }
 0x1b9   : > { %v1472_v3 = vmax.f32 %v1232_v62, 0.0  ;;  %v1253_v5 = vadd.f32 %v4912_v0, %v5669_v40  ;;  %v1534_v9 = vpack.c.bf16 %v1474_v63, %v1473_v4 }
 0x1ba   : > { %v1244_v6 = vpop.f32.mrf.mxu1 }
 0x1bb   : > { %v1245_v7 = vadd.f32 %v5669_v40, %v1244_v6  ;;  %v1533_v8 = vpack.c.bf16 %v1472_v3, %v1471_v2  ;;  %5049 = vmatpush3.bf16.msra.mxu0 %v5241_v57  ;;  %v1477_v13 = vmax.f32 %v1253_v5, 0.0 }
 0x1bc   : > { %v4913_v10 = vpop.f32.mrf.mxu1  ;;  %5050 = vmatprep.subr.bf16.mxu0 %v5242_v1 }
 0x1bd   : > { %v1256_v12 = vadd.f32 %v4913_v10, %v5669_v40  ;;  %4986 = vmatprep.mubr.bf16.mxu0 %v1533_v8  ;;  %v1475_v15 = vmax.f32 %v1245_v7, 0.0 }
 0x1be   : > { %v1247_v14 = vpop.f32.mrf.mxu1  ;;  %4987 = vmatmul.mubr.bf16.gmra.mxu0 %v1534_v9 }
 0x1bf   : > { %v1478_v16 = vmax.f32 %v1256_v12, 0.0  ;;  %v1248_v17 = vadd.f32 %v5669_v40, %v1247_v14  ;;  %5051 = vmatpush3.bf16.msra.mxu0 %v5242_v1 }
 0x1c0   : > { %v4916_v18 = vpop.f32.mrf.mxu1  ;;  %5052 = vmatprep.subr.bf16.mxu0 %v5243_v11 }
 0x1c1   : > { %v1476_v20 = vmax.f32 %v1248_v17, 0.0  ;;  %v1536_v21 = vpack.c.bf16 %v1478_v16, %v1477_v13  ;;  %v1269_v22 = vadd.f32 %v4916_v18, %v5669_v40 }
 0x1c2   : > { %v1260_v23 = vpop.f32.mrf.mxu1 }
 0x1c3   : > { %v1261_v24 = vadd.f32 %v5669_v40, %v1260_v23  ;;  %v1535_v52 = vpack.c.bf16 %v1476_v20, %v1475_v15  ;;  %5053 = vmatpush3.bf16.msra.mxu0 %v5243_v11  ;;  %v1481_v27 = vmax.f32 %v1269_v22, 0.0 }
 0x1c4   : > { %v4917_v25 = vpop.f32.mrf.mxu1  ;;  %5054 = vmatprep.subr.bf16.mxu0 %v5247_v19 }
 0x1c5   : > { %v1272_v26 = vadd.f32 %v4917_v25, %v5669_v40  ;;  %4990 = vmatprep.mubr.bf16.mxu0 %v1535_v52  ;;  %v1479_v29 = vmax.f32 %v1261_v24, 0.0 }
 0x1c6   : > { %v1263_v28 = vpop.f32.mrf.mxu1  ;;  %4991 = vmatmul.mubr.bf16.gmra.mxu0 %v1536_v21 }
 0x1c7   : > { %v1482_v30 = vmax.f32 %v1272_v26, 0.0  ;;  %v1264_v31 = vadd.f32 %v5669_v40, %v1263_v28  ;;  %5055 = vmatpush3.bf16.msra.mxu0 %v5247_v19 }
 0x1c8   : > { %v4920_v32 = vpop.f32.mrf.mxu1 }
 0x1c9   : > { %v1480_v33 = vmax.f32 %v1264_v31, 0.0  ;;  %v1538_v34 = vpack.c.bf16 %v1482_v30, %v1481_v27  ;;  %v1285_v35 = vadd.f32 %v4920_v32, %v5669_v40 }
 0x1ca   : > { %v1276_v36 = vpop.f32.mrf.mxu1 }
 0x1cb   : > { %v1537_v37 = vpack.c.bf16 %v1480_v33, %v1479_v29  ;;  %v1277_v38 = vadd.f32 %v5669_v40, %v1276_v36  ;;  %v1485_v42 = vmax.f32 %v1285_v35, 0.0 }
 0x1cc   : > { %v4921_v39 = vpop.f32.mrf.mxu1 }
 0x1cd   : > { %4994 = vmatprep.mubr.bf16.mxu0 %v1537_v37  ;;  %v1288_v41 = vadd.f32 %v4921_v39, %v5669_v40  ;;  %v1483_v44 = vmax.f32 %v1277_v38, 0.0 }
 0x1ce   : > { %4995 = vmatmul.mubr.bf16.gmra.mxu0 %v1538_v34  ;;  %v1279_v43 = vpop.f32.mrf.mxu1 }
 0x1cf   : > { %v1486_v45 = vmax.f32 %v1288_v41, 0.0  ;;  %v1280_v46 = vadd.f32 %v5669_v40, %v1279_v43 }
 0x1d0   : > { %v4924_v47 = vpop.f32.mrf.mxu1 }
 0x1d1   : > { %v1484_v48 = vmax.f32 %v1280_v46, 0.0  ;;  %v1540_v49 = vpack.c.bf16 %v1486_v45, %v1485_v42  ;;  %v1301_v50 = vadd.f32 %v4924_v47, %v5669_v40 }
 0x1d2   : > { %v1292_v51 = vpop.f32.mrf.mxu1 }
 0x1d3   : > { %v1539_v53 = vpack.c.bf16 %v1484_v48, %v1483_v44  ;;  %v1293_v54 = vadd.f32 %v5669_v40, %v1292_v51  ;;  %v1489_v57 = vmax.f32 %v1301_v50, 0.0  ;;  %v5248_v51 = vld [vmem:[%s6844_s7 + $0x38] ss:$12 sps:$4 sm:$0xff]  }
 0x1d4   : > { %v4925_v55 = vpop.f32.mrf.mxu1  ;;  %5056 = vmatprep.subr.bf16.mxu0 %v5248_v51 }
 0x1d5   : > { %4998 = vmatprep.mubr.bf16.mxu0 %v1539_v53  ;;  %v1304_v56 = vadd.f32 %v4925_v55, %v5669_v40  ;;  %v1487_v59 = vmax.f32 %v1293_v54, 0.0  ;;  %5057 = vmatpush3.bf16.msra.mxu0 %v5248_v51 }
 0x1d6   : > { %4999 = vmatmul.mubr.bf16.gmra.mxu0 %v1540_v49  ;;  %v1295_v58 = vpop.f32.mrf.mxu1 }
 0x1d7   : > { %v1490_v60 = vmax.f32 %v1304_v56, 0.0  ;;  %v1296_v61 = vadd.f32 %v5669_v40, %v1295_v58 }
 0x1d8   : > { %v4928_v62 = vpop.f32.mrf.mxu1 }
 0x1d9   : > { %v1488_v63 = vmax.f32 %v1296_v61, 0.0  ;;  %v1542_v0 = vpack.c.bf16 %v1490_v60, %v1489_v57  ;;  %v1317_v1 = vadd.f32 %v4928_v62, %v5669_v40  ;;  %v5249_v61 = vld [vmem:[%s6844_s7 + $0x20] ss:$12 sps:$4 sm:$0xff]  }
 0x1da   : > { %v1308_v2 = vpop.f32.mrf.mxu1  ;;  %5058 = vmatprep.subr.bf16.mxu0 %v5249_v61 }
 0x1db   : > { %v1541_v3 = vpack.c.bf16 %v1488_v63, %v1487_v59  ;;  %v1309_v4 = vadd.f32 %v5669_v40, %v1308_v2  ;;  %v1493_v7 = vmax.f32 %v1317_v1, 0.0  ;;  %5059 = vmatpush3.bf16.msra.mxu0 %v5249_v61 }
 0x1dc   : > { %v4929_v5 = vpop.f32.mrf.mxu1 }
 0x1dd   : > { %5002 = vmatprep.mubr.bf16.mxu0 %v1541_v3  ;;  %v1320_v6 = vadd.f32 %v4929_v5, %v5669_v40  ;;  %v1491_v9 = vmax.f32 %v1309_v4, 0.0  ;;  %v5250_v4 = vld [vmem:[%s6844_s7 + $0x8] ss:$12 sps:$4 sm:$0xff]  }
 0x1de   : > { %5003 = vmatmul.mubr.bf16.gmra.mxu0 %v1542_v0  ;;  %v1311_v8 = vpop.f32.mrf.mxu1  ;;  %5060 = vmatprep.subr.bf16.mxu0 %v5250_v4 }
 0x1df   : > { %v1494_v10 = vmax.f32 %v1320_v6, 0.0  ;;  %v1312_v11 = vadd.f32 %v5669_v40, %v1311_v8  ;;  %5061 = vmatpush3.bf16.msra.mxu0 %v5250_v4 }
 0x1e0   : > { %v4932_v12 = vpop.f32.mrf.mxu1 }
 0x1e1   : > { %v1492_v13 = vmax.f32 %v1312_v11, 0.0  ;;  %v1544_v14 = vpack.c.bf16 %v1494_v10, %v1493_v7  ;;  %v1333_v15 = vadd.f32 %v4932_v12, %v5669_v40 }
 0x1e2   : > { %v1324_v16 = vpop.f32.mrf.mxu1 }
 0x1e3   : > { %v1543_v17 = vpack.c.bf16 %v1492_v13, %v1491_v9  ;;  %v1325_v18 = vadd.f32 %v5669_v40, %v1324_v16  ;;  %v1497_v21 = vmax.f32 %v1333_v15, 0.0  ;;  %v5313_v13 = vmov 0  }
 0x1e4   : > { %v4933_v19 = vpop.f32.mrf.mxu1  ;;  %2228 = vmatprep.mubr.bf16.mxu1 %v5313_v13 }
 0x1e5   : > { %5006 = vmatprep.mubr.bf16.mxu0 %v1543_v17  ;;  %v1336_v20 = vadd.f32 %v4933_v19, %v5669_v40  ;;  %v1495_v23 = vmax.f32 %v1325_v18, 0.0 }
 0x1e6   : > { %5007 = vmatmul.mubr.bf16.gmra.mxu0 %v1544_v14  ;;  %v1327_v22 = vpop.f32.mrf.mxu1 }
 0x1e7   : > { %v1498_v24 = vmax.f32 %v1336_v20, 0.0  ;;  %v1328_v52 = vadd.f32 %v5669_v40, %v1327_v22 }
 0x1e8   : > { %v4936_v25 = vpop.f32.mrf.mxu1 }
 0x1e9   : > { %v1496_v26 = vmax.f32 %v1328_v52, 0.0  ;;  %v1546_v27 = vpack.c.bf16 %v1498_v24, %v1497_v21  ;;  %v1349_v28 = vadd.f32 %v4936_v25, %v5669_v40 }
 0x1ea   : > { %v1340_v29 = vpop.f32.mrf.mxu1 }
 0x1eb   : > { %v1545_v30 = vpack.c.bf16 %v1496_v26, %v1495_v23  ;;  %v1341_v31 = vadd.f32 %v5669_v40, %v1340_v29  ;;  %v1501_v34 = vmax.f32 %v1349_v28, 0.0 }
 0x1ec   : > { %v4937_v32 = vpop.f32.mrf.mxu1 }
 0x1ed   : > { %5010 = vmatprep.mubr.bf16.mxu0 %v1545_v30  ;;  %v1352_v33 = vadd.f32 %v4937_v32, %v5669_v40  ;;  %v1499_v36 = vmax.f32 %v1341_v31, 0.0 }
 0x1ee   : > { %5011 = vmatmul.mubr.bf16.gmra.mxu0 %v1546_v27  ;;  %v1343_v35 = vpop.f32.mrf.mxu1 }
 0x1ef   : > { %v1502_v37 = vmax.f32 %v1352_v33, 0.0  ;;  %v1344_v38 = vadd.f32 %v5669_v40, %v1343_v35 }
 0x1f0   : > { %v4940_v39 = vpop.f32.mrf.mxu1 }
 0x1f1   : > { %v1500_v41 = vmax.f32 %v1344_v38, 0.0  ;;  %v1548_v42 = vpack.c.bf16 %v1502_v37, %v1501_v34  ;;  %v1365_v43 = vadd.f32 %v4940_v39, %v5669_v40 }
 0x1f2   : > { %v1356_v44 = vpop.f32.mrf.mxu1 }
 0x1f3   : > { %v1547_v45 = vpack.c.bf16 %v1500_v41, %v1499_v36  ;;  %v1357_v46 = vadd.f32 %v5669_v40, %v1356_v44  ;;  %v1505_v49 = vmax.f32 %v1365_v43, 0.0 }
 0x1f4   : > { %v4941_v47 = vpop.f32.mrf.mxu1 }
 0x1f5   : > { %5014 = vmatprep.mubr.bf16.mxu0 %v1547_v45  ;;  %v1368_v48 = vadd.f32 %v4941_v47, %v5669_v40  ;;  %v1503_v53 = vmax.f32 %v1357_v46, 0.0 }
 0x1f6   : > { %5015 = vmatmul.mubr.bf16.gmra.mxu0 %v1548_v42  ;;  %v1359_v50 = vpop.f32.mrf.mxu1 }
 0x1f7   : > { %v1506_v54 = vmax.f32 %v1368_v48, 0.0  ;;  %v1360_v55 = vadd.f32 %v5669_v40, %v1359_v50 }
 0x1f8   : > { %v4944_v56 = vpop.f32.mrf.mxu1 }
 0x1f9   : > { %v1504_v57 = vmax.f32 %v1360_v55, 0.0  ;;  %v1550_v58 = vpack.c.bf16 %v1506_v54, %v1505_v49  ;;  %v1381_v59 = vadd.f32 %v4944_v56, %v5669_v40 }
 0x1fa   : > { %v1372_v60 = vpop.f32.mrf.mxu1 }
 0x1fb   : > { %v1549_v62 = vpack.c.bf16 %v1504_v57, %v1503_v53  ;;  %v1373_v63 = vadd.f32 %v5669_v40, %v1372_v60  ;;  %v1509_v2 = vmax.f32 %v1381_v59, 0.0 }
 0x1fc   : > { %v4945_v0 = vpop.f32.mrf.mxu1 }
 0x1fd   : > { %5018 = vmatprep.mubr.bf16.mxu0 %v1549_v62  ;;  %v1384_v1 = vadd.f32 %v4945_v0, %v5669_v40  ;;  %v1507_v5 = vmax.f32 %v1373_v63, 0.0 }
 0x1fe   : > { %5019 = vmatmul.mubr.bf16.gmra.mxu0 %v1550_v58  ;;  %v1375_v3 = vpop.f32.mrf.mxu1 }
 0x1ff   : > { %v1510_v6 = vmax.f32 %v1384_v1, 0.0  ;;  %v1376_v7 = vadd.f32 %v5669_v40, %v1375_v3 }
 0x200   : > { %v4948_v8 = vpop.f32.mrf.mxu1 }
 0x201   : > { %v1508_v9 = vmax.f32 %v1376_v7, 0.0  ;;  %v1552_v10 = vpack.c.bf16 %v1510_v6, %v1509_v2  ;;  %v1397_v11 = vadd.f32 %v4948_v8, %v5669_v40 }
 0x202   : > { %v1388_v12 = vpop.f32.mrf.mxu1 }
 0x203   : > { %v1551_v14 = vpack.c.bf16 %v1508_v9, %v1507_v5  ;;  %v1389_v15 = vadd.f32 %v5669_v40, %v1388_v12  ;;  %v1513_v18 = vmax.f32 %v1397_v11, 0.0 }
 0x204   : > { %v4949_v16 = vpop.f32.mrf.mxu1 }
 0x205   : > { %5022 = vmatprep.mubr.bf16.mxu0 %v1551_v14  ;;  %v1400_v17 = vadd.f32 %v4949_v16, %v5669_v40  ;;  %v1511_v20 = vmax.f32 %v1389_v15, 0.0 }
 0x206   : > { %5023 = vmatmul.mubr.bf16.gmra.mxu0 %v1552_v10  ;;  %v1391_v19 = vpop.f32.mrf.mxu1 }
 0x207   : > { %v1514_v21 = vmax.f32 %v1400_v17, 0.0  ;;  %v1392_v22 = vadd.f32 %v5669_v40, %v1391_v19 }
 0x208   : > { %v4952_v23 = vpop.f32.mrf.mxu1 }
 0x209   : > { %v1512_v24 = vmax.f32 %v1392_v22, 0.0  ;;  %v1554_v52 = vpack.c.bf16 %v1514_v21, %v1513_v18  ;;  %v1413_v25 = vadd.f32 %v4952_v23, %v5669_v40  ;;  %v5760_v22 = vld [vmem:[%s6843_s6] ss:$0 sm:$0xff] }
 0x20a   : > { %v1404_v26 = vpop.f32.mrf.mxu1 }
 0x20b   : > { %v1553_v27 = vpack.c.bf16 %v1512_v24, %v1511_v20  ;;  %v1405_v28 = vadd.f32 %v5669_v40, %v1404_v26  ;;  %v1517_v31 = vmax.f32 %v1413_v25, 0.0 }
 0x20c   : > { %v4953_v29 = vpop.f32.mrf.mxu1 }
 0x20d   : > { %5026 = vmatprep.mubr.bf16.mxu0 %v1553_v27  ;;  %v1416_v30 = vadd.f32 %v4953_v29, %v5669_v40  ;;  %v1515_v33 = vmax.f32 %v1405_v28, 0.0 }
 0x20e   : > { %5027 = vmatmul.mubr.bf16.gmra.mxu0 %v1554_v52  ;;  %v1407_v32 = vpop.f32.mrf.mxu1 }
 0x20f   : > { %v1518_v34 = vmax.f32 %v1416_v30, 0.0  ;;  %v1408_v35 = vadd.f32 %v5669_v40, %v1407_v32 }
 0x210   : > { %v4956_v36 = vpop.f32.mrf.mxu1 }
 0x211   : > { %v1516_v37 = vmax.f32 %v1408_v35, 0.0  ;;  %v1556_v38 = vpack.c.bf16 %v1518_v34, %v1517_v31  ;;  %v1429_v39 = vadd.f32 %v4956_v36, %v5669_v40 }
 0x212   : > { %v1420_v41 = vpop.f32.mrf.mxu1 }
 0x213   : > { %v1555_v42 = vpack.c.bf16 %v1516_v37, %v1515_v33  ;;  %v1421_v43 = vadd.f32 %v5669_v40, %v1420_v41  ;;  %v1521_v46 = vmax.f32 %v1429_v39, 0.0 }
 0x214   : > { %v4957_v44 = vpop.f32.mrf.mxu1 }
 0x215   : > { %5030 = vmatprep.mubr.bf16.mxu0 %v1555_v42  ;;  %v1432_v45 = vadd.f32 %v4957_v44, %v5669_v40  ;;  %v1519_v48 = vmax.f32 %v1421_v43, 0.0 }
 0x216   : > { %5031 = vmatmul.mubr.bf16.gmra.mxu0 %v1556_v38  ;;  %v1423_v47 = vpop.f32.mrf.mxu1 }
 0x217   : > { %v1522_v49 = vmax.f32 %v1432_v45, 0.0  ;;  %v1424_v50 = vadd.f32 %v5669_v40, %v1423_v47 }
 0x218   : > { %v4960_v51 = vpop.f32.mrf.mxu1 }
 0x219   : > { %v1520_v53 = vmax.f32 %v1424_v50, 0.0  ;;  %v1558_v54 = vpack.c.bf16 %v1522_v49, %v1521_v46  ;;  %v1445_v55 = vadd.f32 %v4960_v51, %v5669_v40 }
 0x21a   : > { %v1436_v56 = vpop.f32.mrf.mxu1 }
 0x21b   : > { %v1437_v57 = vadd.f32 %v5669_v40, %v1436_v56  ;;  %v1557_v58 = vpack.c.bf16 %v1520_v53, %v1519_v48  ;;  %v1525_v61 = vmax.f32 %v1445_v55, 0.0 }
 0x21c   : > { %v4961_v59 = vpop.f32.mrf.mxu1 }
 0x21d   : > { %v1448_v60 = vadd.f32 %v4961_v59, %v5669_v40  ;;  %5034 = vmatprep.mubr.bf16.mxu0 %v1557_v58  ;;  %v1523_v63 = vmax.f32 %v1437_v57, 0.0 }
 0x21e   : > { %5035 = vmatmul.mubr.bf16.gmra.mxu0 %v1558_v54  ;;  %v1439_v62 = vpop.f32.mrf.mxu1 }
 0x21f   : > { %v1526_v0 = vmax.f32 %v1448_v60, 0.0  ;;  %v1440_v1 = vadd.f32 %v5669_v40, %v1439_v62 }
 0x220   : > { %v4964_v2 = vpop.f32.mrf.mxu1 }
 0x221   : > { %v1524_v3 = vmax.f32 %v1440_v1, 0.0  ;;  %v1560_v4 = vpack.c.bf16 %v1526_v0, %v1525_v61  ;;  %v1461_v5 = vadd.f32 %v4964_v2, %v5669_v40 }
 0x222   : > { %v1452_v6 = vpop.f32.mrf.mxu1 }
 0x223   : > { %v1453_v7 = vadd.f32 %v5669_v40, %v1452_v6  ;;  %v1559_v8 = vpack.c.bf16 %v1524_v3, %v1523_v63  ;;  %v1529_v11 = vmax.f32 %v1461_v5, 0.0 }
 0x224   : > { %v4965_v9 = vpop.f32.mrf.mxu1 }
 0x225   : > { %v1464_v10 = vadd.f32 %v4965_v9, %v5669_v40  ;;  %5038 = vmatprep.mubr.bf16.mxu0 %v1559_v8  ;;  %v1527_v14 = vmax.f32 %v1453_v7, 0.0 }
 0x226   : > { %v1455_v12 = vpop.f32.mrf.mxu1  ;;  %5039 = vmatmul.mubr.bf16.gmra.mxu0 %v1560_v4 }
 0x227   : > { %v1530_v15 = vmax.f32 %v1464_v10, 0.0  ;;  %v1456_v16 = vadd.f32 %v5669_v40, %v1455_v12 }
 0x229   : > { %v1528_v17 = vmax.f32 %v1456_v16, 0.0  ;;  %v1562_v18 = vpack.c.bf16 %v1530_v15, %v1529_v11 }
 0x22b   : > { %v1561_v19 = vpack.c.bf16 %v1528_v17, %v1527_v14 }
 0x22d   : > { %5042 = vmatprep.mubr.bf16.mxu0 %v1561_v19 }
 0x22e   : > { %5043 = vmatmul.mubr.bf16.gmra.mxu0 %v1562_v18 }
 0x276   : > { %v4984_v20 = vpop.f32.mrf.mxu0 }
 0x277   : > { %v1677_v25 = vadd.f32 %v4984_v20, %v5760_v22 }
 0x278   : > { %v1668_v21 = vpop.f32.mrf.mxu0 }
 0x279   : > { %v1669_v24 = vadd.f32 %v5760_v22, %v1668_v21  ;;  %v1925_v31 = vmax.f32 %v1677_v25, 0.0 }
 0x27a   : > { %v4985_v23 = vpop.f32.mrf.mxu0 }
 0x27b   : > { %v1680_v52 = vadd.f32 %v4985_v23, %v5760_v22  ;;  %v1923_v29 = vmax.f32 %v1669_v24, 0.0 }
 0x27c   : > { %v1671_v40 = vpop.f32.mrf.mxu0 }
 0x27d   : > { %v1672_v26 = vadd.f32 %v5760_v22, %v1671_v40  ;;  %v1926_v27 = vmax.f32 %v1680_v52, 0.0 }
 0x27e   : > { %v4988_v28 = vpop.f32.mrf.mxu0 }
 0x27f   : > { %v1924_v30 = vmax.f32 %v1672_v26, 0.0  ;;  %v1988_v34 = vpack.c.bf16 %v1926_v27, %v1925_v31  ;;  %v1693_v38 = vadd.f32 %v4988_v28, %v5760_v22 }
 0x280   : > { %v1684_v32 = vpop.f32.mrf.mxu0 }
 0x281   : > { %v1987_v33 = vpack.c.bf16 %v1924_v30, %v1923_v29  ;;  %v1685_v36 = vadd.f32 %v5760_v22, %v1684_v32  ;;  %v1929_v46 = vmax.f32 %v1693_v38, 0.0 }
 0x282   : > { %v4989_v35 = vpop.f32.mrf.mxu0 }
 0x283   : > { %v1696_v37 = vadd.f32 %v4989_v35, %v5760_v22  ;;  %2229 = vmatmul.mubr.bf16.vlgmr.msra.gmra.mxu1 %v1987_v33  ;;  %5062 = vmatprep.mubr.bf16.mxu0 %v1987_v33  ;;  %v1927_v44 = vmax.f32 %v1685_v36, 0.0 }
 0x284   : > { %v1687_v39 = vpop.f32.mrf.mxu0  ;;  %5063 = vmatmul.mubr.bf16.vlgmr.msra.gmra.mxu0 %v1988_v34  ;;  %2238 = vmatprep.mubr.bf16.mxu1 %v5313_v13 }
 0x285   : > { %v1688_v41 = vadd.f32 %v5760_v22, %v1687_v39  ;;  %v1930_v42 = vmax.f32 %v1696_v37, 0.0 }
 0x286   : > { %v4992_v43 = vpop.f32.mrf.mxu0 }
 0x287   : > { %v1928_v45 = vmax.f32 %v1688_v41, 0.0  ;;  %v1990_v49 = vpack.c.bf16 %v1930_v42, %v1929_v46  ;;  %v1709_v54 = vadd.f32 %v4992_v43, %v5760_v22 }
 0x288   : > { %v1700_v47 = vpop.f32.mrf.mxu0 }
 0x289   : > { %v1989_v48 = vpack.c.bf16 %v1928_v45, %v1927_v44  ;;  %v1701_v51 = vadd.f32 %v5760_v22, %v1700_v47  ;;  %v1933_v61 = vmax.f32 %v1709_v54, 0.0 }
 0x28a   : > { %v4993_v50 = vpop.f32.mrf.mxu0 }
 0x28b   : > { %v1712_v53 = vadd.f32 %v4993_v50, %v5760_v22  ;;  %2239 = vmatmul.mubr.bf16.gmra.mxu1 %v1988_v34  ;;  %5066 = vmatprep.mubr.bf16.mxu0 %v1989_v48  ;;  %v1931_v59 = vmax.f32 %v1701_v51, 0.0 }
 0x28c   : > { %v1703_v55 = vpop.f32.mrf.mxu0  ;;  %5067 = vmatmul.mubr.bf16.gmra.mxu0 %v1990_v49  ;;  %2248 = vmatprep.mubr.bf16.mxu1 %v5313_v13 }
 0x28d   : > { %v1704_v56 = vadd.f32 %v5760_v22, %v1703_v55  ;;  %v1934_v57 = vmax.f32 %v1712_v53, 0.0 }
 0x28e   : > { %v4996_v58 = vpop.f32.mrf.mxu0 }
 0x28f   : > { %v1932_v60 = vmax.f32 %v1704_v56, 0.0  ;;  %v1725_v62 = vadd.f32 %v4996_v58, %v5760_v22  ;;  %v1992_v2 = vpack.c.bf16 %v1934_v57, %v1933_v61 }
 0x290   : > { %v1716_v63 = vpop.f32.mrf.mxu0 }
 0x291   : > { %v1717_v0 = vadd.f32 %v5760_v22, %v1716_v63  ;;  %v1991_v1 = vpack.c.bf16 %v1932_v60, %v1931_v59  ;;  %v1937_v5 = vmax.f32 %v1725_v62, 0.0 }
 0x292   : > { %v4997_v3 = vpop.f32.mrf.mxu0 }
 0x293   : > { %v1728_v4 = vadd.f32 %v4997_v3, %v5760_v22  ;;  %2249 = vmatmul.mubr.bf16.gmra.mxu1 %v1989_v48  ;;  %5070 = vmatprep.mubr.bf16.mxu0 %v1991_v1  ;;  %v1935_v7 = vmax.f32 %v1717_v0, 0.0 }
 0x294   : > { %v1719_v6 = vpop.f32.mrf.mxu0  ;;  %5071 = vmatmul.mubr.bf16.gmra.mxu0 %v1992_v2  ;;  %2258 = vmatprep.mubr.bf16.mxu1 %v5313_v13 }
 0x295   : > { %v1938_v8 = vmax.f32 %v1728_v4, 0.0  ;;  %v1720_v9 = vadd.f32 %v5760_v22, %v1719_v6 }
 0x296   : > { %v5000_v10 = vpop.f32.mrf.mxu0 }
 0x297   : > { %v1936_v11 = vmax.f32 %v1720_v9, 0.0  ;;  %v5781_v12 = vpack.c.bf16 %v1938_v8, %v1937_v5  ;;  %v1741_v14 = vadd.f32 %v5000_v10, %v5760_v22 }
 0x298   : > { %v1732_v15 = vpop.f32.mrf.mxu0 }
 0x299   : > { %v1993_v16 = vpack.c.bf16 %v1936_v11, %v1935_v7  ;;  %v1733_v17 = vadd.f32 %v5760_v22, %v1732_v15  ;;  %v1941_v20 = vmax.f32 %v1741_v14, 0.0 }
 0x29a   : > { %v5001_v18 = vpop.f32.mrf.mxu0 }
 0x29b   : > { %2259 = vmatmul.mubr.bf16.gmra.mxu1 %v1990_v49  ;;  %5074 = vmatprep.mubr.bf16.mxu0 %v1993_v16  ;;  %v1744_v19 = vadd.f32 %v5001_v18, %v5760_v22  ;;  %v1939_v23 = vmax.f32 %v1733_v17, 0.0 }
 0x29c   : > { %5075 = vmatmul.mubr.bf16.gmra.mxu0 %v5781_v12  ;;  %v1735_v21 = vpop.f32.mrf.mxu0  ;;  %2268 = vmatprep.mubr.bf16.mxu1 %v5313_v13 }
 0x29d   : > { %v1942_v24 = vmax.f32 %v1744_v19, 0.0  ;;  %v1736_v52 = vadd.f32 %v5760_v22, %v1735_v21 }
 0x29e   : > { %v5004_v25 = vpop.f32.mrf.mxu0 }
 0x29f   : > { %v1940_v40 = vmax.f32 %v1736_v52, 0.0  ;;  %v5789_v26 = vpack.c.bf16 %v1942_v24, %v1941_v20  ;;  %v1757_v27 = vadd.f32 %v5004_v25, %v5760_v22 }
 0x2a0   : > { %v1748_v28 = vpop.f32.mrf.mxu0 }
 0x2a1   : > { %v5792_v29 = vpack.c.bf16 %v1940_v40, %v1939_v23  ;;  %v1749_v30 = vadd.f32 %v5760_v22, %v1748_v28  ;;  %v1945_v33 = vmax.f32 %v1757_v27, 0.0 }
 0x2a2   : > { %v5005_v31 = vpop.f32.mrf.mxu0 }
 0x2a3   : > { %2269 = vmatmul.mubr.bf16.gmra.mxu1 %v1991_v1  ;;  %5078 = vmatprep.mubr.bf16.mxu0 %v5792_v29  ;;  %v1760_v32 = vadd.f32 %v5005_v31, %v5760_v22  ;;  %v1943_v35 = vmax.f32 %v1749_v30, 0.0 }
 0x2a4   : > { %5079 = vmatmul.mubr.bf16.gmra.mxu0 %v5789_v26  ;;  %2278 = vmatprep.mubr.bf16.mxu1 %v5313_v13  ;;  %v1751_v34 = vpop.f32.mrf.mxu0 }
 0x2a5   : > { %v1946_v36 = vmax.f32 %v1760_v32, 0.0  ;;  %v1752_v37 = vadd.f32 %v5760_v22, %v1751_v34 }
 0x2a6   : > { %v5008_v38 = vpop.f32.mrf.mxu0 }
 0x2a7   : > { %v1944_v39 = vmax.f32 %v1752_v37, 0.0  ;;  %v5800_v41 = vpack.c.bf16 %v1946_v36, %v1945_v33  ;;  %v1773_v42 = vadd.f32 %v5008_v38, %v5760_v22 }
 0x2a8   : > { %v1764_v43 = vpop.f32.mrf.mxu0 }
 0x2a9   : > { %v5803_v44 = vpack.c.bf16 %v1944_v39, %v1943_v35  ;;  %v1765_v45 = vadd.f32 %v5760_v22, %v1764_v43  ;;  %v1949_v48 = vmax.f32 %v1773_v42, 0.0 }
 0x2aa   : > { %v5009_v46 = vpop.f32.mrf.mxu0 }
 0x2ab   : > { %2279 = vmatmul.mubr.bf16.gmra.mxu1 %v1992_v2  ;;  %5082 = vmatprep.mubr.bf16.mxu0 %v5803_v44  ;;  %v1776_v47 = vadd.f32 %v5009_v46, %v5760_v22  ;;  %v1947_v50 = vmax.f32 %v1765_v45, 0.0 }
 0x2ac   : > { %2288 = vmatprep.mubr.bf16.mxu1 %v5313_v13  ;;  %5083 = vmatmul.mubr.bf16.gmra.mxu0 %v5800_v41  ;;  %v1767_v49 = vpop.f32.mrf.mxu0 }
 0x2ad   : > { %v1950_v51 = vmax.f32 %v1776_v47, 0.0  ;;  %v1768_v53 = vadd.f32 %v5760_v22, %v1767_v49 }
 0x2ae   : > { %v5012_v54 = vpop.f32.mrf.mxu0 }
 0x2af   : > { %v1948_v55 = vmax.f32 %v1768_v53, 0.0  ;;  %v5811_v56 = vpack.c.bf16 %v1950_v51, %v1949_v48  ;;  %v1789_v57 = vadd.f32 %v5012_v54, %v5760_v22 }
 0x2b0   : > { %v1780_v58 = vpop.f32.mrf.mxu0 }
 0x2b1   : > { %v5814_v59 = vpack.c.bf16 %v1948_v55, %v1947_v50  ;;  %v1781_v60 = vadd.f32 %v5760_v22, %v1780_v58  ;;  %v1953_v63 = vmax.f32 %v1789_v57, 0.0 }
 0x2b2   : > { %v5013_v61 = vpop.f32.mrf.mxu0 }
 0x2b3   : > { %2289 = vmatmul.mubr.bf16.gmra.mxu1 %v1993_v16  ;;  %5086 = vmatprep.mubr.bf16.mxu0 %v5814_v59  ;;  %v1792_v62 = vadd.f32 %v5013_v61, %v5760_v22  ;;  %v1951_v1 = vmax.f32 %v1781_v60, 0.0 }
 0x2b4   : > { %2298 = vmatprep.mubr.bf16.mxu1 %v5313_v13  ;;  %5087 = vmatmul.mubr.bf16.gmra.mxu0 %v5811_v56  ;;  %v1783_v0 = vpop.f32.mrf.mxu0 }
 0x2b5   : > { %v1954_v2 = vmax.f32 %v1792_v62, 0.0  ;;  %v1784_v3 = vadd.f32 %v5760_v22, %v1783_v0 }
 0x2b6   : > { %v5016_v4 = vpop.f32.mrf.mxu0 }
 0x2b7   : > { %v1952_v5 = vmax.f32 %v1784_v3, 0.0  ;;  %v5822_v6 = vpack.c.bf16 %v1954_v2, %v1953_v63  ;;  %v1805_v7 = vadd.f32 %v5016_v4, %v5760_v22 }
 0x2b8   : > { %v1796_v8 = vpop.f32.mrf.mxu0 }
 0x2b9   : > { %v5825_v9 = vpack.c.bf16 %v1952_v5, %v1951_v1  ;;  %v1797_v10 = vadd.f32 %v5760_v22, %v1796_v8  ;;  %v1957_v15 = vmax.f32 %v1805_v7, 0.0 }
 0x2ba   : > { %v5017_v11 = vpop.f32.mrf.mxu0 }
 0x2bb   : > { %2299 = vmatmul.mubr.bf16.gmra.mxu1 %v5781_v12  ;;  %5090 = vmatprep.mubr.bf16.mxu0 %v5825_v9  ;;  %v1808_v14 = vadd.f32 %v5017_v11, %v5760_v22  ;;  %v1955_v17 = vmax.f32 %v1797_v10, 0.0 }
 0x2bc   : > { %2308 = vmatprep.mubr.bf16.mxu1 %v5313_v13  ;;  %5091 = vmatmul.mubr.bf16.gmra.mxu0 %v5822_v6  ;;  %v1799_v16 = vpop.f32.mrf.mxu0 }
 0x2bd   : > { %v1958_v18 = vmax.f32 %v1808_v14, 0.0  ;;  %v1800_v19 = vadd.f32 %v5760_v22, %v1799_v16 }
 0x2be   : > { %v5020_v20 = vpop.f32.mrf.mxu0 }
 0x2bf   : > { %v1956_v21 = vmax.f32 %v1800_v19, 0.0  ;;  %v5834_v23 = vpack.c.bf16 %v1958_v18, %v1957_v15  ;;  %v1821_v12 = vadd.f32 %v5020_v20, %v5760_v22 }
 0x2c0   : > { %v1812_v24 = vpop.f32.mrf.mxu0 }
 0x2c1   : > { %v5837_v52 = vpack.c.bf16 %v1956_v21, %v1955_v17  ;;  %v1813_v25 = vadd.f32 %v5760_v22, %v1812_v24  ;;  %v1961_v28 = vmax.f32 %v1821_v12, 0.0 }
 0x2c2   : > { %v5021_v40 = vpop.f32.mrf.mxu0 }
 0x2c3   : > { %2309 = vmatmul.mubr.bf16.gmra.mxu1 %v5792_v29  ;;  %5094 = vmatprep.mubr.bf16.mxu0 %v5837_v52  ;;  %v1824_v27 = vadd.f32 %v5021_v40, %v5760_v22  ;;  %v1959_v31 = vmax.f32 %v1813_v25, 0.0 }
 0x2c4   : > { %2318 = vmatprep.mubr.bf16.mxu1 %v5313_v13  ;;  %5095 = vmatmul.mubr.bf16.gmra.mxu0 %v5834_v23  ;;  %v1815_v30 = vpop.f32.mrf.mxu0 }
 0x2c5   : > { %v1962_v32 = vmax.f32 %v1824_v27, 0.0  ;;  %v1816_v33 = vadd.f32 %v5760_v22, %v1815_v30 }
 0x2c6   : > { %v5024_v34 = vpop.f32.mrf.mxu0 }
 0x2c7   : > { %v1960_v35 = vmax.f32 %v1816_v33, 0.0  ;;  %v5846_v36 = vpack.c.bf16 %v1962_v32, %v1961_v28  ;;  %v1837_v29 = vadd.f32 %v5024_v34, %v5760_v22 }
 0x2c8   : > { %v1828_v37 = vpop.f32.mrf.mxu0 }
 0x2c9   : > { %v5849_v38 = vpack.c.bf16 %v1960_v35, %v1959_v31  ;;  %v1829_v39 = vadd.f32 %v5760_v22, %v1828_v37  ;;  %v1965_v45 = vmax.f32 %v1837_v29, 0.0 }
 0x2ca   : > { %v5025_v42 = vpop.f32.mrf.mxu0 }
 0x2cb   : > { %2319 = vmatmul.mubr.bf16.gmra.mxu1 %v5789_v26  ;;  %5098 = vmatprep.mubr.bf16.mxu0 %v5849_v38  ;;  %v1840_v43 = vadd.f32 %v5025_v42, %v5760_v22  ;;  %v1963_v47 = vmax.f32 %v1829_v39, 0.0 }
 0x2cc   : > { %2328 = vmatprep.mubr.bf16.mxu1 %v5313_v13  ;;  %5099 = vmatmul.mubr.bf16.gmra.mxu0 %v5846_v36  ;;  %v1831_v46 = vpop.f32.mrf.mxu0 }
 0x2cd   : > { %v1966_v48 = vmax.f32 %v1840_v43, 0.0  ;;  %v1832_v49 = vadd.f32 %v5760_v22, %v1831_v46 }
 0x2ce   : > { %v5028_v50 = vpop.f32.mrf.mxu0 }
 0x2cf   : > { %v1964_v51 = vmax.f32 %v1832_v49, 0.0  ;;  %v5858_v53 = vpack.c.bf16 %v1966_v48, %v1965_v45  ;;  %v1853_v26 = vadd.f32 %v5028_v50, %v5760_v22 }
 0x2d0   : > { %v1844_v54 = vpop.f32.mrf.mxu0 }
 0x2d1   : > { %v5861_v55 = vpack.c.bf16 %v1964_v51, %v1963_v47  ;;  %v1845_v57 = vadd.f32 %v5760_v22, %v1844_v54  ;;  %v1969_v61 = vmax.f32 %v1853_v26, 0.0 }
 0x2d2   : > { %v5029_v58 = vpop.f32.mrf.mxu0 }
 0x2d3   : > { %2329 = vmatmul.mubr.bf16.gmra.mxu1 %v5803_v44  ;;  %5102 = vmatprep.mubr.bf16.mxu0 %v5861_v55  ;;  %v1856_v60 = vadd.f32 %v5029_v58, %v5760_v22  ;;  %v1967_v63 = vmax.f32 %v1845_v57, 0.0 }
 0x2d4   : > { %2338 = vmatprep.mubr.bf16.mxu1 %v5313_v13  ;;  %5103 = vmatmul.mubr.bf16.gmra.mxu0 %v5858_v53  ;;  %v1847_v62 = vpop.f32.mrf.mxu0 }
 0x2d5   : > { %v1970_v0 = vmax.f32 %v1856_v60, 0.0  ;;  %v1848_v1 = vadd.f32 %v5760_v22, %v1847_v62 }
 0x2d6   : > { %v5032_v2 = vpop.f32.mrf.mxu0 }
 0x2d7   : > { %v1968_v3 = vmax.f32 %v1848_v1, 0.0  ;;  %v5870_v4 = vpack.c.bf16 %v1970_v0, %v1969_v61  ;;  %v1869_v44 = vadd.f32 %v5032_v2, %v5760_v22 }
 0x2d8   : > { %v1860_v5 = vpop.f32.mrf.mxu0 }
 0x2d9   : > { %v5873_v7 = vpack.c.bf16 %v1968_v3, %v1967_v63  ;;  %v1861_v8 = vadd.f32 %v5760_v22, %v1860_v5  ;;  %v1973_v14 = vmax.f32 %v1869_v44, 0.0 }
 0x2da   : > { %v5033_v10 = vpop.f32.mrf.mxu0 }
 0x2db   : > { %2339 = vmatmul.mubr.bf16.gmra.mxu1 %v5800_v41  ;;  %5106 = vmatprep.mubr.bf16.mxu0 %v5873_v7  ;;  %v1872_v11 = vadd.f32 %v5033_v10, %v5760_v22  ;;  %v1971_v16 = vmax.f32 %v1861_v8, 0.0  ;;  %v3239_v10 = vld [vmem:[%s6847_s10] sm:$0x7] }
 0x2dc   : > { %2348 = vmatprep.mubr.bf16.mxu1 %v5313_v13  ;;  %5107 = vmatmul.mubr.bf16.gmra.mxu0 %v5870_v4  ;;  %v1863_v15 = vpop.f32.mrf.mxu0 }
 0x2dd   : > { %v1974_v17 = vmax.f32 %v1872_v11, 0.0  ;;  %v1864_v18 = vadd.f32 %v5760_v22, %v1863_v15 }
 0x2de   : > { %v5036_v19 = vpop.f32.mrf.mxu0 }
 0x2df   : > { %v1972_v20 = vmax.f32 %v1864_v18, 0.0  ;;  %v5882_v21 = vpack.c.bf16 %v1974_v17, %v1973_v14  ;;  %v1885_v41 = vadd.f32 %v5036_v19, %v5760_v22 }
 0x2e0   : > { %v1876_v12 = vpop.f32.mrf.mxu0 }
 0x2e1   : > { %v5885_v24 = vpack.c.bf16 %v1972_v20, %v1971_v16  ;;  %v1877_v25 = vadd.f32 %v5760_v22, %v1876_v12  ;;  %v1977_v28 = vmax.f32 %v1885_v41, 0.0 }
 0x2e2   : > { %v5037_v40 = vpop.f32.mrf.mxu0 }
 0x2e3   : > { %2349 = vmatmul.mubr.bf16.gmra.mxu1 %v5814_v59  ;;  %5110 = vmatprep.mubr.bf16.mxu0 %v5885_v24  ;;  %v1888_v27 = vadd.f32 %v5037_v40, %v5760_v22  ;;  %v1975_v31 = vmax.f32 %v1877_v25, 0.0 }
 0x2e4   : > { %2358 = vmatprep.mubr.bf16.mxu1 %v5313_v13  ;;  %5111 = vmatmul.mubr.bf16.gmra.mxu0 %v5882_v21  ;;  %v1879_v30 = vpop.f32.mrf.mxu0 }
 0x2e5   : > { %v1978_v32 = vmax.f32 %v1888_v27, 0.0  ;;  %v1880_v33 = vadd.f32 %v5760_v22, %v1879_v30 }
 0x2e6   : > { %v5040_v34 = vpop.f32.mrf.mxu0 }
 0x2e7   : > { %v1976_v35 = vmax.f32 %v1880_v33, 0.0  ;;  %v5894_v29 = vpack.c.bf16 %v1978_v32, %v1977_v28  ;;  %v1901_v59 = vadd.f32 %v5040_v34, %v5760_v22 }
 0x2e8   : > { %v1892_v37 = vpop.f32.mrf.mxu0 }
 0x2e9   : > { %v5897_v39 = vpack.c.bf16 %v1976_v35, %v1975_v31  ;;  %v1893_v42 = vadd.f32 %v5760_v22, %v1892_v37  ;;  %v1981_v46 = vmax.f32 %v1901_v59, 0.0 }
 0x2ea   : > { %v5041_v43 = vpop.f32.mrf.mxu0 }
 0x2eb   : > { %2359 = vmatmul.mubr.bf16.gmra.mxu1 %v5811_v56  ;;  %v1904_v45 = vadd.f32 %v5041_v43, %v5760_v22  ;;  %5114 = vmatprep.mubr.bf16.mxu0 %v5897_v39  ;;  %v1979_v48 = vmax.f32 %v1893_v42, 0.0 }
 0x2ec   : > { %2368 = vmatprep.mubr.bf16.mxu1 %v5313_v13  ;;  %5115 = vmatmul.mubr.bf16.gmra.mxu0 %v5894_v29  ;;  %v1895_v47 = vpop.f32.mrf.mxu0 }
 0x2ed   : > { %v1982_v49 = vmax.f32 %v1904_v45, 0.0  ;;  %v1896_v50 = vadd.f32 %v5760_v22, %v1895_v47 }
 0x2ee   : > { %v5044_v51 = vpop.f32.mrf.mxu0 }
 0x2ef   : > { %v1980_v26 = vmax.f32 %v1896_v50, 0.0  ;;  %v5906_v54 = vpack.c.bf16 %v1982_v49, %v1981_v46  ;;  %v1917_v56 = vadd.f32 %v5044_v51, %v5760_v22 }
 0x2f0   : > { %v1908_v57 = vpop.f32.mrf.mxu0 }
 0x2f1   : > { %v5909_v58 = vpack.c.bf16 %v1980_v26, %v1979_v48  ;;  %v1909_v60 = vadd.f32 %v5760_v22, %v1908_v57  ;;  %v1985_v63 = vmax.f32 %v1917_v56, 0.0 }
 0x2f2   : > { %v5045_v61 = vpop.f32.mrf.mxu0 }
 0x2f3   : > { %2369 = vmatmul.mubr.bf16.gmra.mxu1 %v5825_v9  ;;  %v1920_v62 = vadd.f32 %v5045_v61, %v5760_v22  ;;  %5118 = vmatprep.mubr.bf16.mxu0 %v5909_v58  ;;  %v1983_v1 = vmax.f32 %v1909_v60, 0.0 }
 0x2f4   : > { %2378 = vmatprep.mubr.bf16.mxu1 %v5313_v13  ;;  %v1911_v0 = vpop.f32.mrf.mxu0  ;;  %5119 = vmatmul.mubr.bf16.gmra.mxu0 %v5906_v54 }
 0x2f5   : > { %v1986_v2 = vmax.f32 %v1920_v62, 0.0  ;;  %v1912_v3 = vadd.f32 %v5760_v22, %v1911_v0  ;;  %v2053_v22 = vlaneseq }
 0x2f7   : > { %v1984_v44 = vmax.f32 %v1912_v3, 0.0  ;;  %v5918_v5 = vpack.c.bf16 %v1986_v2, %v1985_v63 }
 0x2f9   : > { %v5920_v8 = vpack.c.bf16 %v1984_v44, %v1983_v1 }
 0x2fb   : > { %2379 = vmatmul.mubr.bf16.gmra.mxu1 %v5822_v6  ;;  %5122 = vmatprep.mubr.bf16.mxu0 %v5920_v8  ;;  %v2054_v6 = vshrl.u32 %v2053_v22, 7 }
 0x2fc   : > { %2388 = vmatprep.mubr.bf16.mxu1 %v5313_v13  ;;  %5123 = vmatmul.mubr.bf16.gmra.mxu0 %v5918_v5 }
 0x2fd   : > { %v2055_v9 = vsub.s32 0, %v2054_v6 }
 0x2ff   : > { %v5966_v20 = vrot.slane %v3239_v10, %v2055_v9 }
 0x303   : > { %2389 = vmatmul.mubr.bf16.gmra.mxu1 %v5837_v52  ;;  %v2063_v52 = vsub.s32 2, %v2054_v6 }
 0x304   : > { %2398 = vmatprep.mubr.bf16.mxu1 %v5313_v13 }
 0x305   : > { %v5971_v40 = vrot.slane %v3239_v10, %v2063_v52 }
 0x30b   : > { %2399 = vmatmul.mubr.bf16.gmra.mxu1 %v5834_v23  ;;  %v2051_v23 = vld [vmem:[%s6845_s8] sm:$0x7] }
 0x30c   : > { %2408 = vmatprep.mubr.bf16.mxu1 %v5313_v13 }
 0x313   : > { %2409 = vmatmul.mubr.bf16.gmra.mxu1 %v5849_v38  ;;  %v5945_v38 = vrot.slane %v2051_v23, %v2055_v9 }
 0x314   : > { %2418 = vmatprep.mubr.bf16.mxu1 %v5313_v13 }
 0x31b   : > { %2419 = vmatmul.mubr.bf16.gmra.mxu1 %v5846_v36  ;;  %v2059_v36 = vsub.s32 1, %v2054_v6 }
 0x31c   : > { %2428 = vmatprep.mubr.bf16.mxu1 %v5313_v13 }
 0x31d   : > { %v5979_v32 = vrot.slane %v3239_v10, %v2059_v36 }
 0x323   : > { %2429 = vmatmul.mubr.bf16.gmra.mxu1 %v5861_v55  ;;  %v5950_v55 = vrot.slane %v2051_v23, %v2063_v52 }
 0x324   : > { %2438 = vmatprep.mubr.bf16.mxu1 %v5313_v13 }
 0x32b   : > { %2439 = vmatmul.mubr.bf16.gmra.mxu1 %v5858_v53  ;;  %v3030_v53 = vld [vmem:[%s6846_s9] sm:$0x7] }
 0x32c   : > { %2448 = vmatprep.mubr.bf16.mxu1 %v5313_v13  ;;  %v5959_v14 = vrot.slane %v3030_v53, %v2055_v9  ;;  %v5964_v17 = vrot.slane %v3030_v53, %v2063_v52  ;;  %v5969_v12 = vrot.slane %v3030_v53, %v2059_v36 }
 0x333   : > { %2449 = vmatmul.mubr.bf16.gmra.mxu1 %v5873_v7  ;;  %v5952_v7 = vrot.slane %v2051_v23, %v2059_v36 }
 0x334   : > { %2458 = vmatprep.mubr.bf16.mxu1 %v5313_v13 }
 0x33b   : > { %2459 = vmatmul.mubr.bf16.gmra.mxu1 %v5870_v4 }
 0x33c   : > { %2468 = vmatprep.mubr.bf16.mxu1 %v5313_v13 }
 0x343   : > { %v2230_v4 = vpop.f32.mrf.mxu1  ;;  %2469 = vmatmul.mubr.bf16.gmra.mxu1 %v5885_v24 }
 0x344   : > { %v2231_v11 = vadd.f32 %v2230_v4, %v5945_v38  ;;  %v5064_v15 = vpop.f32.mrf.mxu0  ;;  %2478 = vmatprep.mubr.bf16.mxu1 %v5313_v13 }
 0x345   : > { %v2592_v16 = vadd.f32 %v5064_v15, %v5950_v55  ;;  %v2232_v18 = vpop.f32.mrf.mxu1 }
 0x346   : > { %v2838_v19 = vmax.f32 %v2231_v11, 0.0  ;;  %v2233_v41 = vadd.f32 %v2232_v18, %v5952_v7  ;;  %v2583_v24 = vpop.f32.mrf.mxu0 }
 0x347   : > { %v2846_v25 = vmax.f32 %v2592_v16, 0.0  ;;  %v2584_v27 = vadd.f32 %v2583_v24, %v5950_v55  ;;  %v2234_v28 = vpop.f32.mrf.mxu1 }
 0x348   : > { %v3047_v30 = vmul.f32 %v5959_v14, %v2838_v19  ;;  %v2839_v31 = vmax.f32 %v2233_v41, 0.0  ;;  %v2235_v33 = vadd.f32 %v2234_v28, %v5945_v38  ;;  %v5065_v34 = vpop.f32.mrf.mxu0 }
 0x349   : > { %v3055_v35 = vmul.f32 %v5964_v17, %v2846_v25  ;;  %v2840_v59 = vmax.f32 %v2584_v27, 0.0  ;;  %v2595_v37 = vadd.f32 %v5065_v34, %v5950_v55  ;;  %v2236_v42 = vpop.f32.mrf.mxu1 }
 0x34a   : > { %v3256_v43 = vadd.f32 %v5966_v20, %v3047_v30  ;;  %v3048_v45 = vmul.f32 %v5969_v12, %v2839_v31  ;;  %v2841_v46 = vmax.f32 %v2235_v33, 0.0  ;;  %v2237_v47 = vadd.f32 %v2236_v42, %v5952_v7  ;;  %v2586_v48 = vpop.f32.mrf.mxu0 }
 0x34b   : > { %v3264_v49 = vadd.f32 %v5971_v40, %v3055_v35  ;;  %v3049_v50 = vmul.f32 %v5964_v17, %v2840_v59  ;;  %v2849_v51 = vmax.f32 %v2595_v37, 0.0  ;;  %v2587_v26 = vadd.f32 %v2586_v48, %v5950_v55  ;;  %v2240_v56 = vpop.f32.mrf.mxu1  ;;  %2479 = vmatmul.mubr.bf16.gmra.mxu1 %v5882_v21 }
 0x34c   : > { %v3257_v57 = vadd.f32 %v5979_v32, %v3048_v45  ;;  %v3050_v60 = vmul.f32 %v5959_v14, %v2841_v46  ;;  %v2842_v61 = vmax.f32 %v2237_v47, 0.0  ;;  %v2241_v62 = vadd.f32 %v2240_v56, %v5945_v38  ;;  %v5068_v63 = vpop.f32.mrf.mxu0  ;;  %2488 = vmatprep.mubr.bf16.mxu1 %v5313_v13 }
 0x34d   : > { %v4544_v0 = vpack.c.bf16 %v3264_v49, %v3264_v49  ;;  %v3258_v1 = vadd.f32 %v5971_v40, %v3049_v50  ;;  %v3058_v2 = vmul.f32 %v5964_v17, %v2849_v51  ;;  %v2843_v3 = vmax.f32 %v2587_v26, 0.0  ;;  %v2242_v44 = vpop.f32.mrf.mxu1 }
 0x34e   : > { %v4539_v22 = vpack.c.bf16 %v3257_v57, %v3256_v43  ;;  %v3259_v21 = vadd.f32 %v5966_v20, %v3050_v60  ;;  %v3051_v6 = vmul.f32 %v5969_v12, %v2842_v61  ;;  %v2844_v9 = vmax.f32 %v2241_v62, 0.0  ;;  %v2599_v23 = vpop.f32.mrf.mxu0 }
 0x34f   : > { %4093 = vst [vmem:[%s6000_s14 + $0x20] sm:$0xf] %v4544_v0  ;;  %v4540_v52 = vpack.c.bf16 %v3258_v1, %v3258_v1  ;;  %v3267_v36 = vadd.f32 %v5971_v40, %v3058_v2  ;;  %v3052_v53 = vmul.f32 %v5964_v17, %v2843_v3  ;;  %v2608_v4 = vadd.f32 %v5068_v63, %v5950_v55  ;;  %v2244_v10 = vpop.f32.mrf.mxu1 }
 0x350   : > { %4088 = vst [vmem:[%s6000_s14] sm:$0xff] %v4539_v22  ;;  %v3260_v11 = vadd.f32 %v5979_v32, %v3051_v6  ;;  %v3053_v15 = vmul.f32 %v5959_v14, %v2844_v9  ;;  %v2243_v16 = vadd.f32 %v2242_v44, %v5952_v7  ;;  %v2600_v18 = vadd.f32 %v2599_v23, %v5950_v55  ;;  %v5069_v19 = vpop.f32.mrf.mxu0 }
 0x351   : > { %4089 = vst [vmem:[%s6000_s14 + $0x8] sm:$0xf] %v4540_v52  ;;  %v4546_v41 = vpack.c.bf16 %v3267_v36, %v3267_v36  ;;  %v3261_v24 = vadd.f32 %v5971_v40, %v3052_v53  ;;  %v2858_v25 = vmax.f32 %v2608_v4, 0.0  ;;  %v2245_v27 = vadd.f32 %v2244_v10, %v5945_v38  ;;  %v2246_v28 = vpop.f32.mrf.mxu1 }
 0x352   : > { %v4541_v30 = vpack.c.bf16 %v3260_v11, %v3259_v21  ;;  %v3262_v31 = vadd.f32 %v5966_v20, %v3053_v15  ;;  %v2845_v33 = vmax.f32 %v2243_v16, 0.0  ;;  %v2852_v34 = vmax.f32 %v2600_v18, 0.0  ;;  %v2602_v35 = vpop.f32.mrf.mxu0 }
 0x353   : > { %4095 = vst [vmem:[%s6000_s14 + $0x2c] sm:$0xf] %v4546_v41  ;;  %v4542_v59 = vpack.c.bf16 %v3261_v24, %v3261_v24  ;;  %v3067_v37 = vmul.f32 %v5964_v17, %v2858_v25  ;;  %v2847_v42 = vmax.f32 %v2245_v27, 0.0  ;;  %v2611_v43 = vadd.f32 %v5069_v19, %v5950_v55  ;;  %v2250_v45 = vpop.f32.mrf.mxu1  ;;  %2489 = vmatmul.mubr.bf16.gmra.mxu1 %v5897_v39 }
 0x354   : > { %4090 = vst [vmem:[%s6000_s14 + $0xc] sm:$0xff] %v4541_v30  ;;  %v3054_v46 = vmul.f32 %v5969_v12, %v2845_v33  ;;  %v3061_v47 = vmul.f32 %v5964_v17, %v2852_v34  ;;  %v2247_v48 = vadd.f32 %v2246_v28, %v5952_v7  ;;  %v2603_v49 = vadd.f32 %v2602_v35, %v5950_v55  ;;  %v5072_v50 = vpop.f32.mrf.mxu0 }
 0x355   : > { %2498 = vmatprep.mubr.bf16.mxu1 %v5313_v13  ;;  %4091 = vst [vmem:[%s6000_s14 + $0x14] sm:$0xf] %v4542_v59  ;;  %v3276_v51 = vadd.f32 %v5971_v40, %v3067_v37  ;;  %v3056_v26 = vmul.f32 %v5959_v14, %v2847_v42  ;;  %v2861_v56 = vmax.f32 %v2611_v43, 0.0  ;;  %v2251_v39 = vadd.f32 %v2250_v45, %v5945_v38  ;;  %v2252_v57 = vpop.f32.mrf.mxu1 }
 0x356   : > { %v3263_v60 = vadd.f32 %v5979_v32, %v3054_v46  ;;  %v3270_v61 = vadd.f32 %v5971_v40, %v3061_v47  ;;  %v2848_v62 = vmax.f32 %v2247_v48, 0.0  ;;  %v2855_v63 = vmax.f32 %v2603_v49, 0.0  ;;  %v2615_v0 = vpop.f32.mrf.mxu0 }
 0x357   : > { %v4552_v1 = vpack.c.bf16 %v3276_v51, %v3276_v51  ;;  %v3265_v2 = vadd.f32 %v5966_v20, %v3056_v26  ;;  %v3070_v3 = vmul.f32 %v5964_v17, %v2861_v56  ;;  %v2850_v44 = vmax.f32 %v2251_v39, 0.0  ;;  %v2254_v22 = vpop.f32.mrf.mxu1 }
 0x358   : > { %v4543_v21 = vpack.c.bf16 %v3263_v60, %v3262_v31  ;;  %v4548_v6 = vpack.c.bf16 %v3270_v61, %v3270_v61  ;;  %v3057_v9 = vmul.f32 %v5969_v12, %v2848_v62  ;;  %v3064_v23 = vmul.f32 %v5964_v17, %v2855_v63  ;;  %v5073_v52 = vpop.f32.mrf.mxu0 }
 0x359   : > { %4101 = vst [vmem:[%s6000_s14 + $0x50] sm:$0xf] %v4552_v1  ;;  %v3279_v36 = vadd.f32 %v5971_v40, %v3070_v3  ;;  %v3059_v53 = vmul.f32 %v5959_v14, %v2850_v44  ;;  %v2624_v4 = vadd.f32 %v5072_v50, %v5950_v55  ;;  %v2253_v10 = vadd.f32 %v2252_v57, %v5952_v7  ;;  %v2256_v11 = vpop.f32.mrf.mxu1 }
 0x35a   : > { %4092 = vst [vmem:[%s6000_s14 + $0x18] sm:$0xff] %v4543_v21  ;;  %4097 = vst [vmem:[%s6000_s14 + $0x38] sm:$0xf] %v4548_v6  ;;  %v3266_v15 = vadd.f32 %v5979_v32, %v3057_v9  ;;  %v3273_v16 = vadd.f32 %v5971_v40, %v3064_v23  ;;  %v2616_v18 = vadd.f32 %v2615_v0, %v5950_v55  ;;  %v2618_v41 = vpop.f32.mrf.mxu0 }
 0x35b   : > { %v2255_v19 = vadd.f32 %v2254_v22, %v5945_v38  ;;  %v4554_v24 = vpack.c.bf16 %v3279_v36, %v3279_v36  ;;  %v3268_v25 = vadd.f32 %v5966_v20, %v3059_v53  ;;  %v2870_v27 = vmax.f32 %v2624_v4, 0.0  ;;  %v2260_v30 = vpop.f32.mrf.mxu1  ;;  %2499 = vmatmul.mubr.bf16.gmra.mxu1 %v5894_v29 }
 0x35c   : > { %v2851_v28 = vmax.f32 %v2253_v10, 0.0  ;;  %v4545_v31 = vpack.c.bf16 %v3266_v15, %v3265_v2  ;;  %v4550_v33 = vpack.c.bf16 %v3273_v16, %v3273_v16  ;;  %v2864_v34 = vmax.f32 %v2616_v18, 0.0  ;;  %v5076_v59 = vpop.f32.mrf.mxu0  ;;  %2508 = vmatprep.mubr.bf16.mxu1 %v5313_v13 }
 0x35d   : > { %v2853_v35 = vmax.f32 %v2255_v19, 0.0  ;;  %4103 = vst [vmem:[%s6000_s14 + $0x5c] sm:$0xf] %v4554_v24  ;;  %v3079_v37 = vmul.f32 %v5964_v17, %v2870_v27  ;;  %v2627_v43 = vadd.f32 %v5073_v52, %v5950_v55  ;;  %v2257_v45 = vadd.f32 %v2256_v11, %v5952_v7  ;;  %v2262_v46 = vpop.f32.mrf.mxu1 }
 0x35e   : > { %v3060_v42 = vmul.f32 %v5969_v12, %v2851_v28  ;;  %4094 = vst [vmem:[%s6000_s14 + $0x24] sm:$0xff] %v4545_v31  ;;  %4099 = vst [vmem:[%s6000_s14 + $0x44] sm:$0xf] %v4550_v33  ;;  %v3073_v29 = vmul.f32 %v5964_v17, %v2864_v34  ;;  %v2619_v48 = vadd.f32 %v2618_v41, %v5950_v55  ;;  %v2631_v50 = vpop.f32.mrf.mxu0 }
 0x35f   : > { %v3062_v47 = vmul.f32 %v5959_v14, %v2853_v35  ;;  %v2261_v49 = vadd.f32 %v2260_v30, %v5945_v38  ;;  %v3288_v51 = vadd.f32 %v5971_v40, %v3079_v37  ;;  %v2873_v56 = vmax.f32 %v2627_v43, 0.0  ;;  %v2264_v57 = vpop.f32.mrf.mxu1 }
 0x360   : > { %v3269_v26 = vadd.f32 %v5979_v32, %v3060_v42  ;;  %v2854_v39 = vmax.f32 %v2257_v45, 0.0  ;;  %v3282_v60 = vadd.f32 %v5971_v40, %v3073_v29  ;;  %v2867_v62 = vmax.f32 %v2619_v48, 0.0  ;;  %v5077_v0 = vpop.f32.mrf.mxu0 }
 0x361   : > { %v3271_v61 = vadd.f32 %v5966_v20, %v3062_v47  ;;  %v2856_v63 = vmax.f32 %v2261_v49, 0.0  ;;  %v4560_v1 = vpack.c.bf16 %v3288_v51, %v3288_v51  ;;  %v3082_v3 = vmul.f32 %v5964_v17, %v2873_v56  ;;  %v2266_v22 = vpop.f32.mrf.mxu1 }
 0x362   : > { %v4547_v2 = vpack.c.bf16 %v3269_v26, %v3268_v25  ;;  %v3063_v44 = vmul.f32 %v5969_v12, %v2854_v39  ;;  %v4556_v21 = vpack.c.bf16 %v3282_v60, %v3282_v60  ;;  %v3076_v6 = vmul.f32 %v5964_v17, %v2867_v62  ;;  %v2634_v52 = vpop.f32.mrf.mxu0 }
 0x363   : > { %v3065_v9 = vmul.f32 %v5959_v14, %v2856_v63  ;;  %v2640_v23 = vadd.f32 %v5076_v59, %v5950_v55  ;;  %4109 = vst [vmem:[%s6000_s14 + $0x80] sm:$0xf] %v4560_v1  ;;  %v3291_v36 = vadd.f32 %v5971_v40, %v3082_v3  ;;  %v2263_v4 = vadd.f32 %v2262_v46, %v5952_v7  ;;  %v2270_v11 = vpop.f32.mrf.mxu1 }
 0x364   : > { %4096 = vst [vmem:[%s6000_s14 + $0x30] sm:$0xff] %v4547_v2  ;;  %v3272_v53 = vadd.f32 %v5979_v32, %v3063_v44  ;;  %v2632_v10 = vadd.f32 %v2631_v50, %v5950_v55  ;;  %2509 = vmatmul.mubr.bf16.gmra.mxu1 %v5909_v58  ;;  %4105 = vst [vmem:[%s6000_s14 + $0x68] sm:$0xf] %v4556_v21  ;;  %v3285_v15 = vadd.f32 %v5971_v40, %v3076_v6  ;;  %v5080_v41 = vpop.f32.mrf.mxu0 }
 0x365   : > { %v3274_v16 = vadd.f32 %v5966_v20, %v3065_v9  ;;  %v2882_v18 = vmax.f32 %v2640_v23, 0.0  ;;  %v2265_v19 = vadd.f32 %v2264_v57, %v5945_v38  ;;  %2518 = vmatprep.mubr.bf16.mxu1 %v5313_v13  ;;  %v4562_v24 = vpack.c.bf16 %v3291_v36, %v3291_v36  ;;  %v2272_v30 = vpop.f32.mrf.mxu1 }
 0x366   : > { %v4549_v25 = vpack.c.bf16 %v3272_v53, %v3271_v61  ;;  %v2857_v27 = vmax.f32 %v2263_v4, 0.0  ;;  %v2876_v28 = vmax.f32 %v2632_v10, 0.0  ;;  %v4558_v58 = vpack.c.bf16 %v3285_v15, %v3285_v15  ;;  %v2647_v35 = vpop.f32.mrf.mxu0 }
 0x367   : > { %v3091_v31 = vmul.f32 %v5964_v17, %v2882_v18  ;;  %v2859_v33 = vmax.f32 %v2265_v19, 0.0  ;;  %v2643_v34 = vadd.f32 %v5077_v0, %v5950_v55  ;;  %4111 = vst [vmem:[%s6000_s14 + $0x8c] sm:$0xf] %v4562_v24  ;;  %v2267_v42 = vadd.f32 %v2266_v22, %v5952_v7  ;;  %v2274_v45 = vpop.f32.mrf.mxu1 }
 0x368   : > { %4098 = vst [vmem:[%s6000_s14 + $0x3c] sm:$0xff] %v4549_v25  ;;  %v3066_v59 = vmul.f32 %v5969_v12, %v2857_v27  ;;  %v3085_v37 = vmul.f32 %v5964_v17, %v2876_v28  ;;  %v2635_v43 = vadd.f32 %v2634_v52, %v5950_v55  ;;  %4107 = vst [vmem:[%s6000_s14 + $0x74] sm:$0xf] %v4558_v58  ;;  %v5081_v49 = vpop.f32.mrf.mxu0 }
 0x369   : > { %v3300_v46 = vadd.f32 %v5971_v40, %v3091_v31  ;;  %v3068_v29 = vmul.f32 %v5959_v14, %v2859_v33  ;;  %v2885_v47 = vmax.f32 %v2643_v34, 0.0  ;;  %v2271_v48 = vadd.f32 %v2270_v11, %v5945_v38  ;;  %v2276_v39 = vpop.f32.mrf.mxu1 }
 0x36a   : > { %v3275_v50 = vadd.f32 %v5979_v32, %v3066_v59  ;;  %v3294_v51 = vadd.f32 %v5971_v40, %v3085_v37  ;;  %v2860_v26 = vmax.f32 %v2267_v42, 0.0  ;;  %v2879_v56 = vmax.f32 %v2635_v43, 0.0  ;;  %v6097_v63 = vpop.f32.mrf.mxu0 }
 0x36b   : > { %v4568_v57 = vpack.c.bf16 %v3300_v46, %v3300_v46  ;;  %v3277_v60 = vadd.f32 %v5966_v20, %v3068_v29  ;;  %v3094_v61 = vmul.f32 %v5964_v17, %v2885_v47  ;;  %v2862_v62 = vmax.f32 %v2271_v48, 0.0  ;;  %v2280_v44 = vpop.f32.mrf.mxu1 }
 0x36c   : > { %v4551_v0 = vpack.c.bf16 %v3275_v50, %v3274_v16  ;;  %v4564_v1 = vpack.c.bf16 %v3294_v51, %v3294_v51  ;;  %v3069_v2 = vmul.f32 %v5969_v12, %v2860_v26  ;;  %v3088_v3 = vmul.f32 %v5964_v17, %v2879_v56  ;;  %2519 = vmatmul.mubr.bf16.gmra.mxu1 %v5906_v54  ;;  %v6108_v23 = vpop.f32.mrf.mxu0 }
 0x36d   : > { %4117 = vst [vmem:[%s6000_s14 + $0xb0] sm:$0xf] %v4568_v57  ;;  %v3303_v22 = vadd.f32 %v5971_v40, %v3094_v61  ;;  %v3071_v21 = vmul.f32 %v5959_v14, %v2862_v62  ;;  %v2273_v6 = vadd.f32 %v2272_v30, %v5952_v7  ;;  %v2275_v9 = vadd.f32 %v2274_v45, %v5945_v38  ;;  %v2282_v4 = vpop.f32.mrf.mxu1 }
 0x36e   : > { %2528 = vmatprep.mubr.bf16.mxu1 %v5313_v13  ;;  %4100 = vst [vmem:[%s6000_s14 + $0x48] sm:$0xff] %v4551_v0  ;;  %4113 = vst [vmem:[%s6000_s14 + $0x98] sm:$0xf] %v4564_v1  ;;  %v3278_v52 = vadd.f32 %v5979_v32, %v3069_v2  ;;  %v3297_v54 = vadd.f32 %v5971_v40, %v3088_v3  ;;  %v2277_v36 = vadd.f32 %v2276_v39, %v5952_v7  ;;  %v6117_v18 = vpop.f32.mrf.mxu0 }
 0x36f   : > { %v2656_v53 = vadd.f32 %v5080_v41, %v5950_v55  ;;  %v4570_v10 = vpack.c.bf16 %v3303_v22, %v3303_v22  ;;  %v3280_v11 = vadd.f32 %v5966_v20, %v3071_v21  ;;  %v2863_v15 = vmax.f32 %v2273_v6, 0.0  ;;  %v2284_v28 = vpop.f32.mrf.mxu1 }
 0x370   : > { %v2865_v16 = vmax.f32 %v2275_v9, 0.0  ;;  %v4553_v19 = vpack.c.bf16 %v3278_v52, %v3277_v60  ;;  %v4566_v24 = vpack.c.bf16 %v3297_v54, %v3297_v54  ;;  %v2866_v25 = vmax.f32 %v2277_v36, 0.0  ;;  %v6124_v33 = vpop.f32.mrf.mxu0 }
 0x371   : > { %v2894_v27 = vmax.f32 %v2656_v53, 0.0  ;;  %4119 = vst [vmem:[%s6000_s14 + $0xbc] sm:$0xf] %v4570_v10  ;;  %v3072_v30 = vmul.f32 %v5969_v12, %v2863_v15  ;;  %v2281_v58 = vadd.f32 %v2280_v44, %v5945_v38  ;;  %v2648_v31 = vadd.f32 %v2647_v35, %v5950_v55  ;;  %v2286_v43 = vpop.f32.mrf.mxu1 }
 0x372   : > { %v3074_v41 = vmul.f32 %v5959_v14, %v2865_v16  ;;  %4102 = vst [vmem:[%s6000_s14 + $0x54] sm:$0xff] %v4553_v19  ;;  %4115 = vst [vmem:[%s6000_s14 + $0xa4] sm:$0xf] %v4566_v24  ;;  %v3075_v34 = vmul.f32 %v5969_v12, %v2866_v25  ;;  %v2283_v37 = vadd.f32 %v2282_v4, %v5952_v7  ;;  %v6134_v35 = vpop.f32.mrf.mxu0 }
 0x373   : > { %v3103_v59 = vmul.f32 %v5964_v17, %v2894_v27  ;;  %v2659_v42 = vadd.f32 %v5081_v49, %v5950_v55  ;;  %v3281_v45 = vadd.f32 %v5979_v32, %v3072_v30  ;;  %v2868_v29 = vmax.f32 %v2281_v58, 0.0  ;;  %v2290_v56 = vpop.f32.mrf.mxu1 }
 0x374   : > { %v3283_v46 = vadd.f32 %v5966_v20, %v3074_v41  ;;  %v2888_v47 = vmax.f32 %v2648_v31, 0.0  ;;  %v3284_v48 = vadd.f32 %v5979_v32, %v3075_v34  ;;  %v2869_v51 = vmax.f32 %v2283_v37, 0.0  ;;  %2529 = vmatmul.mubr.bf16.gmra.mxu1 %v5920_v8  ;;  %v6143_v61 = vpop.f32.mrf.mxu0 }
 0x375   : > { %v3312_v50 = vadd.f32 %v5971_v40, %v3103_v59  ;;  %v2897_v26 = vmax.f32 %v2659_v42, 0.0  ;;  %v4555_v49 = vpack.c.bf16 %v3281_v45, %v3280_v11  ;;  %v3077_v39 = vmul.f32 %v5959_v14, %v2868_v29  ;;  %2538 = vmatprep.mubr.bf16.mxu1 %v5313_v13  ;;  %v2292_v8 = vpop.f32.mrf.mxu1 }
 0x376   : > { %v3097_v57 = vmul.f32 %v5964_v17, %v2888_v47  ;;  %v2285_v60 = vadd.f32 %v2284_v28, %v5945_v38  ;;  %v4557_v62 = vpack.c.bf16 %v3284_v48, %v3283_v46  ;;  %v3078_v1 = vmul.f32 %v5969_v12, %v2869_v51  ;;  %v6152_v6 = vpop.f32.mrf.mxu0 }
 0x377   : > { %v4576_v0 = vpack.c.bf16 %v3312_v50, %v3312_v50  ;;  %v3106_v2 = vmul.f32 %v5964_v17, %v2897_v26  ;;  %4104 = vst [vmem:[%s6000_s14 + $0x60] sm:$0xff] %v4555_v49  ;;  %v3286_v3 = vadd.f32 %v5966_v20, %v3077_v39  ;;  %v2651_v21 = vadd.f32 %v6097_v63, %v5950_v55  ;;  %v2294_v36 = vpop.f32.mrf.mxu1 }
 0x378   : > { %v3306_v44 = vadd.f32 %v5971_v40, %v3097_v57  ;;  %v2871_v22 = vmax.f32 %v2285_v60, 0.0  ;;  %4106 = vst [vmem:[%s6000_s14 + $0x6c] sm:$0xff] %v4557_v62  ;;  %v3287_v13 = vadd.f32 %v5979_v32, %v3078_v1  ;;  %v2287_v52 = vadd.f32 %v2286_v43, %v5952_v7  ;;  %v6162_v11 = vpop.f32.mrf.mxu0 }
 0x379   : > { %4125 = vst [vmem:[%s6000_s14 + $0xe0] sm:$0xf] %v4576_v0  ;;  %v3315_v9 = vadd.f32 %v5971_v40, %v3106_v2  ;;  %v2291_v54 = vadd.f32 %v2290_v56, %v5945_v38  ;;  %v2891_v63 = vmax.f32 %v2651_v21, 0.0  ;;  %v2293_v10 = vadd.f32 %v2292_v8, %v5952_v7  ;;  %v2296_v25 = vpop.f32.mrf.mxu1 }
 0x37a   : > { %v4572_v53 = vpack.c.bf16 %v3306_v44, %v3306_v44  ;;  %v3080_v4 = vmul.f32 %v5959_v14, %v2871_v22  ;;  %v4559_v15 = vpack.c.bf16 %v3287_v13, %v3286_v3  ;;  %v2872_v19 = vmax.f32 %v2287_v52, 0.0  ;;  %v6168_v58 = vpop.f32.mrf.mxu0 }
 0x37b   : > { %v4578_v16 = vpack.c.bf16 %v3315_v9, %v3315_v9  ;;  %v2874_v24 = vmax.f32 %v2291_v54, 0.0  ;;  %v3100_v28 = vmul.f32 %v5964_v17, %v2891_v63  ;;  %v2875_v30 = vmax.f32 %v2293_v10, 0.0  ;;  %v2300_v42 = vpop.f32.mrf.mxu1 }
 0x37c   : > { %4121 = vst [vmem:[%s6000_s14 + $0xc8] sm:$0xf] %v4572_v53  ;;  %v3289_v27 = vadd.f32 %v5966_v20, %v3080_v4  ;;  %v2295_v41 = vadd.f32 %v2294_v36, %v5945_v38  ;;  %4108 = vst [vmem:[%s6000_s14 + $0x78] sm:$0xff] %v4559_v15  ;;  %v3081_v31 = vmul.f32 %v5969_v12, %v2872_v19  ;;  %2539 = vmatmul.mubr.bf16.gmra.mxu1 %v5918_v5  ;;  %v6181_v47 = vpop.f32.mrf.mxu0 }
 0x37d   : > { %4127 = vst [vmem:[%s6000_s14 + $0xec] sm:$0xf] %v4578_v16  ;;  %v3083_v34 = vmul.f32 %v5959_v14, %v2874_v24  ;;  %v2297_v59 = vadd.f32 %v2296_v25, %v5952_v7  ;;  %v2672_v37 = vadd.f32 %v6108_v23, %v5950_v55  ;;  %v3309_v43 = vadd.f32 %v5971_v40, %v3100_v28  ;;  %v2302_v23 = vpop.f32.mrf.mxu1 }
 0x37e   : > { %v3084_v45 = vmul.f32 %v5969_v12, %v2875_v30  ;;  %v2877_v46 = vmax.f32 %v2295_v41, 0.0  ;;  %v2301_v29 = vadd.f32 %v2300_v42, %v5945_v38  ;;  %v3290_v48 = vadd.f32 %v5979_v32, %v3081_v31  ;;  %v6187_v57 = vpop.f32.mrf.mxu0 }
 0x37f   : > { %v3292_v50 = vadd.f32 %v5966_v20, %v3083_v34  ;;  %v2878_v51 = vmax.f32 %v2297_v59, 0.0  ;;  %v2906_v26 = vmax.f32 %v2672_v37, 0.0  ;;  %v4574_v56 = vpack.c.bf16 %v3309_v43, %v3309_v43  ;;  %v2304_v2 = vpop.f32.mrf.mxu1 }
 0x380   : > { %v3293_v5 = vadd.f32 %v5979_v32, %v3084_v45  ;;  %v3086_v49 = vmul.f32 %v5959_v14, %v2877_v46  ;;  %v2880_v39 = vmax.f32 %v2301_v29, 0.0  ;;  %v4561_v60 = vpack.c.bf16 %v3290_v48, %v3289_v27  ;;  %v6207_v63 = vpop.f32.mrf.mxu0 }
 0x381   : > { %v3087_v62 = vmul.f32 %v5969_v12, %v2878_v51  ;;  %v3115_v0 = vmul.f32 %v5964_v17, %v2906_v26  ;;  %v2664_v1 = vadd.f32 %v6117_v18, %v5950_v55  ;;  %4123 = vst [vmem:[%s6000_s14 + $0xd4] sm:$0xf] %v4574_v56  ;;  %v2303_v22 = vadd.f32 %v2302_v23, %v5952_v7  ;;  %v2306_v54 = vpop.f32.mrf.mxu1 }
 0x382   : > { %v4563_v8 = vpack.c.bf16 %v3293_v5, %v3292_v50  ;;  %v3295_v3 = vadd.f32 %v5966_v20, %v3086_v49  ;;  %v3089_v44 = vmul.f32 %v5959_v14, %v2880_v39  ;;  %4110 = vst [vmem:[%s6000_s14 + $0x84] sm:$0xff] %v4561_v60  ;;  %v2675_v52 = vadd.f32 %v6124_v33, %v5950_v55  ;;  %v6222_v45 = vpop.f32.mrf.mxu0 }
 0x383   : > { %v3296_v21 = vadd.f32 %v5979_v32, %v3087_v62  ;;  %v3324_v13 = vadd.f32 %v5971_v40, %v3115_v0  ;;  %v2900_v9 = vmax.f32 %v2664_v1, 0.0  ;;  %v2881_v36 = vmax.f32 %v2303_v22, 0.0  ;;  %v2310_v33 = vpop.f32.mrf.mxu1 }
 0x384   : > { %4112 = vst [vmem:[%s6000_s14 + $0x90] sm:$0xff] %v4563_v8  ;;  %v3298_v18 = vadd.f32 %v5966_v20, %v3089_v44  ;;  %v2305_v53 = vadd.f32 %v2304_v2, %v5945_v38  ;;  %v2667_v4 = vadd.f32 %v6134_v35, %v5950_v55  ;;  %v2909_v19 = vmax.f32 %v2675_v52, 0.0  ;;  %v6229_v5 = vpop.f32.mrf.mxu0 }
 0x385   : > { %v4565_v10 = vpack.c.bf16 %v3296_v21, %v3295_v3  ;;  %v4584_v15 = vpack.c.bf16 %v3324_v13, %v3324_v13  ;;  %v3109_v16 = vmul.f32 %v5964_v17, %v2900_v9  ;;  %v3090_v24 = vmul.f32 %v5969_v12, %v2881_v36  ;;  %v2312_v31 = vpop.f32.mrf.mxu1 }
 0x386   : > { %v2883_v25 = vmax.f32 %v2305_v53, 0.0  ;;  %v2903_v27 = vmax.f32 %v2667_v4, 0.0  ;;  %v2307_v28 = vadd.f32 %v2306_v54, %v5952_v7  ;;  %v3118_v35 = vmul.f32 %v5964_v17, %v2909_v19  ;;  %v6245_v53 = vpop.f32.mrf.mxu0 }
 0x387   : > { %4114 = vst [vmem:[%s6000_s14 + $0x9c] sm:$0xff] %v4565_v10  ;;  %4133 = vst [vmem:[%s6000_s14 + $0x110] sm:$0xf] %v4584_v15  ;;  %v3318_v30 = vadd.f32 %v5971_v40, %v3109_v16  ;;  %v2311_v41 = vadd.f32 %v2310_v33, %v5945_v38  ;;  %v2688_v34 = vadd.f32 %v6143_v61, %v5950_v55  ;;  %v2314_v51 = vpop.f32.mrf.mxu1 }
 0x388   : > { %v3299_v59 = vadd.f32 %v5979_v32, %v3090_v24  ;;  %v3092_v37 = vmul.f32 %v5959_v14, %v2883_v25  ;;  %v3112_v42 = vmul.f32 %v5964_v17, %v2903_v27  ;;  %v2884_v43 = vmax.f32 %v2307_v28, 0.0 }
 0x389   : > { %v4580_v46 = vpack.c.bf16 %v3318_v30, %v3318_v30  ;;  %v3327_v29 = vadd.f32 %v5971_v40, %v3118_v35  ;;  %v2886_v48 = vmax.f32 %v2311_v41, 0.0  ;;  %v2313_v50 = vadd.f32 %v2312_v31, %v5952_v7  ;;  %v2316_v0 = vpop.f32.mrf.mxu1 }
 0x38a   : > { %v4567_v26 = vpack.c.bf16 %v3299_v59, %v3298_v18  ;;  %v3301_v61 = vadd.f32 %v5966_v20, %v3092_v37  ;;  %v3321_v23 = vadd.f32 %v5971_v40, %v3112_v42  ;;  %v3093_v56 = vmul.f32 %v5969_v12, %v2884_v43  ;;  %v6259_v37 = vpop.f32.mrf.mxu0 }
 0x38b   : > { %4129 = vst [vmem:[%s6000_s14 + $0xf8] sm:$0xf] %v4580_v46  ;;  %v4586_v49 = vpack.c.bf16 %v3327_v29, %v3327_v29  ;;  %v3095_v39 = vmul.f32 %v5959_v14, %v2886_v48  ;;  %v2887_v60 = vmax.f32 %v2313_v50, 0.0  ;;  %v2315_v62 = vadd.f32 %v2314_v51, %v5945_v38  ;;  %v2320_v13 = vpop.f32.mrf.mxu1 }
 0x38c   : > { %4116 = vst [vmem:[%s6000_s14 + $0xa8] sm:$0xff] %v4567_v26  ;;  %v4582_v1 = vpack.c.bf16 %v3321_v23, %v3321_v23  ;;  %v3302_v2 = vadd.f32 %v5979_v32, %v3093_v56  ;;  %v2317_v8 = vadd.f32 %v2316_v0, %v5952_v7  ;;  %v2918_v3 = vmax.f32 %v2688_v34, 0.0 }
 0x38d   : > { %4135 = vst [vmem:[%s6000_s14 + $0x11c] sm:$0xf] %v4586_v49  ;;  %v3304_v44 = vadd.f32 %v5966_v20, %v3095_v39  ;;  %v3096_v22 = vmul.f32 %v5969_v12, %v2887_v60  ;;  %v2889_v21 = vmax.f32 %v2315_v62, 0.0  ;;  %v2680_v9 = vadd.f32 %v6152_v6, %v5950_v55  ;;  %v2322_v16 = vpop.f32.mrf.mxu1 }
 0x38e   : > { %4131 = vst [vmem:[%s6000_s14 + $0x104] sm:$0xf] %v4582_v1  ;;  %v4569_v52 = vpack.c.bf16 %v3302_v2, %v3301_v61  ;;  %v2890_v54 = vmax.f32 %v2317_v8, 0.0  ;;  %v3127_v18 = vmul.f32 %v5964_v17, %v2918_v3  ;;  %v2321_v36 = vadd.f32 %v2320_v13, %v5945_v38  ;;  %v6277_v2 = vpop.f32.mrf.mxu0 }
 0x38f   : > { %v3305_v4 = vadd.f32 %v5979_v32, %v3096_v22  ;;  %v3098_v10 = vmul.f32 %v5959_v14, %v2889_v21  ;;  %v2912_v15 = vmax.f32 %v2680_v9, 0.0  ;;  %v2691_v19 = vadd.f32 %v6162_v11, %v5950_v55  ;;  %v2324_v41 = vpop.f32.mrf.mxu1 }
 0x390   : > { %4118 = vst [vmem:[%s6000_s14 + $0xb4] sm:$0xff] %v4569_v52  ;;  %v3099_v6 = vmul.f32 %v5969_v12, %v2890_v54  ;;  %v3336_v33 = vadd.f32 %v5971_v40, %v3127_v18  ;;  %v2892_v24 = vmax.f32 %v2321_v36, 0.0  ;;  %v2323_v25 = vadd.f32 %v2322_v16, %v5952_v7 }
 0x391   : > { %v4571_v27 = vpack.c.bf16 %v3305_v4, %v3304_v44  ;;  %v3307_v28 = vadd.f32 %v5966_v20, %v3098_v10  ;;  %v3121_v30 = vmul.f32 %v5964_v17, %v2912_v15  ;;  %v2921_v35 = vmax.f32 %v2691_v19, 0.0  ;;  %v2326_v48 = vpop.f32.mrf.mxu1 }
 0x392   : > { %v3308_v31 = vadd.f32 %v5979_v32, %v3099_v6  ;;  %v4592_v11 = vpack.c.bf16 %v3336_v33, %v3336_v33  ;;  %v3101_v34 = vmul.f32 %v5959_v14, %v2892_v24  ;;  %v2893_v59 = vmax.f32 %v2323_v25, 0.0 }
 0x393   : > { %4120 = vst [vmem:[%s6000_s14 + $0xc0] sm:$0xff] %v4571_v27  ;;  %v3330_v42 = vadd.f32 %v5971_v40, %v3121_v30  ;;  %v3130_v43 = vmul.f32 %v5964_v17, %v2921_v35  ;;  %v2325_v46 = vadd.f32 %v2324_v41, %v5945_v38  ;;  %v2683_v29 = vadd.f32 %v6168_v58, %v5950_v55  ;;  %v2330_v60 = vpop.f32.mrf.mxu1 }
 0x394   : > { %v4573_v50 = vpack.c.bf16 %v3308_v31, %v3307_v28  ;;  %4141 = vst [vmem:[%s6000_s14 + $0x140] sm:$0xf] %v4592_v11  ;;  %v3310_v51 = vadd.f32 %v5966_v20, %v3101_v34  ;;  %v3102_v26 = vmul.f32 %v5969_v12, %v2893_v59  ;;  %v2327_v61 = vadd.f32 %v2326_v48, %v5952_v7 }
 0x395   : > { %v4588_v23 = vpack.c.bf16 %v3330_v42, %v3330_v42  ;;  %v3339_v56 = vadd.f32 %v5971_v40, %v3130_v43  ;;  %v2895_v49 = vmax.f32 %v2325_v46, 0.0  ;;  %v2915_v39 = vmax.f32 %v2683_v29, 0.0  ;;  %v2332_v22 = vpop.f32.mrf.mxu1 }
 0x396   : > { %4122 = vst [vmem:[%s6000_s14 + $0xcc] sm:$0xff] %v4573_v50  ;;  %v3311_v62 = vadd.f32 %v5979_v32, %v3102_v26  ;;  %v2896_v58 = vmax.f32 %v2327_v61, 0.0  ;;  %v2331_v0 = vadd.f32 %v2330_v60, %v5945_v38  ;;  %v2704_v1 = vadd.f32 %v6181_v47, %v5950_v55  ;;  %v6286_v47 = vpop.f32.mrf.mxu0 }
 0x397   : > { %4137 = vst [vmem:[%s6000_s14 + $0x128] sm:$0xf] %v4588_v23  ;;  %v4594_v8 = vpack.c.bf16 %v3339_v56, %v3339_v56  ;;  %v3104_v3 = vmul.f32 %v5959_v14, %v2895_v49  ;;  %v3124_v44 = vmul.f32 %v5964_v17, %v2915_v39  ;;  %v2696_v21 = vadd.f32 %v6187_v57, %v5950_v55  ;;  %v2334_v4 = vpop.f32.mrf.mxu1 }
 0x398   : > { %v4575_v13 = vpack.c.bf16 %v3311_v62, %v3310_v51  ;;  %v3105_v9 = vmul.f32 %v5969_v12, %v2896_v58  ;;  %v2898_v52 = vmax.f32 %v2331_v0, 0.0  ;;  %v2333_v54 = vadd.f32 %v2332_v22, %v5952_v7  ;;  %v6301_v11 = vpop.f32.mrf.mxu0 }
 0x399   : > { %4143 = vst [vmem:[%s6000_s14 + $0x14c] sm:$0xf] %v4594_v8  ;;  %v3313_v18 = vadd.f32 %v5966_v20, %v3104_v3  ;;  %v3333_v36 = vadd.f32 %v5971_v40, %v3124_v44  ;;  %v2930_v10 = vmax.f32 %v2704_v1, 0.0  ;;  %v2924_v15 = vmax.f32 %v2696_v21, 0.0  ;;  %v2336_v24 = vpop.f32.mrf.mxu1 }
 0x39a   : > { %4124 = vst [vmem:[%s6000_s14 + $0xd8] sm:$0xff] %v4575_v13  ;;  %v3314_v57 = vadd.f32 %v5979_v32, %v3105_v9  ;;  %v3107_v16 = vmul.f32 %v5959_v14, %v2898_v52  ;;  %v2899_v19 = vmax.f32 %v2333_v54, 0.0  ;;  %v2335_v6 = vadd.f32 %v2334_v4, %v5945_v38  ;;  %v6316_v58 = vpop.f32.mrf.mxu0 }
 0x39b   : > { %v4590_v33 = vpack.c.bf16 %v3333_v36, %v3333_v36  ;;  %v3139_v25 = vmul.f32 %v5964_v17, %v2930_v10  ;;  %v3133_v27 = vmul.f32 %v5964_v17, %v2924_v15  ;;  %v2707_v28 = vadd.f32 %v6207_v63, %v5950_v55  ;;  %v2340_v42 = vpop.f32.mrf.mxu1 }
 0x39c   : > { %v4577_v30 = vpack.c.bf16 %v3314_v57, %v3313_v18  ;;  %v3316_v35 = vadd.f32 %v5966_v20, %v3107_v16  ;;  %v3108_v41 = vmul.f32 %v5969_v12, %v2899_v19  ;;  %v2901_v31 = vmax.f32 %v2335_v6, 0.0  ;;  %v6334_v57 = vpop.f32.mrf.mxu0 }
 0x39d   : > { %4139 = vst [vmem:[%s6000_s14 + $0x134] sm:$0xf] %v4590_v33  ;;  %v2337_v34 = vadd.f32 %v2336_v24, %v5952_v7  ;;  %v3348_v59 = vadd.f32 %v5971_v40, %v3139_v25  ;;  %v3342_v43 = vadd.f32 %v5971_v40, %v3133_v27  ;;  %v2933_v46 = vmax.f32 %v2707_v28, 0.0  ;;  %v2342_v23 = vpop.f32.mrf.mxu1 }
 0x39e   : > { %4126 = vst [vmem:[%s6000_s14 + $0xe4] sm:$0xff] %v4577_v30  ;;  %v3317_v63 = vadd.f32 %v5979_v32, %v3108_v41  ;;  %v3110_v29 = vmul.f32 %v5959_v14, %v2901_v31  ;;  %v2341_v48 = vadd.f32 %v2340_v42, %v5945_v38  ;;  %v2699_v50 = vadd.f32 %v6222_v45, %v5950_v55  ;;  %v6342_v30 = vpop.f32.mrf.mxu0 }
 0x39f   : > { %v2902_v51 = vmax.f32 %v2337_v34, 0.0  ;;  %v4600_v26 = vpack.c.bf16 %v3348_v59, %v3348_v59  ;;  %v4596_v61 = vpack.c.bf16 %v3342_v43, %v3342_v43  ;;  %v3142_v56 = vmul.f32 %v5964_v17, %v2933_v46  ;;  %v2344_v1 = vpop.f32.mrf.mxu1 }
 0x3a0   : > { %v4579_v49 = vpack.c.bf16 %v3317_v63, %v3316_v35  ;;  %v3319_v39 = vadd.f32 %v5966_v20, %v3110_v29  ;;  %v2904_v60 = vmax.f32 %v2341_v48, 0.0  ;;  %v2343_v62 = vadd.f32 %v2342_v23, %v5952_v7 }
 0x3a1   : > { %v3111_v0 = vmul.f32 %v5969_v12, %v2902_v51  ;;  %4149 = vst [vmem:[%s6000_s14 + $0x170] sm:$0xf] %v4600_v26  ;;  %4145 = vst [vmem:[%s6000_s14 + $0x158] sm:$0xf] %v4596_v61  ;;  %v3351_v45 = vadd.f32 %v5971_v40, %v3142_v56  ;;  %v2927_v8 = vmax.f32 %v2699_v50, 0.0  ;;  %v2720_v3 = vadd.f32 %v6229_v5, %v5950_v55  ;;  %v2346_v18 = vpop.f32.mrf.mxu1 }
 0x3a2   : > { %4128 = vst [vmem:[%s6000_s14 + $0xf0] sm:$0xff] %v4579_v49  ;;  %v3113_v44 = vmul.f32 %v5959_v14, %v2904_v60  ;;  %v2905_v22 = vmax.f32 %v2343_v62, 0.0  ;;  %v2345_v21 = vadd.f32 %v2344_v1, %v5945_v38  ;;  %v2712_v13 = vadd.f32 %v6245_v53, %v5950_v55  ;;  %v6360_v49 = vpop.f32.mrf.mxu0 }
 0x3a3   : > { %v3320_v9 = vadd.f32 %v5979_v32, %v3111_v0  ;;  %v4602_v52 = vpack.c.bf16 %v3351_v45, %v3351_v45  ;;  %v3136_v54 = vmul.f32 %v5964_v17, %v2927_v8  ;;  %v2942_v36 = vmax.f32 %v2720_v3, 0.0  ;;  %v2350_v19 = vpop.f32.mrf.mxu1 }
 0x3a4   : > { %v3322_v4 = vadd.f32 %v5966_v20, %v3113_v44  ;;  %v3114_v5 = vmul.f32 %v5969_v12, %v2905_v22  ;;  %v2907_v10 = vmax.f32 %v2345_v21, 0.0  ;;  %v2347_v15 = vadd.f32 %v2346_v18, %v5952_v7 }
 0x3a5   : > { %v4581_v16 = vpack.c.bf16 %v3320_v9, %v3319_v39  ;;  %4151 = vst [vmem:[%s6000_s14 + $0x17c] sm:$0xf] %v4602_v52  ;;  %v3345_v53 = vadd.f32 %v5971_v40, %v3136_v54  ;;  %v3151_v6 = vmul.f32 %v5964_v17, %v2942_v36  ;;  %v2936_v33 = vmax.f32 %v2712_v13, 0.0  ;;  %v2352_v41 = vpop.f32.mrf.mxu1  ;;  %v6376_v36 = vpop.f32.mrf.mxu0 }
 0x3a6   : > { %v3323_v24 = vadd.f32 %v5979_v32, %v3114_v5  ;;  %v3116_v25 = vmul.f32 %v5959_v14, %v2907_v10  ;;  %v2908_v27 = vmax.f32 %v2347_v15, 0.0  ;;  %v2351_v28 = vadd.f32 %v2350_v19, %v5945_v38 }
 0x3a7   : > { %4130 = vst [vmem:[%s6000_s14 + $0xfc] sm:$0xff] %v4581_v16  ;;  %v4598_v35 = vpack.c.bf16 %v3345_v53, %v3345_v53  ;;  %v3360_v31 = vadd.f32 %v5971_v40, %v3151_v6  ;;  %v3145_v34 = vmul.f32 %v5964_v17, %v2936_v33  ;;  %v2723_v59 = vadd.f32 %v6259_v37, %v5950_v55  ;;  %v2354_v48 = vpop.f32.mrf.mxu1 }
 0x3a8   : > { %v4583_v42 = vpack.c.bf16 %v3323_v24, %v3322_v4  ;;  %v3325_v43 = vadd.f32 %v5966_v20, %v3116_v25  ;;  %v3117_v46 = vmul.f32 %v5969_v12, %v2908_v27  ;;  %v2910_v63 = vmax.f32 %v2351_v28, 0.0 }
 0x3a9   : > { %4147 = vst [vmem:[%s6000_s14 + $0x164] sm:$0xf] %v4598_v35  ;;  %v2353_v29 = vadd.f32 %v2352_v41, %v5952_v7  ;;  %v4608_v50 = vpack.c.bf16 %v3360_v31, %v3360_v31  ;;  %v3354_v51 = vadd.f32 %v5971_v40, %v3145_v34  ;;  %v2945_v26 = vmax.f32 %v2723_v59, 0.0  ;;  %v2356_v60 = vpop.f32.mrf.mxu1  ;;  %v6390_v59 = vpop.f32.mrf.mxu0 }
 0x3aa   : > { %4132 = vst [vmem:[%s6000_s14 + $0x108] sm:$0xff] %v4583_v42  ;;  %v3326_v61 = vadd.f32 %v5979_v32, %v3117_v46  ;;  %v3119_v37 = vmul.f32 %v5959_v14, %v2910_v63  ;;  %v2355_v23 = vadd.f32 %v2354_v48, %v5945_v38  ;;  %v2715_v56 = vadd.f32 %v6277_v2, %v5950_v55 }
 0x3ab   : > { %v2911_v39 = vmax.f32 %v2353_v29, 0.0  ;;  %4157 = vst [vmem:[%s6000_s14 + $0x1a0] sm:$0xf] %v4608_v50  ;;  %v4604_v62 = vpack.c.bf16 %v3354_v51, %v3354_v51  ;;  %v3154_v0 = vmul.f32 %v5964_v17, %v2945_v26  ;;  %v2736_v45 = vadd.f32 %v6286_v47, %v5950_v55  ;;  %v2360_v22 = vpop.f32.mrf.mxu1 }
 0x3ac   : > { %v4585_v1 = vpack.c.bf16 %v3326_v61, %v3325_v43  ;;  %v3328_v8 = vadd.f32 %v5966_v20, %v3119_v37  ;;  %v2913_v3 = vmax.f32 %v2355_v23, 0.0  ;;  %v2357_v44 = vadd.f32 %v2356_v60, %v5952_v7  ;;  %v6398_v61 = vpop.f32.mrf.mxu0 }
 0x3ad   : > { %v3120_v2 = vmul.f32 %v5969_v12, %v2911_v39  ;;  %4153 = vst [vmem:[%s6000_s14 + $0x188] sm:$0xf] %v4604_v62  ;;  %v3363_v21 = vadd.f32 %v5971_v40, %v3154_v0  ;;  %v2939_v13 = vmax.f32 %v2715_v56, 0.0  ;;  %v2954_v9 = vmax.f32 %v2736_v45, 0.0  ;;  %v2362_v5 = vpop.f32.mrf.mxu1 }
 0x3ae   : > { %4134 = vst [vmem:[%s6000_s14 + $0x114] sm:$0xff] %v4585_v1  ;;  %v3122_v52 = vmul.f32 %v5959_v14, %v2913_v3  ;;  %v2914_v54 = vmax.f32 %v2357_v44, 0.0  ;;  %v2361_v47 = vadd.f32 %v2360_v22, %v5945_v38  ;;  %v2728_v18 = vadd.f32 %v6301_v11, %v5950_v55 }
 0x3af   : > { %v3329_v4 = vadd.f32 %v5979_v32, %v3120_v2  ;;  %v4610_v10 = vpack.c.bf16 %v3363_v21, %v3363_v21  ;;  %v3148_v15 = vmul.f32 %v5964_v17, %v2939_v13  ;;  %v3163_v16 = vmul.f32 %v5964_v17, %v2954_v9  ;;  %v2364_v11 = vpop.f32.mrf.mxu1  ;;  %v6415_v9 = vpop.f32.mrf.mxu0 }
 0x3b0   : > { %v3331_v53 = vadd.f32 %v5966_v20, %v3122_v52  ;;  %v3123_v19 = vmul.f32 %v5969_v12, %v2914_v54  ;;  %v2916_v6 = vmax.f32 %v2361_v47, 0.0  ;;  %v2363_v33 = vadd.f32 %v2362_v5, %v5952_v7 }
 0x3b1   : > { %v4587_v24 = vpack.c.bf16 %v3329_v4, %v3328_v8  ;;  %4159 = vst [vmem:[%s6000_s14 + $0x1ac] sm:$0xf] %v4610_v10  ;;  %v3357_v25 = vadd.f32 %v5971_v40, %v3148_v15  ;;  %v3372_v27 = vadd.f32 %v5971_v40, %v3163_v16  ;;  %v2948_v28 = vmax.f32 %v2728_v18, 0.0  ;;  %v2366_v43 = vpop.f32.mrf.mxu1 }
 0x3b2   : > { %v3332_v35 = vadd.f32 %v5979_v32, %v3123_v19  ;;  %v3125_v41 = vmul.f32 %v5959_v14, %v2916_v6  ;;  %v2917_v31 = vmax.f32 %v2363_v33, 0.0  ;;  %v2365_v34 = vadd.f32 %v2364_v11, %v5945_v38 }
 0x3b3   : > { %4136 = vst [vmem:[%s6000_s14 + $0x120] sm:$0xff] %v4587_v24  ;;  %v4606_v42 = vpack.c.bf16 %v3357_v25, %v3357_v25  ;;  %v4616_v46 = vpack.c.bf16 %v3372_v27, %v3372_v27  ;;  %v3157_v63 = vmul.f32 %v5964_v17, %v2948_v28  ;;  %v2739_v29 = vadd.f32 %v6316_v58, %v5950_v55  ;;  %v2370_v23 = vpop.f32.mrf.mxu1  ;;  %v6432_v28 = vpop.f32.mrf.mxu0 }
 0x3b4   : > { %v4589_v48 = vpack.c.bf16 %v3332_v35, %v3331_v53  ;;  %v3334_v50 = vadd.f32 %v5966_v20, %v3125_v41  ;;  %v3126_v51 = vmul.f32 %v5969_v12, %v2917_v31  ;;  %v2919_v26 = vmax.f32 %v2365_v34, 0.0 }
 0x3b5   : > { %4155 = vst [vmem:[%s6000_s14 + $0x194] sm:$0xf] %v4606_v42  ;;  %v2367_v37 = vadd.f32 %v2366_v43, %v5952_v7  ;;  %4165 = vst [vmem:[%s6000_s14 + $0x1d0] sm:$0xf] %v4616_v46  ;;  %v3366_v56 = vadd.f32 %v5971_v40, %v3157_v63  ;;  %v2957_v39 = vmax.f32 %v2739_v29, 0.0  ;;  %v2731_v60 = vadd.f32 %v6334_v57, %v5950_v55  ;;  %v2372_v8 = vpop.f32.mrf.mxu1 }
 0x3b6   : > { %4138 = vst [vmem:[%s6000_s14 + $0x12c] sm:$0xff] %v4589_v48  ;;  %v3335_v58 = vadd.f32 %v5979_v32, %v3126_v51  ;;  %v3128_v62 = vmul.f32 %v5959_v14, %v2919_v26  ;;  %v2371_v0 = vadd.f32 %v2370_v23, %v5945_v38  ;;  %v2752_v45 = vadd.f32 %v6342_v30, %v5950_v55 }
 0x3b7   : > { %v2920_v1 = vmax.f32 %v2367_v37, 0.0  ;;  %v4612_v3 = vpack.c.bf16 %v3366_v56, %v3366_v56  ;;  %v3166_v44 = vmul.f32 %v5964_v17, %v2957_v39  ;;  %v2951_v2 = vmax.f32 %v2731_v60, 0.0  ;;  %v2374_v54 = vpop.f32.mrf.mxu1  ;;  %v2762_v60 = vpop.f32.mrf.mxu0 }
 0x3b8   : > { %v4591_v22 = vpack.c.bf16 %v3335_v58, %v3334_v50  ;;  %v3337_v57 = vadd.f32 %v5966_v20, %v3128_v62  ;;  %v2922_v21 = vmax.f32 %v2371_v0, 0.0  ;;  %v2373_v13 = vadd.f32 %v2372_v8, %v5952_v7 }
 0x3b9   : > { %v3129_v52 = vmul.f32 %v5969_v12, %v2920_v1  ;;  %4161 = vst [vmem:[%s6000_s14 + $0x1b8] sm:$0xf] %v4612_v3  ;;  %v3375_v30 = vadd.f32 %v5971_v40, %v3166_v44  ;;  %v3160_v47 = vmul.f32 %v5964_v17, %v2951_v2  ;;  %v2966_v18 = vmax.f32 %v2752_v45, 0.0  ;;  %v2376_v53 = vpop.f32.mrf.mxu1  ;;  %v6457_v44 = vpop.f32.mrf.mxu0 }
 0x3ba   : > { %4140 = vst [vmem:[%s6000_s14 + $0x138] sm:$0xff] %v4591_v22  ;;  %v3131_v4 = vmul.f32 %v5959_v14, %v2922_v21  ;;  %v2923_v5 = vmax.f32 %v2373_v13, 0.0  ;;  %v2375_v10 = vadd.f32 %v2374_v54, %v5945_v38  ;;  %v2744_v15 = vadd.f32 %v6360_v49, %v5950_v55 }
 0x3bb   : > { %v3338_v16 = vadd.f32 %v5979_v32, %v3129_v52  ;;  %v4618_v19 = vpack.c.bf16 %v3375_v30, %v3375_v30  ;;  %v3369_v6 = vadd.f32 %v5971_v40, %v3160_v47  ;;  %v3175_v33 = vmul.f32 %v5964_v17, %v2966_v18  ;;  %v2380_v35 = vpop.f32.mrf.mxu1 }
 0x3bc   : > { %v3340_v24 = vadd.f32 %v5966_v20, %v3131_v4  ;;  %v3132_v11 = vmul.f32 %v5969_v12, %v2923_v5  ;;  %v2925_v25 = vmax.f32 %v2375_v10, 0.0  ;;  %v2377_v27 = vadd.f32 %v2376_v53, %v5952_v7 }
 0x3bd   : > { %v4593_v49 = vpack.c.bf16 %v3338_v16, %v3337_v57  ;;  %4167 = vst [vmem:[%s6000_s14 + $0x1dc] sm:$0xf] %v4618_v19  ;;  %v4614_v41 = vpack.c.bf16 %v3369_v6, %v3369_v6  ;;  %v3384_v31 = vadd.f32 %v5971_v40, %v3175_v33  ;;  %v2960_v34 = vmax.f32 %v2744_v15, 0.0  ;;  %v2382_v29 = vpop.f32.mrf.mxu1  ;;  %v6472_v6 = vpop.f32.mrf.mxu0 }
 0x3be   : > { %v3341_v42 = vadd.f32 %v5979_v32, %v3132_v11  ;;  %v3134_v43 = vmul.f32 %v5959_v14, %v2925_v25  ;;  %v2926_v46 = vmax.f32 %v2377_v27, 0.0  ;;  %v2381_v63 = vadd.f32 %v2380_v35, %v5945_v38 }
 0x3bf   : > { %4142 = vst [vmem:[%s6000_s14 + $0x144] sm:$0xff] %v4593_v49  ;;  %4163 = vst [vmem:[%s6000_s14 + $0x1c4] sm:$0xf] %v4614_v41  ;;  %v4624_v48 = vpack.c.bf16 %v3384_v31, %v3384_v31  ;;  %v3169_v50 = vmul.f32 %v5964_v17, %v2960_v34  ;;  %v2755_v51 = vadd.f32 %v6376_v36, %v5950_v55  ;;  %v2384_v62 = vpop.f32.mrf.mxu1 }
 0x3c0   : > { %v2747_v26 = vadd.f32 %v6390_v59, %v5950_v55  ;;  %v4595_v37 = vpack.c.bf16 %v3341_v42, %v3340_v24  ;;  %v3343_v23 = vadd.f32 %v5966_v20, %v3134_v43  ;;  %v3135_v56 = vmul.f32 %v5969_v12, %v2926_v46 }
 0x3c1   : > { %v2928_v39 = vmax.f32 %v2381_v63, 0.0  ;;  %v2383_v58 = vadd.f32 %v2382_v29, %v5952_v7  ;;  %4173 = vst [vmem:[%s6000_s14 + $0x200] sm:$0xf] %v4624_v48  ;;  %v3378_v0 = vadd.f32 %v5971_v40, %v3169_v50  ;;  %v2969_v45 = vmax.f32 %v2755_v51, 0.0  ;;  %v2386_v22 = vpop.f32.mrf.mxu1  ;;  %v5113_v51 = vpop.f32.mrf.mxu0 }
 0x3c2   : > { %v2963_v1 = vmax.f32 %v2747_v26, 0.0  ;;  %4144 = vst [vmem:[%s6000_s14 + $0x150] sm:$0xff] %v4595_v37  ;;  %v3344_v36 = vadd.f32 %v5979_v32, %v3135_v56  ;;  %v2385_v8 = vadd.f32 %v2384_v62, %v5945_v38  ;;  %v2768_v3 = vadd.f32 %v6398_v61, %v5950_v55 }
 0x3c3   : > { %v3137_v59 = vmul.f32 %v5959_v14, %v2928_v39  ;;  %v2929_v2 = vmax.f32 %v2383_v58, 0.0  ;;  %v4620_v57 = vpack.c.bf16 %v3378_v0, %v3378_v0  ;;  %v3178_v21 = vmul.f32 %v5964_v17, %v2969_v45  ;;  %v2390_v4 = vpop.f32.mrf.mxu1 }
 0x3c4   : > { %v3172_v13 = vmul.f32 %v5964_v17, %v2963_v1  ;;  %v4597_v52 = vpack.c.bf16 %v3344_v36, %v3343_v23  ;;  %v2931_v30 = vmax.f32 %v2385_v8, 0.0  ;;  %v2387_v47 = vadd.f32 %v2386_v22, %v5952_v7 }
 0x3c5   : > { %v3346_v54 = vadd.f32 %v5966_v20, %v3137_v59  ;;  %v3138_v18 = vmul.f32 %v5969_v12, %v2929_v2  ;;  %4169 = vst [vmem:[%s6000_s14 + $0x1e8] sm:$0xf] %v4620_v57  ;;  %v3387_v61 = vadd.f32 %v5971_v40, %v3178_v21  ;;  %v2978_v10 = vmax.f32 %v2768_v3, 0.0  ;;  %v2392_v24 = vpop.f32.mrf.mxu1  ;;  %v2778_v57 = vpop.f32.mrf.mxu0 }
 0x3c6   : > { %v3381_v5 = vadd.f32 %v5971_v40, %v3172_v13  ;;  %4146 = vst [vmem:[%s6000_s14 + $0x15c] sm:$0xff] %v4597_v52  ;;  %v3140_v15 = vmul.f32 %v5959_v14, %v2931_v30  ;;  %v2932_v16 = vmax.f32 %v2387_v47, 0.0  ;;  %v2391_v53 = vadd.f32 %v2390_v4, %v5945_v38 }
 0x3c7   : > { %v2760_v19 = vadd.f32 %v6415_v9, %v5950_v55  ;;  %v3347_v33 = vadd.f32 %v5979_v32, %v3138_v18  ;;  %v4626_v11 = vpack.c.bf16 %v3387_v61, %v3387_v61  ;;  %v3187_v27 = vmul.f32 %v5964_v17, %v2978_v10  ;;  %v2394_v42 = vpop.f32.mrf.mxu1 }
 0x3c8   : > { %v4622_v25 = vpack.c.bf16 %v3381_v5, %v3381_v5  ;;  %v3349_v49 = vadd.f32 %v5966_v20, %v3140_v15  ;;  %v3141_v35 = vmul.f32 %v5969_v12, %v2932_v16  ;;  %v2934_v41 = vmax.f32 %v2391_v53, 0.0  ;;  %v5116_v5 = vpop.f32.mrf.mxu0 }
 0x3c9   : > { %v2393_v31 = vadd.f32 %v2392_v24, %v5952_v7  ;;  %v4599_v34 = vpack.c.bf16 %v3347_v33, %v3346_v54  ;;  %4175 = vst [vmem:[%s6000_s14 + $0x20c] sm:$0xf] %v4626_v11  ;;  %v3396_v9 = vadd.f32 %v5971_v40, %v3187_v27  ;;  %v2972_v43 = vmax.f32 %v2760_v19, 0.0  ;;  %v2396_v26 = vpop.f32.mrf.mxu1 }
 0x3ca   : > { %4171 = vst [vmem:[%s6000_s14 + $0x1f4] sm:$0xf] %v4622_v25  ;;  %v2771_v46 = vadd.f32 %v6432_v28, %v5950_v55  ;;  %v3350_v63 = vadd.f32 %v5979_v32, %v3141_v35  ;;  %v3143_v29 = vmul.f32 %v5959_v14, %v2934_v41  ;;  %v2395_v50 = vadd.f32 %v2394_v42, %v5945_v38 }
 0x3cb   : > { %v2935_v48 = vmax.f32 %v2393_v31, 0.0  ;;  %4148 = vst [vmem:[%s6000_s14 + $0x168] sm:$0xff] %v4599_v34  ;;  %v4632_v37 = vpack.c.bf16 %v3396_v9, %v3396_v9  ;;  %v3181_v23 = vmul.f32 %v5964_v17, %v2972_v43  ;;  %v2763_v39 = vadd.f32 %v2762_v60, %v5950_v55  ;;  %v2400_v1 = vpop.f32.mrf.mxu1  ;;  %v2791_v43 = vpop.f32.mrf.mxu0 }
 0x3cc   : > { %v2981_v56 = vmax.f32 %v2771_v46, 0.0  ;;  %v4601_v58 = vpack.c.bf16 %v3350_v63, %v3349_v49  ;;  %v3352_v28 = vadd.f32 %v5966_v20, %v3143_v29  ;;  %v2937_v0 = vmax.f32 %v2395_v50, 0.0 }
 0x3cd   : > { %v3144_v62 = vmul.f32 %v5969_v12, %v2935_v48  ;;  %v2397_v45 = vadd.f32 %v2396_v26, %v5952_v7  ;;  %4181 = vst [vmem:[%s6000_s14 + $0x230] sm:$0xf] %v4632_v37  ;;  %v3390_v36 = vadd.f32 %v5971_v40, %v3181_v23  ;;  %v2975_v8 = vmax.f32 %v2763_v39, 0.0  ;;  %v2402_v13 = vpop.f32.mrf.mxu1 }
 0x3ce   : > { %v3190_v59 = vmul.f32 %v5964_v17, %v2981_v56  ;;  %4150 = vst [vmem:[%s6000_s14 + $0x174] sm:$0xff] %v4601_v58  ;;  %v3146_v60 = vmul.f32 %v5959_v14, %v2937_v0  ;;  %v2401_v2 = vadd.f32 %v2400_v1, %v5945_v38  ;;  %v2784_v22 = vadd.f32 %v6457_v44, %v5950_v55 }
 0x3cf   : > { %v3353_v3 = vadd.f32 %v5979_v32, %v3144_v62  ;;  %v2938_v21 = vmax.f32 %v2397_v45, 0.0  ;;  %v4628_v52 = vpack.c.bf16 %v3390_v36, %v3390_v36  ;;  %v3184_v30 = vmul.f32 %v5964_v17, %v2975_v8  ;;  %v2404_v44 = vpop.f32.mrf.mxu1  ;;  %v5117_v36 = vpop.f32.mrf.mxu0 }
 0x3d0   : > { %v3399_v54 = vadd.f32 %v5971_v40, %v3190_v59  ;;  %v3355_v18 = vadd.f32 %v5966_v20, %v3146_v60  ;;  %v2940_v4 = vmax.f32 %v2401_v2, 0.0  ;;  %v2403_v61 = vadd.f32 %v2402_v13, %v5952_v7 }
 0x3d1   : > { %v4603_v47 = vpack.c.bf16 %v3353_v3, %v3352_v28  ;;  %v3147_v10 = vmul.f32 %v5969_v12, %v2938_v21  ;;  %4177 = vst [vmem:[%s6000_s14 + $0x218] sm:$0xf] %v4628_v52  ;;  %v3393_v16 = vadd.f32 %v5971_v40, %v3184_v30  ;;  %v2990_v53 = vmax.f32 %v2784_v22, 0.0  ;;  %v2406_v27 = vpop.f32.mrf.mxu1 }
 0x3d2   : > { %v4634_v15 = vpack.c.bf16 %v3399_v54, %v3399_v54  ;;  %v3149_v19 = vmul.f32 %v5959_v14, %v2940_v4  ;;  %v2941_v33 = vmax.f32 %v2403_v61, 0.0  ;;  %v2405_v24 = vadd.f32 %v2404_v44, %v5945_v38 }
 0x3d3   : > { %4152 = vst [vmem:[%s6000_s14 + $0x180] sm:$0xff] %v4603_v47  ;;  %v2776_v11 = vadd.f32 %v6472_v6, %v5950_v55  ;;  %v3356_v25 = vadd.f32 %v5979_v32, %v3147_v10  ;;  %v4630_v49 = vpack.c.bf16 %v3393_v16, %v3393_v16  ;;  %v3199_v35 = vmul.f32 %v5964_v17, %v2990_v53  ;;  %v2410_v6 = vpop.f32.mrf.mxu1 }
 0x3d4   : > { %4183 = vst [vmem:[%s6000_s14 + $0x23c] sm:$0xf] %v4634_v15  ;;  %v2787_v41 = vadd.f32 %v5113_v51, %v5950_v55  ;;  %v3358_v31 = vadd.f32 %v5966_v20, %v3149_v19  ;;  %v3150_v34 = vmul.f32 %v5969_v12, %v2941_v33  ;;  %v2943_v42 = vmax.f32 %v2405_v24, 0.0  ;;  %v2794_v15 = vpop.f32.mrf.mxu0 }
 0x3d5   : > { %v2407_v9 = vadd.f32 %v2406_v27, %v5952_v7  ;;  %v4605_v46 = vpack.c.bf16 %v3356_v25, %v3355_v18  ;;  %4179 = vst [vmem:[%s6000_s14 + $0x224] sm:$0xf] %v4630_v49  ;;  %v3408_v63 = vadd.f32 %v5971_v40, %v3199_v35  ;;  %v2984_v29 = vmax.f32 %v2776_v11, 0.0  ;;  %v2412_v23 = vpop.f32.mrf.mxu1 }
 0x3d6   : > { %v2993_v48 = vmax.f32 %v2787_v41, 0.0  ;;  %v3359_v50 = vadd.f32 %v5979_v32, %v3150_v34  ;;  %v3152_v51 = vmul.f32 %v5959_v14, %v2943_v42  ;;  %v2411_v37 = vadd.f32 %v2410_v6, %v5945_v38  ;;  %v5120_v49 = vpop.f32.mrf.mxu0 }
 0x3d7   : > { %v2944_v26 = vmax.f32 %v2407_v9, 0.0  ;;  %4154 = vst [vmem:[%s6000_s14 + $0x18c] sm:$0xff] %v4605_v46  ;;  %v4640_v56 = vpack.c.bf16 %v3408_v63, %v3408_v63  ;;  %v3193_v39 = vmul.f32 %v5964_v17, %v2984_v29  ;;  %v2779_v28 = vadd.f32 %v2778_v57, %v5950_v55  ;;  %v2414_v8 = vpop.f32.mrf.mxu1 }
 0x3d8   : > { %v3202_v58 = vmul.f32 %v5964_v17, %v2993_v48  ;;  %v4607_v62 = vpack.c.bf16 %v3359_v50, %v3358_v31  ;;  %v3361_v0 = vadd.f32 %v5966_v20, %v3152_v51  ;;  %v2946_v1 = vmax.f32 %v2411_v37, 0.0 }
 0x3d9   : > { %v3153_v45 = vmul.f32 %v5969_v12, %v2944_v26  ;;  %v2413_v59 = vadd.f32 %v2412_v23, %v5952_v7  ;;  %4189 = vst [vmem:[%s6000_s14 + $0x260] sm:$0xf] %v4640_v56  ;;  %v3402_v3 = vadd.f32 %v5971_v40, %v3193_v39  ;;  %v2987_v2 = vmax.f32 %v2779_v28, 0.0  ;;  %v2416_v54 = vpop.f32.mrf.mxu1  ;;  %v2807_v39 = vpop.f32.mrf.mxu0 }
 0x3da   : > { %v3411_v60 = vadd.f32 %v5971_v40, %v3202_v58  ;;  %4156 = vst [vmem:[%s6000_s14 + $0x198] sm:$0xff] %v4607_v62  ;;  %v3155_v57 = vmul.f32 %v5959_v14, %v2946_v1  ;;  %v2415_v21 = vadd.f32 %v2414_v8, %v5945_v38  ;;  %v2800_v13 = vadd.f32 %v5116_v5, %v5950_v55 }
 0x3db   : > { %v3362_v22 = vadd.f32 %v5979_v32, %v3153_v45  ;;  %v2947_v52 = vmax.f32 %v2413_v59, 0.0  ;;  %v4636_v30 = vpack.c.bf16 %v3402_v3, %v3402_v3  ;;  %v3196_v18 = vmul.f32 %v5964_v17, %v2987_v2  ;;  %v2420_v53 = vpop.f32.mrf.mxu1 }
 0x3dc   : > { %v4642_v47 = vpack.c.bf16 %v3411_v60, %v3411_v60  ;;  %v3364_v61 = vadd.f32 %v5966_v20, %v3155_v57  ;;  %v2949_v10 = vmax.f32 %v2415_v21, 0.0  ;;  %v2417_v44 = vadd.f32 %v2416_v54, %v5952_v7 }
 0x3dd   : > { %v4609_v4 = vpack.c.bf16 %v3362_v22, %v3361_v0  ;;  %v3156_v16 = vmul.f32 %v5969_v12, %v2947_v52  ;;  %4185 = vst [vmem:[%s6000_s14 + $0x248] sm:$0xf] %v4636_v30  ;;  %v3405_v5 = vadd.f32 %v5971_v40, %v3196_v18  ;;  %v3002_v19 = vmax.f32 %v2800_v13, 0.0  ;;  %v2422_v41 = vpop.f32.mrf.mxu1  ;;  %v5121_v30 = vpop.f32.mrf.mxu0 }
 0x3de   : > { %4191 = vst [vmem:[%s6000_s14 + $0x26c] sm:$0xf] %v4642_v47  ;;  %v2792_v33 = vadd.f32 %v2791_v43, %v5950_v55  ;;  %v3158_v24 = vmul.f32 %v5959_v14, %v2949_v10  ;;  %v2950_v11 = vmax.f32 %v2417_v44, 0.0  ;;  %v2421_v25 = vadd.f32 %v2420_v53, %v5945_v38 }
 0x3df   : > { %4158 = vst [vmem:[%s6000_s14 + $0x1a4] sm:$0xff] %v4609_v4  ;;  %v2803_v27 = vadd.f32 %v5117_v36, %v5950_v55  ;;  %v3365_v35 = vadd.f32 %v5979_v32, %v3156_v16  ;;  %v4638_v31 = vpack.c.bf16 %v3405_v5, %v3405_v5  ;;  %v3211_v34 = vmul.f32 %v5964_v17, %v3002_v19  ;;  %v2424_v29 = vpop.f32.mrf.mxu1 }
 0x3e0   : > { %v2996_v42 = vmax.f32 %v2792_v33, 0.0  ;;  %v3367_v9 = vadd.f32 %v5966_v20, %v3158_v24  ;;  %v3159_v43 = vmul.f32 %v5969_v12, %v2950_v11  ;;  %v2952_v46 = vmax.f32 %v2421_v25, 0.0 }
 0x3e1   : > { %v2423_v6 = vadd.f32 %v2422_v41, %v5952_v7  ;;  %v4611_v63 = vpack.c.bf16 %v3365_v35, %v3364_v61  ;;  %4187 = vst [vmem:[%s6000_s14 + $0x254] sm:$0xf] %v4638_v31  ;;  %v3420_v48 = vadd.f32 %v5971_v40, %v3211_v34  ;;  %v3005_v51 = vmax.f32 %v2803_v27, 0.0  ;;  %v2426_v58 = vpop.f32.mrf.mxu1  ;;  %v2810_v41 = vpop.f32.mrf.mxu0 }
 0x3e2   : > { %v3205_v50 = vmul.f32 %v5964_v17, %v2996_v42  ;;  %v3368_v26 = vadd.f32 %v5979_v32, %v3159_v43  ;;  %v3161_v37 = vmul.f32 %v5959_v14, %v2952_v46  ;;  %v2425_v56 = vadd.f32 %v2424_v29, %v5945_v38 }
 0x3e3   : > { %v2953_v23 = vmax.f32 %v2423_v6, 0.0  ;;  %4160 = vst [vmem:[%s6000_s14 + $0x1b0] sm:$0xff] %v4611_v63  ;;  %v4648_v28 = vpack.c.bf16 %v3420_v48, %v3420_v48  ;;  %v3214_v0 = vmul.f32 %v5964_v17, %v3005_v51  ;;  %v2795_v45 = vadd.f32 %v2794_v15, %v5950_v55  ;;  %v2430_v60 = vpop.f32.mrf.mxu1  ;;  %v5124_v48 = vpop.f32.mrf.mxu0 }
 0x3e4   : > { %v3414_v62 = vadd.f32 %v5971_v40, %v3205_v50  ;;  %v4613_v1 = vpack.c.bf16 %v3368_v26, %v3367_v9  ;;  %v3370_v36 = vadd.f32 %v5966_v20, %v3161_v37  ;;  %v2955_v8 = vmax.f32 %v2425_v56, 0.0 }
 0x3e5   : > { %v3162_v59 = vmul.f32 %v5969_v12, %v2953_v23  ;;  %v2427_v3 = vadd.f32 %v2426_v58, %v5952_v7  ;;  %4197 = vst [vmem:[%s6000_s14 + $0x290] sm:$0xf] %v4648_v28  ;;  %v3423_v22 = vadd.f32 %v5971_v40, %v3214_v0  ;;  %v2999_v57 = vmax.f32 %v2795_v45, 0.0  ;;  %v2432_v18 = vpop.f32.mrf.mxu1 }
 0x3e6   : > { %v4644_v2 = vpack.c.bf16 %v3414_v62, %v3414_v62  ;;  %4162 = vst [vmem:[%s6000_s14 + $0x1bc] sm:$0xff] %v4613_v1  ;;  %v3164_v13 = vmul.f32 %v5959_v14, %v2955_v8  ;;  %v2431_v52 = vadd.f32 %v2430_v60, %v5945_v38  ;;  %v2816_v54 = vadd.f32 %v5120_v49, %v5950_v55 }
 0x3e7   : > { %v3371_v21 = vadd.f32 %v5979_v32, %v3162_v59  ;;  %v2956_v47 = vmax.f32 %v2427_v3, 0.0  ;;  %v4650_v4 = vpack.c.bf16 %v3423_v22, %v3423_v22  ;;  %v3208_v61 = vmul.f32 %v5964_v17, %v2999_v57  ;;  %v2434_v19 = vpop.f32.mrf.mxu1 }
 0x3e8   : > { %4193 = vst [vmem:[%s6000_s14 + $0x278] sm:$0xf] %v4644_v2  ;;  %v2808_v10 = vadd.f32 %v2807_v39, %v5950_v55  ;;  %v3373_v15 = vadd.f32 %v5966_v20, %v3164_v13  ;;  %v2958_v16 = vmax.f32 %v2431_v52, 0.0  ;;  %v2433_v53 = vadd.f32 %v2432_v18, %v5952_v7  ;;  %v2823_v2 = vpop.f32.mrf.mxu0 }
 0x3e9   : > { %v4615_v44 = vpack.c.bf16 %v3371_v21, %v3370_v36  ;;  %v3165_v5 = vmul.f32 %v5969_v12, %v2956_v47  ;;  %4199 = vst [vmem:[%s6000_s14 + $0x29c] sm:$0xf] %v4650_v4  ;;  %v3417_v33 = vadd.f32 %v5971_v40, %v3208_v61  ;;  %v3014_v24 = vmax.f32 %v2816_v54, 0.0  ;;  %v2436_v34 = vpop.f32.mrf.mxu1 }
 0x3ea   : > { %v3008_v11 = vmax.f32 %v2808_v10, 0.0  ;;  %v3167_v25 = vmul.f32 %v5959_v14, %v2958_v16  ;;  %v2959_v27 = vmax.f32 %v2433_v53, 0.0  ;;  %v2435_v49 = vadd.f32 %v2434_v19, %v5945_v38 }
 0x3eb   : > { %4164 = vst [vmem:[%s6000_s14 + $0x1c8] sm:$0xff] %v4615_v44  ;;  %v2819_v35 = vadd.f32 %v5121_v30, %v5950_v55  ;;  %v3374_v31 = vadd.f32 %v5979_v32, %v3165_v5  ;;  %v4646_v42 = vpack.c.bf16 %v3417_v33, %v3417_v33  ;;  %v3223_v9 = vmul.f32 %v5964_v17, %v3014_v24  ;;  %v2440_v51 = vpop.f32.mrf.mxu1  ;;  %v5125_v33 = vpop.f32.mrf.mxu0 }
 0x3ec   : > { %v3217_v43 = vmul.f32 %v5964_v17, %v3008_v11  ;;  %v3376_v46 = vadd.f32 %v5966_v20, %v3167_v25  ;;  %v3168_v6 = vmul.f32 %v5969_v12, %v2959_v27  ;;  %v2961_v63 = vmax.f32 %v2435_v49, 0.0 }
 0x3ed   : > { %v2437_v29 = vadd.f32 %v2436_v34, %v5952_v7  ;;  %v4617_v50 = vpack.c.bf16 %v3374_v31, %v3373_v15  ;;  %4195 = vst [vmem:[%s6000_s14 + $0x284] sm:$0xf] %v4646_v42  ;;  %v3432_v26 = vadd.f32 %v5971_v40, %v3223_v9  ;;  %v3017_v23 = vmax.f32 %v2819_v35, 0.0  ;;  %v2442_v62 = vpop.f32.mrf.mxu1 }
 0x3ee   : > { %v3426_v37 = vadd.f32 %v5971_v40, %v3217_v43  ;;  %v3377_v56 = vadd.f32 %v5979_v32, %v3168_v6  ;;  %v3170_v39 = vmul.f32 %v5959_v14, %v2961_v63  ;;  %v2441_v28 = vadd.f32 %v2440_v51, %v5945_v38  ;;  %v2826_v51 = vpop.f32.mrf.mxu0 }
 0x3ef   : > { %v2962_v58 = vmax.f32 %v2437_v29, 0.0  ;;  %4166 = vst [vmem:[%s6000_s14 + $0x1d4] sm:$0xff] %v4617_v50  ;;  %v4656_v0 = vpack.c.bf16 %v3432_v26, %v3432_v26  ;;  %v3226_v1 = vmul.f32 %v5964_v17, %v3017_v23  ;;  %v2811_v36 = vadd.f32 %v2810_v41, %v5950_v55  ;;  %v2444_v57 = vpop.f32.mrf.mxu1 }
 0x3f0   : > { %v4652_v45 = vpack.c.bf16 %v3426_v37, %v3426_v37  ;;  %v4619_v59 = vpack.c.bf16 %v3377_v56, %v3376_v46  ;;  %v3379_v8 = vadd.f32 %v5966_v20, %v3170_v39  ;;  %v2964_v60 = vmax.f32 %v2441_v28, 0.0 }
 0x3f1   : > { %v3171_v3 = vmul.f32 %v5969_v12, %v2962_v58  ;;  %v2443_v22 = vadd.f32 %v2442_v62, %v5952_v7  ;;  %4205 = vst [vmem:[%s6000_s14 + $0x2c0] sm:$0xf] %v4656_v0  ;;  %v3435_v21 = vadd.f32 %v5971_v40, %v3226_v1  ;;  %v3011_v13 = vmax.f32 %v2811_v36, 0.0  ;;  %v2446_v61 = vpop.f32.mrf.mxu1 }
 0x3f2   : > { %4201 = vst [vmem:[%s6000_s14 + $0x2a8] sm:$0xf] %v4652_v45  ;;  %v2832_v52 = vadd.f32 %v5124_v48, %v5950_v55  ;;  %4168 = vst [vmem:[%s6000_s14 + $0x1e0] sm:$0xff] %v4619_v59  ;;  %v3173_v30 = vmul.f32 %v5959_v14, %v2964_v60  ;;  %v2445_v47 = vadd.f32 %v2444_v57, %v5945_v38 }
 0x3f3   : > { %v3380_v54 = vadd.f32 %v5979_v32, %v3171_v3  ;;  %v2824_v18 = vadd.f32 %v2823_v2, %v5950_v55  ;;  %v2965_v4 = vmax.f32 %v2443_v22, 0.0  ;;  %v4658_v10 = vpack.c.bf16 %v3435_v21, %v3435_v21  ;;  %v2450_v11 = vpop.f32.mrf.mxu1 }
 0x3f4   : > { %v3220_v44 = vmul.f32 %v5964_v17, %v3011_v13  ;;  %v3026_v15 = vmax.f32 %v2832_v52, 0.0  ;;  %v3382_v53 = vadd.f32 %v5966_v20, %v3173_v30  ;;  %v2967_v5 = vmax.f32 %v2445_v47, 0.0 }
 0x3f5   : > { %v4621_v16 = vpack.c.bf16 %v3380_v54, %v3379_v8  ;;  %v2447_v19 = vadd.f32 %v2446_v61, %v5952_v7  ;;  %v3174_v24 = vmul.f32 %v5969_v12, %v2965_v4  ;;  %4207 = vst [vmem:[%s6000_s14 + $0x2cc] sm:$0xf] %v4658_v10  ;;  %v3020_v49 = vmax.f32 %v2824_v18, 0.0  ;;  %v2452_v9 = vpop.f32.mrf.mxu1 }
 0x3f6   : > { %v3429_v25 = vadd.f32 %v5971_v40, %v3220_v44  ;;  %v3235_v27 = vmul.f32 %v5964_v17, %v3026_v15  ;;  %v3176_v35 = vmul.f32 %v5959_v14, %v2967_v5  ;;  %v2451_v31 = vadd.f32 %v2450_v11, %v5945_v38 }
 0x3f7   : > { %4170 = vst [vmem:[%s6000_s14 + $0x1ec] sm:$0xff] %v4621_v16  ;;  %v2968_v41 = vmax.f32 %v2447_v19, 0.0  ;;  %v2835_v34 = vadd.f32 %v5125_v33, %v5950_v55  ;;  %v3383_v42 = vadd.f32 %v5979_v32, %v3174_v24  ;;  %v3229_v6 = vmul.f32 %v5964_v17, %v3020_v49  ;;  %v2454_v37 = vpop.f32.mrf.mxu1 }
 0x3f8   : > { %v4654_v43 = vpack.c.bf16 %v3429_v25, %v3429_v25  ;;  %v3444_v46 = vadd.f32 %v5971_v40, %v3235_v27  ;;  %v3385_v63 = vadd.f32 %v5966_v20, %v3176_v35  ;;  %v2970_v48 = vmax.f32 %v2451_v31, 0.0 }
 0x3f9   : > { %v3177_v29 = vmul.f32 %v5969_v12, %v2968_v41  ;;  %v2453_v50 = vadd.f32 %v2452_v9, %v5952_v7  ;;  %v4623_v26 = vpack.c.bf16 %v3383_v42, %v3382_v53  ;;  %v3438_v56 = vadd.f32 %v5971_v40, %v3229_v6  ;;  %v2456_v45 = vpop.f32.mrf.mxu1 }
 0x3fa   : > { %4203 = vst [vmem:[%s6000_s14 + $0x2b4] sm:$0xf] %v4654_v43  ;;  %v4664_v23 = vpack.c.bf16 %v3444_v46, %v3444_v46  ;;  %v3029_v39 = vmax.f32 %v2835_v34, 0.0  ;;  %v3179_v28 = vmul.f32 %v5959_v14, %v2970_v48  ;;  %v2455_v0 = vadd.f32 %v2454_v37, %v5945_v38 }
 0x3fb   : > { %v3386_v58 = vadd.f32 %v5979_v32, %v3177_v29  ;;  %v2971_v62 = vmax.f32 %v2453_v50, 0.0  ;;  %4172 = vst [vmem:[%s6000_s14 + $0x1f8] sm:$0xff] %v4623_v26  ;;  %v4660_v1 = vpack.c.bf16 %v3438_v56, %v3438_v56  ;;  %v2827_v59 = vadd.f32 %v2826_v51, %v5950_v55  ;;  %v2460_v22 = vpop.f32.mrf.mxu1 }
 0x3fc   : > { %4213 = vst [vmem:[%s6000_s14 + $0x2f0] sm:$0xf] %v4664_v23  ;;  %v3238_v36 = vmul.f32 %v5964_v17, %v3029_v39  ;;  %v2973_v60 = vmax.f32 %v2455_v0, 0.0  ;;  %v2457_v2 = vadd.f32 %v2456_v45, %v5952_v7  ;;  %v3388_v13 = vadd.f32 %v5966_v20, %v3179_v28 }
 0x3fd   : > { %v4625_v8 = vpack.c.bf16 %v3386_v58, %v3385_v63  ;;  %v3180_v3 = vmul.f32 %v5969_v12, %v2971_v62  ;;  %4209 = vst [vmem:[%s6000_s14 + $0x2d8] sm:$0xf] %v4660_v1  ;;  %v3023_v21 = vmax.f32 %v2827_v59, 0.0  ;;  %v2461_v55 = vadd.f32 %v2460_v22, %v5945_v38  ;;  %v2462_v47 = vpop.f32.mrf.mxu1 }
 0x3fe   : > { %v3447_v57 = vadd.f32 %v5971_v40, %v3238_v36  ;;  %v3182_v54 = vmul.f32 %v5959_v14, %v2973_v60  ;;  %v2974_v30 = vmax.f32 %v2457_v2, 0.0  ;;  %v2463_v44 = vadd.f32 %v2462_v47, %v5952_v7 }
 0x3ff   : > { %4174 = vst [vmem:[%s6000_s14 + $0x204] sm:$0xff] %v4625_v8  ;;  %v3389_v52 = vadd.f32 %v5979_v32, %v3180_v3  ;;  %v3232_v4 = vmul.f32 %v5964_v17, %v3023_v21  ;;  %v2976_v10 = vmax.f32 %v2461_v55, 0.0  ;;  %v2464_v16 = vpop.f32.mrf.mxu1 }
 0x400   : > { %v4666_v18 = vpack.c.bf16 %v3447_v57, %v3447_v57  ;;  %v3183_v15 = vmul.f32 %v5969_v12, %v2974_v30  ;;  %v2977_v19 = vmax.f32 %v2463_v44, 0.0  ;;  %v2465_v33 = vadd.f32 %v2464_v16, %v5945_v38 }
 0x401   : > { %v4627_v61 = vpack.c.bf16 %v3389_v52, %v3388_v13  ;;  %v3441_v53 = vadd.f32 %v5971_v40, %v3232_v4  ;;  %v3185_v5 = vmul.f32 %v5959_v14, %v2976_v10  ;;  %v3391_v17 = vadd.f32 %v5966_v20, %v3182_v54  ;;  %v2466_v11 = vpop.f32.mrf.mxu1 }
 0x402   : > { %4215 = vst [vmem:[%s6000_s14 + $0x2fc] sm:$0xf] %v4666_v18  ;;  %v3392_v24 = vadd.f32 %v5979_v32, %v3183_v15  ;;  %v3186_v27 = vmul.f32 %v5969_v12, %v2977_v19  ;;  %v2979_v49 = vmax.f32 %v2465_v33, 0.0  ;;  %v2467_v35 = vadd.f32 %v2466_v11, %v5952_v7 }
 0x403   : > { %4176 = vst [vmem:[%s6000_s14 + $0x210] sm:$0xff] %v4627_v61  ;;  %v4662_v25 = vpack.c.bf16 %v3441_v53, %v3441_v53  ;;  %v3394_v41 = vadd.f32 %v5966_v20, %v3185_v5  ;;  %v2470_v31 = vpop.f32.mrf.mxu1 }
 0x404   : > { %v4629_v40 = vpack.c.bf16 %v3392_v24, %v3391_v17  ;;  %v3395_v34 = vadd.f32 %v5979_v32, %v3186_v27  ;;  %v3188_v42 = vmul.f32 %v5959_v14, %v2979_v49  ;;  %v2980_v9 = vmax.f32 %v2467_v35, 0.0 }
 0x405   : > { %4211 = vst [vmem:[%s6000_s14 + $0x2e4] sm:$0xf] %v4662_v25  ;;  %v2471_v43 = vadd.f32 %v2470_v31, %v5945_v38  ;;  %v2472_v46 = vpop.f32.mrf.mxu1 }
 0x406   : > { %4178 = vst [vmem:[%s6000_s14 + $0x21c] sm:$0xff] %v4629_v40  ;;  %v4631_v6 = vpack.c.bf16 %v3395_v34, %v3394_v41  ;;  %v3189_v63 = vmul.f32 %v5969_v12, %v2980_v9  ;;  %v2473_v48 = vadd.f32 %v2472_v46, %v5952_v7  ;;  %v3397_v51 = vadd.f32 %v5966_v20, %v3188_v42 }
 0x407   : > { %v2982_v29 = vmax.f32 %v2471_v43, 0.0  ;;  %v2474_v50 = vpop.f32.mrf.mxu1 }
 0x408   : > { %4180 = vst [vmem:[%s6000_s14 + $0x228] sm:$0xff] %v4631_v6  ;;  %v3398_v26 = vadd.f32 %v5979_v32, %v3189_v63  ;;  %v2475_v37 = vadd.f32 %v2474_v50, %v5945_v38  ;;  %v2983_v56 = vmax.f32 %v2473_v48, 0.0 }
 0x409   : > { %v3191_v23 = vmul.f32 %v5959_v14, %v2982_v29  ;;  %v2476_v39 = vpop.f32.mrf.mxu1 }
 0x40a   : > { %v4633_v58 = vpack.c.bf16 %v3398_v26, %v3397_v51  ;;  %v2985_v28 = vmax.f32 %v2475_v37, 0.0  ;;  %v2477_v62 = vadd.f32 %v2476_v39, %v5952_v7  ;;  %v3192_v0 = vmul.f32 %v5969_v12, %v2983_v56 }
 0x40b   : > { %v2480_v45 = vpop.f32.mrf.mxu1  ;;  %v3400_v8 = vadd.f32 %v5966_v20, %v3191_v23 }
 0x40c   : > { %4182 = vst [vmem:[%s6000_s14 + $0x234] sm:$0xff] %v4633_v58  ;;  %v3194_v1 = vmul.f32 %v5959_v14, %v2985_v28  ;;  %v2986_v36 = vmax.f32 %v2477_v62, 0.0  ;;  %v2481_v59 = vadd.f32 %v2480_v45, %v5945_v38  ;;  %v3401_v3 = vadd.f32 %v5979_v32, %v3192_v0 }
 0x40d   : > { %v2482_v60 = vpop.f32.mrf.mxu1 }
 0x40e   : > { %v3195_v2 = vmul.f32 %v5969_v12, %v2986_v36  ;;  %v2988_v22 = vmax.f32 %v2481_v59, 0.0  ;;  %v2483_v57 = vadd.f32 %v2482_v60, %v5952_v7  ;;  %v4635_v21 = vpack.c.bf16 %v3401_v3, %v3400_v8 }
 0x40f   : > { %v3403_v13 = vadd.f32 %v5966_v20, %v3194_v1  ;;  %v2484_v52 = vpop.f32.mrf.mxu1 }
 0x410   : > { %v3404_v55 = vadd.f32 %v5979_v32, %v3195_v2  ;;  %v3197_v54 = vmul.f32 %v5959_v14, %v2988_v22  ;;  %v2989_v30 = vmax.f32 %v2483_v57, 0.0  ;;  %v2485_v47 = vadd.f32 %v2484_v52, %v5945_v38  ;;  %4184 = vst [vmem:[%s6000_s14 + $0x240] sm:$0xff] %v4635_v21 }
 0x411   : > { %v2486_v18 = vpop.f32.mrf.mxu1 }
 0x412   : > { %v4637_v4 = vpack.c.bf16 %v3404_v55, %v3403_v13  ;;  %v3198_v61 = vmul.f32 %v5969_v12, %v2989_v30  ;;  %v2991_v10 = vmax.f32 %v2485_v47, 0.0  ;;  %v2487_v44 = vadd.f32 %v2486_v18, %v5952_v7 }
 0x413   : > { %v2490_v15 = vpop.f32.mrf.mxu1  ;;  %v3406_v16 = vadd.f32 %v5966_v20, %v3197_v54 }
 0x414   : > { %4186 = vst [vmem:[%s6000_s14 + $0x24c] sm:$0xff] %v4637_v4  ;;  %v3407_v53 = vadd.f32 %v5979_v32, %v3198_v61  ;;  %v2491_v5 = vadd.f32 %v2490_v15, %v5945_v38  ;;  %v3200_v19 = vmul.f32 %v5959_v14, %v2991_v10  ;;  %v2992_v33 = vmax.f32 %v2487_v44, 0.0 }
 0x415   : > { %v2492_v17 = vpop.f32.mrf.mxu1 }
 0x416   : > { %v4639_v24 = vpack.c.bf16 %v3407_v53, %v3406_v16  ;;  %v2994_v11 = vmax.f32 %v2491_v5, 0.0  ;;  %v2493_v25 = vadd.f32 %v2492_v17, %v5952_v7  ;;  %v3201_v27 = vmul.f32 %v5969_v12, %v2992_v33 }
 0x417   : > { %v2494_v49 = vpop.f32.mrf.mxu1  ;;  %v3409_v31 = vadd.f32 %v5966_v20, %v3200_v19 }
 0x418   : > { %4188 = vst [vmem:[%s6000_s14 + $0x258] sm:$0xff] %v4639_v24  ;;  %v3203_v35 = vmul.f32 %v5959_v14, %v2994_v11  ;;  %v2995_v40 = vmax.f32 %v2493_v25, 0.0  ;;  %v2495_v41 = vadd.f32 %v2494_v49, %v5945_v38  ;;  %v3410_v34 = vadd.f32 %v5979_v32, %v3201_v27 }
 0x419   : > { %v2496_v42 = vpop.f32.mrf.mxu1 }
 0x41a   : > { %v3204_v9 = vmul.f32 %v5969_v12, %v2995_v40  ;;  %v2997_v43 = vmax.f32 %v2495_v41, 0.0  ;;  %v2497_v46 = vadd.f32 %v2496_v42, %v5952_v7  ;;  %v4641_v6 = vpack.c.bf16 %v3410_v34, %v3409_v31 }
 0x41b   : > { %v3412_v63 = vadd.f32 %v5966_v20, %v3203_v35  ;;  %v2500_v29 = vpop.f32.mrf.mxu1 }
 0x41c   : > { %v3413_v48 = vadd.f32 %v5979_v32, %v3204_v9  ;;  %v3206_v50 = vmul.f32 %v5959_v14, %v2997_v43  ;;  %v2998_v51 = vmax.f32 %v2497_v46, 0.0  ;;  %v2501_v26 = vadd.f32 %v2500_v29, %v5945_v38  ;;  %4190 = vst [vmem:[%s6000_s14 + $0x264] sm:$0xff] %v4641_v6 }
 0x41d   : > { %v2502_v37 = vpop.f32.mrf.mxu1 }
 0x41e   : > { %v4643_v23 = vpack.c.bf16 %v3413_v48, %v3412_v63  ;;  %v3207_v56 = vmul.f32 %v5969_v12, %v2998_v51  ;;  %v3000_v39 = vmax.f32 %v2501_v26, 0.0  ;;  %v2503_v58 = vadd.f32 %v2502_v37, %v5952_v7 }
 0x41f   : > { %v2504_v28 = vpop.f32.mrf.mxu1  ;;  %v3415_v62 = vadd.f32 %v5966_v20, %v3206_v50 }
 0x420   : > { %4192 = vst [vmem:[%s6000_s14 + $0x270] sm:$0xff] %v4643_v23  ;;  %v3416_v0 = vadd.f32 %v5979_v32, %v3207_v56  ;;  %v2505_v45 = vadd.f32 %v2504_v28, %v5945_v38  ;;  %v3209_v1 = vmul.f32 %v5959_v14, %v3000_v39  ;;  %v3001_v36 = vmax.f32 %v2503_v58, 0.0 }
 0x421   : > { %v2506_v59 = vpop.f32.mrf.mxu1 }
 0x422   : > { %v4645_v8 = vpack.c.bf16 %v3416_v0, %v3415_v62  ;;  %v3003_v3 = vmax.f32 %v2505_v45, 0.0  ;;  %v2507_v60 = vadd.f32 %v2506_v59, %v5952_v7  ;;  %v3210_v2 = vmul.f32 %v5969_v12, %v3001_v36 }
 0x423   : > { %v3418_v52 = vadd.f32 %v5966_v20, %v3209_v1 }
 0x424   : > { %v2510_v22 = vpop.f32.mrf.mxu1  ;;  %4194 = vst [vmem:[%s6000_s14 + $0x27c] sm:$0xff] %v4645_v8  ;;  %v3212_v57 = vmul.f32 %v5959_v14, %v3003_v3  ;;  %v3004_v21 = vmax.f32 %v2507_v60, 0.0  ;;  %v3419_v55 = vadd.f32 %v5979_v32, %v3210_v2 }
 0x425   : > { %v2511_v13 = vadd.f32 %v2510_v22, %v5945_v38 }
 0x426   : > { %v2512_v54 = vpop.f32.mrf.mxu1  ;;  %v3213_v30 = vmul.f32 %v5969_v12, %v3004_v21  ;;  %v4647_v4 = vpack.c.bf16 %v3419_v55, %v3418_v52  ;;  %v3421_v61 = vadd.f32 %v5966_v20, %v3212_v57 }
 0x427   : > { %v3006_v47 = vmax.f32 %v2511_v13, 0.0  ;;  %v2513_v18 = vadd.f32 %v2512_v54, %v5952_v7 }
 0x428   : > { %v2514_v10 = vpop.f32.mrf.mxu1  ;;  %v3422_v44 = vadd.f32 %v5979_v32, %v3213_v30  ;;  %4196 = vst [vmem:[%s6000_s14 + $0x288] sm:$0xff] %v4647_v4 }
 0x429   : > { %v3215_v15 = vmul.f32 %v5959_v14, %v3006_v47  ;;  %v3007_v16 = vmax.f32 %v2513_v18, 0.0  ;;  %v2515_v53 = vadd.f32 %v2514_v10, %v5945_v38 }
 0x42a   : > { %v2516_v5 = vpop.f32.mrf.mxu1  ;;  %v4649_v19 = vpack.c.bf16 %v3422_v44, %v3421_v61 }
 0x42b   : > { %v3216_v33 = vmul.f32 %v5969_v12, %v3007_v16  ;;  %v3009_v17 = vmax.f32 %v2515_v53, 0.0  ;;  %v2517_v24 = vadd.f32 %v2516_v5, %v5952_v7  ;;  %v3424_v25 = vadd.f32 %v5966_v20, %v3215_v15 }
 0x42c   : > { %v2520_v11 = vpop.f32.mrf.mxu1  ;;  %4198 = vst [vmem:[%s6000_s14 + $0x294] sm:$0xff] %v4649_v19 }
 0x42d   : > { %v3425_v27 = vadd.f32 %v5979_v32, %v3216_v33  ;;  %v2521_v49 = vadd.f32 %v2520_v11, %v5945_v38  ;;  %v3218_v35 = vmul.f32 %v5959_v14, %v3009_v17  ;;  %v3010_v40 = vmax.f32 %v2517_v24, 0.0 }
 0x42e   : > { %v2522_v41 = vpop.f32.mrf.mxu1 }
 0x42f   : > { %v4651_v31 = vpack.c.bf16 %v3425_v27, %v3424_v25  ;;  %v3012_v34 = vmax.f32 %v2521_v49, 0.0  ;;  %v2523_v42 = vadd.f32 %v2522_v41, %v5952_v7  ;;  %v3219_v9 = vmul.f32 %v5969_v12, %v3010_v40 }
 0x430   : > { %v2524_v43 = vpop.f32.mrf.mxu1  ;;  %v3427_v29 = vadd.f32 %v5966_v20, %v3218_v35 }
 0x431   : > { %4200 = vst [vmem:[%s6000_s14 + $0x2a0] sm:$0xff] %v4651_v31  ;;  %v3221_v46 = vmul.f32 %v5959_v14, %v3012_v34  ;;  %v3013_v6 = vmax.f32 %v2523_v42, 0.0  ;;  %v2525_v63 = vadd.f32 %v2524_v43, %v5945_v38  ;;  %v3428_v48 = vadd.f32 %v5979_v32, %v3219_v9 }
 0x432   : > { %v2526_v50 = vpop.f32.mrf.mxu1 }
 0x433   : > { %v3222_v51 = vmul.f32 %v5969_v12, %v3013_v6  ;;  %v3015_v26 = vmax.f32 %v2525_v63, 0.0  ;;  %v2527_v37 = vadd.f32 %v2526_v50, %v5952_v7  ;;  %v4653_v23 = vpack.c.bf16 %v3428_v48, %v3427_v29 }
 0x434   : > { %v3430_v56 = vadd.f32 %v5966_v20, %v3221_v46  ;;  %v2530_v39 = vpop.f32.mrf.mxu1 }
 0x435   : > { %v3431_v58 = vadd.f32 %v5979_v32, %v3222_v51  ;;  %v3224_v28 = vmul.f32 %v5959_v14, %v3015_v26  ;;  %v3016_v62 = vmax.f32 %v2527_v37, 0.0  ;;  %v2531_v0 = vadd.f32 %v2530_v39, %v5945_v38  ;;  %4202 = vst [vmem:[%s6000_s14 + $0x2ac] sm:$0xff] %v4653_v23 }
 0x436   : > { %v2532_v45 = vpop.f32.mrf.mxu1 }
 0x437   : > { %v4655_v1 = vpack.c.bf16 %v3431_v58, %v3430_v56  ;;  %v3225_v36 = vmul.f32 %v5969_v12, %v3016_v62  ;;  %v3018_v59 = vmax.f32 %v2531_v0, 0.0  ;;  %v2533_v8 = vadd.f32 %v2532_v45, %v5952_v7 }
 0x438   : > { %v2534_v3 = vpop.f32.mrf.mxu1  ;;  %v3433_v60 = vadd.f32 %v5966_v20, %v3224_v28 }
 0x439   : > { %4204 = vst [vmem:[%s6000_s14 + $0x2b8] sm:$0xff] %v4655_v1  ;;  %v3434_v2 = vadd.f32 %v5979_v32, %v3225_v36  ;;  %v2535_v22 = vadd.f32 %v2534_v3, %v5945_v38  ;;  %v3227_v57 = vmul.f32 %v5959_v14, %v3018_v59  ;;  %v3019_v21 = vmax.f32 %v2533_v8, 0.0 }
 0x43a   : > { %v2536_v13 = vpop.f32.mrf.mxu1 }
 0x43b   : > { %v4657_v52 = vpack.c.bf16 %v3434_v2, %v3433_v60  ;;  %v3021_v55 = vmax.f32 %v2535_v22, 0.0  ;;  %v2537_v54 = vadd.f32 %v2536_v13, %v5952_v7  ;;  %v3228_v30 = vmul.f32 %v5969_v12, %v3019_v21 }
 0x43c   : > { %v2540_v47 = vpop.f32.mrf.mxu1  ;;  %v3436_v10 = vadd.f32 %v5966_v20, %v3227_v57 }
 0x43d   : > { %4206 = vst [vmem:[%s6000_s14 + $0x2c4] sm:$0xff] %v4657_v52  ;;  %v3230_v18 = vmul.f32 %v5959_v14, %v3021_v55  ;;  %v3022_v4 = vmax.f32 %v2537_v54, 0.0  ;;  %v2541_v61 = vadd.f32 %v2540_v47, %v5945_v38  ;;  %v3437_v44 = vadd.f32 %v5979_v32, %v3228_v30 }
 0x43e   : > { %v2542_v15 = vpop.f32.mrf.mxu1 }
 0x43f   : > { %v3231_v16 = vmul.f32 %v5969_v12, %v3022_v4  ;;  %v3024_v53 = vmax.f32 %v2541_v61, 0.0  ;;  %v2543_v5 = vadd.f32 %v2542_v15, %v5952_v7  ;;  %v4659_v19 = vpack.c.bf16 %v3437_v44, %v3436_v10 }
 0x440   : > { %v3439_v33 = vadd.f32 %v5966_v20, %v3230_v18  ;;  %v2544_v17 = vpop.f32.mrf.mxu1 }
 0x441   : > { %v3440_v24 = vadd.f32 %v5979_v32, %v3231_v16  ;;  %v3233_v11 = vmul.f32 %v5959_v14, %v3024_v53  ;;  %v3025_v25 = vmax.f32 %v2543_v5, 0.0  ;;  %v2545_v27 = vadd.f32 %v2544_v17, %v5945_v38  ;;  %4208 = vst [vmem:[%s6000_s14 + $0x2d0] sm:$0xff] %v4659_v19 }
 0x442   : > { %v2546_v49 = vpop.f32.mrf.mxu1 }
 0x443   : > { %v4661_v35 = vpack.c.bf16 %v3440_v24, %v3439_v33  ;;  %v3234_v40 = vmul.f32 %v5969_v12, %v3025_v25  ;;  %v3027_v41 = vmax.f32 %v2545_v27, 0.0  ;;  %v2547_v31 = vadd.f32 %v2546_v49, %v5952_v7 }
 0x444   : > { %v3442_v34 = vadd.f32 %v5966_v20, %v3233_v11 }
 0x445   : > { %4210 = vst [vmem:[%s6000_s14 + $0x2dc] sm:$0xff] %v4661_v35  ;;  %v3443_v42 = vadd.f32 %v5979_v32, %v3234_v40  ;;  %v3236_v9 = vmul.f32 %v5959_v14, %v3027_v41  ;;  %v3028_v38 = vmax.f32 %v2547_v31, 0.0 }
 0x447   : > { %v4663_v43 = vpack.c.bf16 %v3443_v42, %v3442_v34  ;;  %v3237_v46 = vmul.f32 %v5969_v12, %v3028_v38  ;;  %v3445_v6 = vadd.f32 %v5966_v20, %v3236_v9 }
 0x449   : > { %4212 = vst [vmem:[%s6000_s14 + $0x2e8] sm:$0xff] %v4663_v43  ;;  %v3446_v7 = vadd.f32 %v5979_v32, %v3237_v46 }
 0x44b   : > { %v4665_v63 = vpack.c.bf16 %v3446_v7, %v3445_v6 }
 0x44d   : > { %4214 = vst [vmem:[%s6000_s14 + $0x2f4] sm:$0xff] %v4665_v63 }
 0x44e   : > { %5264 = shalt.err (!%p5261_p3)
}
 0x44f   : > { %s5265_s29 = scalar_lea.hbm %s6790_s13, 12288  ;;  %s5269_s15 = scalar_lea.hbm %s6848_s11, 24576 }
 0x450   : > { %p5266_p4 = scmp.ne.s32.totalorder %s6790_s13, %s5265_s29  ;;  %p5270_p9 = scmp.lt.s32.totalorder %s6790_s13, %s6848_s11 }
 0x451   : > { %p5271_p10 = scmp.lt.s32.totalorder %s5269_s15, %s5265_s29 }
 0x452   : > { %p5267_p7 = pnand %p5266_p4, %p5415_p5 }
 0x453   : > { %p5272_p11 = por %p5271_p10, %p5270_p9 }
 0x454   : > { %p5268_p8 = pneg %p5267_p7 }
 0x456   : > { %p5273_p12 = pnand %p5272_p11, %p5268_p8 }
 0x458   : > { %5276 = shalt.err (!%p5273_p12)
}
 0x459   : > { %s5315_s22 = smov 192   ;;  %s5316_s25 = smov 12  }
 0x45a   : > { %5129 = dma.vmem_to_hbm [thread:$0]  (%p5415_p5), %s6792_s12, 12288, %s6790_s13, %s6797_s21, %s5315_s22, %s5315_s22, %s5316_s25  }
 0x45b PF: > { %p5135_p13 = scmp.ge.s32.totalorder %s5311_s20, 2  ;;  %s4246_s30 = sand.u32 1, %s5299_s17  }
 0x45c   : > { %s4247_s29 = scalar_lea.sflag [#allocation3], %s4246_s30 }
 0x45d   : > { %p5132_p0 = pnand %p5135_p13, %p5419_p6 }
 0x45f   : > { %p5133_p1 = pneg %p5132_p0 }
 0x461   : > { %5294 = dma.done.wait (%p5133_p1), %s4247_s29, 12288  }
 0x462   : > { %5296 = vsyncadd (%p5133_p1), %s4247_s29, 4294955008  ;;  %p21_p2 = scmp.ge.s32.totalorder %s5402_s23, 4   ;;  %s6853_s17 = smov %s5303_s18 }
 0x463   : > { %s6854_s18 = smov %s5307_s19  ;;  %s6855_s19 = smov %s5413_s26 }
 0x464   : > { %s6856_s20 = smov %s5402_s23  ;;  %23 = sbr.rel (!%p21_p2) target bundleno = 5 (0x5), region = 99 }
 0x469   :  { %4252 = vsyncpa [#allocation3], 1 }
 0x46a   :  { %4254 = vsyncpa [#allocation3 + $0x1], 1 }

</bundles_post_ra>
